<compile_context>
chip_gen: v6e
topology: v6e:2x2x1
jax: 0.10.0
libtpu: 0.0.40
codegen_flags: <defaults>
</compile_context>

<pallas_src>
import math

import jax
import jax.numpy as jnp
from jax.experimental import pallas as pl
from jax.experimental.pallas import tpu as pltpu

IMG_SHAPE = (3, 32, 32)
IMG_SIZE = IMG_SHAPE[0] * IMG_SHAPE[1] * IMG_SHAPE[2]   # 3072
DEPTH = 128
EPS = 0.8          # nn.BatchNorm1d(output, 0.8) -> eps = 0.8 (positional arg)
NEG_SLOPE = 0.2    # LeakyReLU(0.2)
NUM_CLASSES = 10
EMBED_DIM = 100
CLS_PAD = 16       # 10 -> 16  (sublane-friendly one-hot width)
EMB_PAD = 128      # 100 -> 128 (lane-aligned embedding width, zero-padded)


def _pick_tile_n():
    """Final-layer output-column tile (multiple of 128 dividing 3072).

    Single-TensorCore chips (v5e/v6e) prefer 2 big tiles (less per-grid-step
    overhead); multi-TC chips (v7x, v5p, ...) keep 4 tiles so the "parallel"
    grid axis gives each core 2 steps and the trunk recompute stays hidden.
    """
    kind = ""
    try:
        kind = jax.devices()[0].device_kind.lower()
    except Exception:
        pass
    single_tc = ("v5e" in kind) or ("v5 lite" in kind) or ("v6" in kind)
    return 1536 if single_tc else 768


TILE_N = _pick_tile_n()
N_TILES = IMG_SIZE // TILE_N


def _bn_lrelu(h, g_ref, beta_ref):
    """BatchNorm1d (training-mode batch stats, biased variance) -> LeakyReLU."""
    mean = jnp.mean(h, axis=0, keepdims=True)
    var = jnp.mean(jnp.square(h - mean), axis=0, keepdims=True)
    hn = (h - mean) * jax.lax.rsqrt(var + EPS) * g_ref[...] + beta_ref[...]
    return jnp.where(hn >= 0.0, hn, NEG_SLOPE * hn)


def _lin_bn_lrelu(x, w_ref, b_ref, g_ref, beta_ref):
    """Linear (bf16 weights, f32 accum) -> BN -> LeakyReLU."""
    h = jnp.dot(x.astype(jnp.bfloat16), w_ref[...],
                preferred_element_type=jnp.float32) + b_ref[...]
    return _bn_lrelu(h, g_ref, beta_ref)


def generator_kernel(labels_ref,                       # scalar prefetch (SMEM), (B,) int32
                     embed_ref, noise_ref,
                     w1a, w1b, b1, g1, be1,
                     w2, b2, g2, be2,
                     w3, b3, g3, be3,
                     w4, b4, g4, be4,
                     w5q, s5, b5,
                     out_ref):
    B = noise_ref.shape[0]

    # --- fused embedding lookup: one_hot(labels) @ padded embedding table ----
    row_ids = jax.lax.broadcasted_iota(jnp.int32, (B, CLS_PAD), 0)
    col_ids = jax.lax.broadcasted_iota(jnp.int32, (B, CLS_PAD), 1)
    lbl_mat = jnp.zeros((B, CLS_PAD), jnp.int32)
    for b in range(B):                                   # B static, tiny selects
        lbl_mat = jnp.where(row_ids == b, labels_ref[b], lbl_mat)
    one_hot = (col_ids == lbl_mat).astype(jnp.float32)   # (B, 16)
    emb = jnp.dot(one_hot, embed_ref[...],
                  preferred_element_type=jnp.float32)    # (B, 128), cols>=100 are 0

    # --- layer 1: Linear on [emb | noise], split into two dots (no concat) ---
    h = (jnp.dot(emb.astype(jnp.bfloat16), w1a[...],
                 preferred_element_type=jnp.float32)
         + jnp.dot(noise_ref[...].astype(jnp.bfloat16), w1b[...],
                   preferred_element_type=jnp.float32)
         + b1[...])
    h = _bn_lrelu(h, g1, be1)

    # --- trunk layers 2-4 (weights VMEM-resident across the grid) ------------
    h = _lin_bn_lrelu(h, w2, b2, g2, be2)
    h = _lin_bn_lrelu(h, w3, b3, g3, be3)
    h = _lin_bn_lrelu(h, w4, b4, g4, be4)

    # --- final layer: int8 weight tile, per-column scale, Tanh ---------------
    w5 = w5q[0].astype(jnp.bfloat16)                     # dequant (unit scale) for MXU
    logits = jnp.dot(h.astype(jnp.bfloat16), w5,
                     preferred_element_type=jnp.float32)
    logits = logits * s5[0] + b5[0]                      # fold scale in f32, then bias
    out_ref[...] = jnp.tanh(logits)


def generator_forward(noise, labels, params):
    B = noise.shape[0]

    flat_args = [params["embed"], noise]
    in_specs = [pl.BlockSpec((CLS_PAD, EMB_PAD), lambda j, lbl: (0, 0)),
                pl.BlockSpec(noise.shape, lambda j, lbl: (0, 0))]
    for name in ("w1a", "w1b", "b1", "g1", "beta1",
                 "w2", "b2", "g2", "beta2",
                 "w3", "b3", "g3", "beta3",
                 "w4", "b4", "g4", "beta4"):
        a = params[name]
        flat_args.append(a)
        in_specs.append(pl.BlockSpec(a.shape, lambda j, lbl: (0, 0)))

    d4 = params["w5q"].shape[1]                          # 1024
    flat_args += [params["w5q"], params["s5"], params["b5"]]
    in_specs += [pl.BlockSpec((1, d4, TILE_N), lambda j, lbl: (j, 0, 0)),
                 pl.BlockSpec((1, 1, TILE_N), lambda j, lbl: (j, 0, 0)),
                 pl.BlockSpec((1, 1, TILE_N), lambda j, lbl: (j, 0, 0))]

    out_flat = pl.pallas_call(
        generator_kernel,
        grid_spec=pltpu.PrefetchScalarGridSpec(
            num_scalar_prefetch=1,
            grid=(N_TILES,),
            in_specs=in_specs,
            out_specs=pl.BlockSpec((B, TILE_N), lambda j, lbl: (0, j)),
        ),
        out_shape=jax.ShapeDtypeStruct((B, IMG_SIZE), jnp.float32),
        compiler_params=pltpu.CompilerParams(
            dimension_semantics=("parallel",),
            vmem_limit_bytes=32 << 20,    # footprint ~7-10 MiB; fits v7x 64 MiB/TC
        ),
    )(labels.astype(jnp.int32), *flat_args)

    return out_flat.reshape(B, *IMG_SHAPE)


def init_params(key, latent_dim):
    """Deterministic init mimicking PyTorch defaults (Linear: U(-1/sqrt(fan_in),...),
    Embedding: N(0,1), BN affine: gamma=1, beta=0), pre-packed into the layouts
    the kernel wants: padded embedding table, split/padded layer-1 weights,
    bf16 trunk weights, per-column-int8 + tile-major final-layer weight."""
    dims = [latent_dim + EMBED_DIM, DEPTH, DEPTH * 2, DEPTH * 4, DEPTH * 8, IMG_SIZE]
    keys = jax.random.split(key, 11)
    params = {}

    # Embedding table (10,100) -> zero-padded (16,128); padding never selected.
    embed = jax.random.normal(keys[0], (NUM_CLASSES, EMBED_DIM), jnp.float32)
    params["embed"] = jnp.pad(embed, ((0, CLS_PAD - NUM_CLASSES),
                                      (0, EMB_PAD - EMBED_DIM)))

    ws = []
    for i in range(5):
        fan_in, fan_out = dims[i], dims[i + 1]
        bound = 1.0 / math.sqrt(fan_in)
        ws.append(jax.random.uniform(keys[1 + 2 * i], (fan_in, fan_out),
                                     jnp.float32, -bound, bound))
        params[f"b{i + 1}"] = jax.random.uniform(
            keys[2 + 2 * i], (1, fan_out), jnp.float32, -bound, bound)
        if i < 4:  # BN affine params only on the first 4 blocks
            params[f"g{i + 1}"] = jnp.ones((1, fan_out), jnp.float32)
            params[f"beta{i + 1}"] = jnp.zeros((1, fan_out), jnp.float32)

    # Layer 1 split: rows [0:100] act on the embedding (padded to 128 rows with
    # zeros -> padded emb columns never contribute), rows [100:100+latent] on noise.
    w1 = ws[0]
    params["w1a"] = jnp.pad(w1[:EMBED_DIM, :],
                            ((0, EMB_PAD - EMBED_DIM), (0, 0))).astype(jnp.bfloat16)
    params["w1b"] = w1[EMBED_DIM:, :].astype(jnp.bfloat16)
    params["w2"] = ws[1].astype(jnp.bfloat16)
    params["w3"] = ws[2].astype(jnp.bfloat16)
    params["w4"] = ws[3].astype(jnp.bfloat16)

    # Final layer: per-output-column symmetric int8 quantization + tile-major
    # layout (N_TILES, 1024, TILE_N) so each grid step DMAs one contiguous slab.
    w5 = ws[4]
    absmax = jnp.max(jnp.abs(w5), axis=0, keepdims=True)            # (1, 3072)
    s5 = jnp.maximum(absmax, 1e-12) / 127.0
    w5_q = jnp.clip(jnp.round(w5 / s5), -127.0, 127.0).astype(jnp.int8)
    d4 = dims[4]
    params["w5q"] = w5_q.reshape(d4, N_TILES, TILE_N).transpose(1, 0, 2)
    params["s5"] = s5.reshape(N_TILES, 1, TILE_N)
    params["b5"] = params["b5"].reshape(N_TILES, 1, TILE_N)
    return params


if __name__ == "__main__":
    latent_dim = 32
    B = 8

    key = jax.random.PRNGKey(0)
    pkey, nkey, lkey = jax.random.split(key, 3)

    params = init_params(pkey, latent_dim)
    noise = jax.random.normal(nkey, (B, latent_dim), jnp.float32)
    labels = jax.random.randint(lkey, (B,), 0, 10)

    img = generator_forward(noise, labels, params)
    jax.block_until_ready(img)

    assert img.shape == (B, *IMG_SHAPE), img.shape
    assert img.dtype == jnp.float32
    assert bool(jnp.all(jnp.isfinite(img)))
    print("KERNEL_OK")
</pallas_src>

<mosaic_0001>
module attributes {stable_mosaic.version = 11 : i64} {
  func.func @generator_kernel(%arg0: i32, %arg1: memref<8xi32, #tpu.memory_space<smem>>, %arg2: memref<16x128xf32, #tpu.memory_space<vmem>>, %arg3: memref<8x32xf32, #tpu.memory_space<vmem>>, %arg4: memref<128x128xbf16, #tpu.memory_space<vmem>>, %arg5: memref<32x128xbf16, #tpu.memory_space<vmem>>, %arg6: memref<1x128xf32, #tpu.memory_space<vmem>>, %arg7: memref<1x128xf32, #tpu.memory_space<vmem>>, %arg8: memref<1x128xf32, #tpu.memory_space<vmem>>, %arg9: memref<128x256xbf16, #tpu.memory_space<vmem>>, %arg10: memref<1x256xf32, #tpu.memory_space<vmem>>, %arg11: memref<1x256xf32, #tpu.memory_space<vmem>>, %arg12: memref<1x256xf32, #tpu.memory_space<vmem>>, %arg13: memref<256x512xbf16, #tpu.memory_space<vmem>>, %arg14: memref<1x512xf32, #tpu.memory_space<vmem>>, %arg15: memref<1x512xf32, #tpu.memory_space<vmem>>, %arg16: memref<1x512xf32, #tpu.memory_space<vmem>>, %arg17: memref<512x1024xbf16, #tpu.memory_space<vmem>>, %arg18: memref<1x1024xf32, #tpu.memory_space<vmem>>, %arg19: memref<1x1024xf32, #tpu.memory_space<vmem>>, %arg20: memref<1x1024xf32, #tpu.memory_space<vmem>>, %arg21: memref<1x1024x768xi8, #tpu.memory_space<vmem>>, %arg22: memref<1x1x768xf32, #tpu.memory_space<vmem>>, %arg23: memref<1x1x768xf32, #tpu.memory_space<vmem>>, %arg24: memref<8x768xf32, #tpu.memory_space<vmem>>) attributes {dimension_semantics = [#tpu.dimension_semantics<parallel>], iteration_bounds = array<i64: 4>, scalar_prefetch = 1 : i64, scratch_operands = 0 : i64, tpu.core_type = #tpu.core_type<tc>, window_params = [{pipeline_mode = #tpu.pipeline_mode<synchronous>, transform_indices = @transform_0, window_bounds = array<i64: 16, 128>}, {pipeline_mode = #tpu.pipeline_mode<synchronous>, transform_indices = @transform_1, window_bounds = array<i64: 8, 32>}, {pipeline_mode = #tpu.pipeline_mode<synchronous>, transform_indices = @transform_2, window_bounds = array<i64: 128, 128>}, {pipeline_mode = #tpu.pipeline_mode<synchronous>, transform_indices = @transform_3, window_bounds = array<i64: 32, 128>}, {pipeline_mode = #tpu.pipeline_mode<synchronous>, transform_indices = @transform_4, window_bounds = array<i64: 1, 128>}, {pipeline_mode = #tpu.pipeline_mode<synchronous>, transform_indices = @transform_5, window_bounds = array<i64: 1, 128>}, {pipeline_mode = #tpu.pipeline_mode<synchronous>, transform_indices = @transform_6, window_bounds = array<i64: 1, 128>}, {pipeline_mode = #tpu.pipeline_mode<synchronous>, transform_indices = @transform_7, window_bounds = array<i64: 128, 256>}, {pipeline_mode = #tpu.pipeline_mode<synchronous>, transform_indices = @transform_8, window_bounds = array<i64: 1, 256>}, {pipeline_mode = #tpu.pipeline_mode<synchronous>, transform_indices = @transform_9, window_bounds = array<i64: 1, 256>}, {pipeline_mode = #tpu.pipeline_mode<synchronous>, transform_indices = @transform_10, window_bounds = array<i64: 1, 256>}, {pipeline_mode = #tpu.pipeline_mode<synchronous>, transform_indices = @transform_11, window_bounds = array<i64: 256, 512>}, {pipeline_mode = #tpu.pipeline_mode<synchronous>, transform_indices = @transform_12, window_bounds = array<i64: 1, 512>}, {pipeline_mode = #tpu.pipeline_mode<synchronous>, transform_indices = @transform_13, window_bounds = array<i64: 1, 512>}, {pipeline_mode = #tpu.pipeline_mode<synchronous>, transform_indices = @transform_14, window_bounds = array<i64: 1, 512>}, {pipeline_mode = #tpu.pipeline_mode<synchronous>, transform_indices = @transform_15, window_bounds = array<i64: 512, 1024>}, {pipeline_mode = #tpu.pipeline_mode<synchronous>, transform_indices = @transform_16, window_bounds = array<i64: 1, 1024>}, {pipeline_mode = #tpu.pipeline_mode<synchronous>, transform_indices = @transform_17, window_bounds = array<i64: 1, 1024>}, {pipeline_mode = #tpu.pipeline_mode<synchronous>, transform_indices = @transform_18, window_bounds = array<i64: 1, 1024>}, {transform_indices = @transform_19, window_bounds = array<i64: 1, 1024, 768>}, {transform_indices = @transform_20, window_bounds = array<i64: 1, 1, 768>}, {transform_indices = @transform_21, window_bounds = array<i64: 1, 1, 768>}, {transform_indices = @transform_22, window_bounds = array<i64: 8, 768>}]} {
    %0 = tpu.iota {dimensions = array<i32: 0>} : vector<8x16xi32>
    %1 = tpu.iota {dimensions = array<i32: 1>} : vector<8x16xi32>
    %c0_i32 = arith.constant 0 : i32
    %2 = vector.broadcast %c0_i32 : i32 to vector<8x16xi32>
    %c0_i32_0 = arith.constant 0 : i32
    %3 = vector.broadcast %c0_i32_0 : i32 to vector<8x16xi32>
    %4 = arith.cmpi eq, %0, %3 : vector<8x16xi32>
    %c0 = arith.constant 0 : index
    %5 = memref.load %arg1[%c0] : memref<8xi32, #tpu.memory_space<smem>>
    %6 = vector.broadcast %5 : i32 to vector<8x16xi32>
    %7 = arith.select %4, %6, %2 : vector<8x16xi1>, vector<8x16xi32>
    %c1_i32 = arith.constant 1 : i32
    %8 = vector.broadcast %c1_i32 : i32 to vector<8x16xi32>
    %9 = arith.cmpi eq, %0, %8 : vector<8x16xi32>
    %c1 = arith.constant 1 : index
    %10 = memref.load %arg1[%c1] : memref<8xi32, #tpu.memory_space<smem>>
    %11 = vector.broadcast %10 : i32 to vector<8x16xi32>
    %12 = arith.select %9, %11, %7 : vector<8x16xi1>, vector<8x16xi32>
    %c2_i32 = arith.constant 2 : i32
    %13 = vector.broadcast %c2_i32 : i32 to vector<8x16xi32>
    %14 = arith.cmpi eq, %0, %13 : vector<8x16xi32>
    %c2 = arith.constant 2 : index
    %15 = memref.load %arg1[%c2] : memref<8xi32, #tpu.memory_space<smem>>
    %16 = vector.broadcast %15 : i32 to vector<8x16xi32>
    %17 = arith.select %14, %16, %12 : vector<8x16xi1>, vector<8x16xi32>
    %c3_i32 = arith.constant 3 : i32
    %18 = vector.broadcast %c3_i32 : i32 to vector<8x16xi32>
    %19 = arith.cmpi eq, %0, %18 : vector<8x16xi32>
    %c3 = arith.constant 3 : index
    %20 = memref.load %arg1[%c3] : memref<8xi32, #tpu.memory_space<smem>>
    %21 = vector.broadcast %20 : i32 to vector<8x16xi32>
    %22 = arith.select %19, %21, %17 : vector<8x16xi1>, vector<8x16xi32>
    %c4_i32 = arith.constant 4 : i32
    %23 = vector.broadcast %c4_i32 : i32 to vector<8x16xi32>
    %24 = arith.cmpi eq, %0, %23 : vector<8x16xi32>
    %c4 = arith.constant 4 : index
    %25 = memref.load %arg1[%c4] : memref<8xi32, #tpu.memory_space<smem>>
    %26 = vector.broadcast %25 : i32 to vector<8x16xi32>
    %27 = arith.select %24, %26, %22 : vector<8x16xi1>, vector<8x16xi32>
    %c5_i32 = arith.constant 5 : i32
    %28 = vector.broadcast %c5_i32 : i32 to vector<8x16xi32>
    %29 = arith.cmpi eq, %0, %28 : vector<8x16xi32>
    %c5 = arith.constant 5 : index
    %30 = memref.load %arg1[%c5] : memref<8xi32, #tpu.memory_space<smem>>
    %31 = vector.broadcast %30 : i32 to vector<8x16xi32>
    %32 = arith.select %29, %31, %27 : vector<8x16xi1>, vector<8x16xi32>
    %c6_i32 = arith.constant 6 : i32
    %33 = vector.broadcast %c6_i32 : i32 to vector<8x16xi32>
    %34 = arith.cmpi eq, %0, %33 : vector<8x16xi32>
    %c6 = arith.constant 6 : index
    %35 = memref.load %arg1[%c6] : memref<8xi32, #tpu.memory_space<smem>>
    %36 = vector.broadcast %35 : i32 to vector<8x16xi32>
    %37 = arith.select %34, %36, %32 : vector<8x16xi1>, vector<8x16xi32>
    %c7_i32 = arith.constant 7 : i32
    %38 = vector.broadcast %c7_i32 : i32 to vector<8x16xi32>
    %39 = arith.cmpi eq, %0, %38 : vector<8x16xi32>
    %c7 = arith.constant 7 : index
    %40 = memref.load %arg1[%c7] : memref<8xi32, #tpu.memory_space<smem>>
    %41 = vector.broadcast %40 : i32 to vector<8x16xi32>
    %42 = arith.select %39, %41, %37 : vector<8x16xi1>, vector<8x16xi32>
    %43 = arith.cmpi eq, %1, %42 : vector<8x16xi32>
    %44 = arith.extui %43 : vector<8x16xi1> to vector<8x16xi32>
    %45 = arith.sitofp %44 : vector<8x16xi32> to vector<8x16xf32>
    %c0_1 = arith.constant 0 : index
    %c0_2 = arith.constant 0 : index
    %46 = vector.load %arg2[%c0_1, %c0_2] : memref<16x128xf32, #tpu.memory_space<vmem>>, vector<16x128xf32>
    %cst = arith.constant dense<0.000000e+00> : vector<8x128xf32>
    %47 = tpu.matmul %45, %46, %cst {dimension_numbers = #tpu.dot_dimension_numbers<[1], [0], [0], [1], [0, 0, 1, 1], [], []>} : vector<8x16xf32>, vector<16x128xf32>, vector<8x128xf32> -> vector<8x128xf32>
    %48 = arith.truncf %47 : vector<8x128xf32> to vector<8x128xbf16>
    %c0_3 = arith.constant 0 : index
    %c0_4 = arith.constant 0 : index
    %49 = vector.load %arg4[%c0_3, %c0_4] : memref<128x128xbf16, #tpu.memory_space<vmem>>, vector<128x128xbf16>
    %cst_5 = arith.constant dense<0.000000e+00> : vector<8x128xf32>
    %50 = tpu.matmul %48, %49, %cst_5 {dimension_numbers = #tpu.dot_dimension_numbers<[1], [0], [0], [1], [0, 0, 1, 1], [], []>} : vector<8x128xbf16>, vector<128x128xbf16>, vector<8x128xf32> -> vector<8x128xf32>
    %c0_6 = arith.constant 0 : index
    %c0_7 = arith.constant 0 : index
    %51 = vector.load %arg3[%c0_6, %c0_7] : memref<8x32xf32, #tpu.memory_space<vmem>>, vector<8x32xf32>
    %52 = arith.truncf %51 : vector<8x32xf32> to vector<8x32xbf16>
    %c0_8 = arith.constant 0 : index
    %c0_9 = arith.constant 0 : index
    %53 = vector.load %arg5[%c0_8, %c0_9] : memref<32x128xbf16, #tpu.memory_space<vmem>>, vector<32x128xbf16>
    %cst_10 = arith.constant dense<0.000000e+00> : vector<8x128xf32>
    %54 = tpu.matmul %52, %53, %cst_10 {dimension_numbers = #tpu.dot_dimension_numbers<[1], [0], [0], [1], [0, 0, 1, 1], [], []>} : vector<8x32xbf16>, vector<32x128xbf16>, vector<8x128xf32> -> vector<8x128xf32>
    %55 = arith.addf %50, %54 : vector<8x128xf32>
    %c0_11 = arith.constant 0 : index
    %c0_12 = arith.constant 0 : index
    %56 = vector.load %arg6[%c0_11, %c0_12] : memref<1x128xf32, #tpu.memory_space<vmem>>, vector<1x128xf32>
    %57 = vector.broadcast %56 : vector<1x128xf32> to vector<8x128xf32>
    %58 = arith.addf %55, %57 : vector<8x128xf32>
    %cst_13 = arith.constant dense<0.000000e+00> : vector<128xf32>
    %59 = vector.multi_reduction <add>, %58, %cst_13 [0] : vector<8x128xf32> to vector<128xf32>
    %60 = vector.shape_cast %59 : vector<128xf32> to vector<1x128xf32>
    %cst_14 = arith.constant 8.000000e+00 : f32
    %61 = vector.broadcast %cst_14 : f32 to vector<1x128xf32>
    %62 = arith.divf %60, %61 : vector<1x128xf32>
    %63 = vector.broadcast %62 : vector<1x128xf32> to vector<8x128xf32>
    %64 = arith.subf %58, %63 : vector<8x128xf32>
    %65 = arith.mulf %64, %64 : vector<8x128xf32>
    %cst_15 = arith.constant dense<0.000000e+00> : vector<128xf32>
    %66 = vector.multi_reduction <add>, %65, %cst_15 [0] : vector<8x128xf32> to vector<128xf32>
    %67 = vector.shape_cast %66 : vector<128xf32> to vector<1x128xf32>
    %cst_16 = arith.constant 8.000000e+00 : f32
    %68 = vector.broadcast %cst_16 : f32 to vector<1x128xf32>
    %69 = arith.divf %67, %68 : vector<1x128xf32>
    %70 = vector.broadcast %62 : vector<1x128xf32> to vector<8x128xf32>
    %71 = arith.subf %58, %70 : vector<8x128xf32>
    %cst_17 = arith.constant 8.000000e-01 : f32
    %72 = vector.broadcast %cst_17 : f32 to vector<1x128xf32>
    %73 = arith.addf %69, %72 : vector<1x128xf32>
    %74 = math.rsqrt %73 : vector<1x128xf32>
    %75 = vector.broadcast %74 : vector<1x128xf32> to vector<8x128xf32>
    %76 = arith.mulf %71, %75 : vector<8x128xf32>
    %c0_18 = arith.constant 0 : index
    %c0_19 = arith.constant 0 : index
    %77 = vector.load %arg7[%c0_18, %c0_19] : memref<1x128xf32, #tpu.memory_space<vmem>>, vector<1x128xf32>
    %78 = vector.broadcast %77 : vector<1x128xf32> to vector<8x128xf32>
    %79 = arith.mulf %76, %78 : vector<8x128xf32>
    %c0_20 = arith.constant 0 : index
    %c0_21 = arith.constant 0 : index
    %80 = vector.load %arg8[%c0_20, %c0_21] : memref<1x128xf32, #tpu.memory_space<vmem>>, vector<1x128xf32>
    %81 = vector.broadcast %80 : vector<1x128xf32> to vector<8x128xf32>
    %82 = arith.addf %79, %81 : vector<8x128xf32>
    %cst_22 = arith.constant 0.000000e+00 : f32
    %83 = vector.broadcast %cst_22 : f32 to vector<8x128xf32>
    %84 = arith.cmpf oge, %82, %83 : vector<8x128xf32>
    %cst_23 = arith.constant 2.000000e-01 : f32
    %85 = vector.broadcast %cst_23 : f32 to vector<8x128xf32>
    %86 = arith.mulf %85, %82 : vector<8x128xf32>
    %87 = arith.select %84, %82, %86 : vector<8x128xi1>, vector<8x128xf32>
    %88 = arith.truncf %87 : vector<8x128xf32> to vector<8x128xbf16>
    %c0_24 = arith.constant 0 : index
    %c0_25 = arith.constant 0 : index
    %89 = vector.load %arg9[%c0_24, %c0_25] : memref<128x256xbf16, #tpu.memory_space<vmem>>, vector<128x256xbf16>
    %cst_26 = arith.constant dense<0.000000e+00> : vector<8x256xf32>
    %90 = tpu.matmul %88, %89, %cst_26 {dimension_numbers = #tpu.dot_dimension_numbers<[1], [0], [0], [1], [0, 0, 1, 1], [], []>} : vector<8x128xbf16>, vector<128x256xbf16>, vector<8x256xf32> -> vector<8x256xf32>
    %c0_27 = arith.constant 0 : index
    %c0_28 = arith.constant 0 : index
    %91 = vector.load %arg10[%c0_27, %c0_28] : memref<1x256xf32, #tpu.memory_space<vmem>>, vector<1x256xf32>
    %92 = vector.broadcast %91 : vector<1x256xf32> to vector<8x256xf32>
    %93 = arith.addf %90, %92 : vector<8x256xf32>
    %cst_29 = arith.constant dense<0.000000e+00> : vector<256xf32>
    %94 = vector.multi_reduction <add>, %93, %cst_29 [0] : vector<8x256xf32> to vector<256xf32>
    %95 = vector.shape_cast %94 : vector<256xf32> to vector<1x256xf32>
    %cst_30 = arith.constant 8.000000e+00 : f32
    %96 = vector.broadcast %cst_30 : f32 to vector<1x256xf32>
    %97 = arith.divf %95, %96 : vector<1x256xf32>
    %98 = vector.broadcast %97 : vector<1x256xf32> to vector<8x256xf32>
    %99 = arith.subf %93, %98 : vector<8x256xf32>
    %100 = arith.mulf %99, %99 : vector<8x256xf32>
    %cst_31 = arith.constant dense<0.000000e+00> : vector<256xf32>
    %101 = vector.multi_reduction <add>, %100, %cst_31 [0] : vector<8x256xf32> to vector<256xf32>
    %102 = vector.shape_cast %101 : vector<256xf32> to vector<1x256xf32>
    %cst_32 = arith.constant 8.000000e+00 : f32
    %103 = vector.broadcast %cst_32 : f32 to vector<1x256xf32>
    %104 = arith.divf %102, %103 : vector<1x256xf32>
    %105 = vector.broadcast %97 : vector<1x256xf32> to vector<8x256xf32>
    %106 = arith.subf %93, %105 : vector<8x256xf32>
    %cst_33 = arith.constant 8.000000e-01 : f32
    %107 = vector.broadcast %cst_33 : f32 to vector<1x256xf32>
    %108 = arith.addf %104, %107 : vector<1x256xf32>
    %109 = math.rsqrt %108 : vector<1x256xf32>
    %110 = vector.broadcast %109 : vector<1x256xf32> to vector<8x256xf32>
    %111 = arith.mulf %106, %110 : vector<8x256xf32>
    %c0_34 = arith.constant 0 : index
    %c0_35 = arith.constant 0 : index
    %112 = vector.load %arg11[%c0_34, %c0_35] : memref<1x256xf32, #tpu.memory_space<vmem>>, vector<1x256xf32>
    %113 = vector.broadcast %112 : vector<1x256xf32> to vector<8x256xf32>
    %114 = arith.mulf %111, %113 : vector<8x256xf32>
    %c0_36 = arith.constant 0 : index
    %c0_37 = arith.constant 0 : index
    %115 = vector.load %arg12[%c0_36, %c0_37] : memref<1x256xf32, #tpu.memory_space<vmem>>, vector<1x256xf32>
    %116 = vector.broadcast %115 : vector<1x256xf32> to vector<8x256xf32>
    %117 = arith.addf %114, %116 : vector<8x256xf32>
    %cst_38 = arith.constant 0.000000e+00 : f32
    %118 = vector.broadcast %cst_38 : f32 to vector<8x256xf32>
    %119 = arith.cmpf oge, %117, %118 : vector<8x256xf32>
    %cst_39 = arith.constant 2.000000e-01 : f32
    %120 = vector.broadcast %cst_39 : f32 to vector<8x256xf32>
    %121 = arith.mulf %120, %117 : vector<8x256xf32>
    %122 = arith.select %119, %117, %121 : vector<8x256xi1>, vector<8x256xf32>
    %123 = arith.truncf %122 : vector<8x256xf32> to vector<8x256xbf16>
    %c0_40 = arith.constant 0 : index
    %c0_41 = arith.constant 0 : index
    %124 = vector.load %arg13[%c0_40, %c0_41] : memref<256x512xbf16, #tpu.memory_space<vmem>>, vector<256x512xbf16>
    %cst_42 = arith.constant dense<0.000000e+00> : vector<8x512xf32>
    %125 = tpu.matmul %123, %124, %cst_42 {dimension_numbers = #tpu.dot_dimension_numbers<[1], [0], [0], [1], [0, 0, 1, 1], [], []>} : vector<8x256xbf16>, vector<256x512xbf16>, vector<8x512xf32> -> vector<8x512xf32>
    %c0_43 = arith.constant 0 : index
    %c0_44 = arith.constant 0 : index
    %126 = vector.load %arg14[%c0_43, %c0_44] : memref<1x512xf32, #tpu.memory_space<vmem>>, vector<1x512xf32>
    %127 = vector.broadcast %126 : vector<1x512xf32> to vector<8x512xf32>
    %128 = arith.addf %125, %127 : vector<8x512xf32>
    %cst_45 = arith.constant dense<0.000000e+00> : vector<512xf32>
    %129 = vector.multi_reduction <add>, %128, %cst_45 [0] : vector<8x512xf32> to vector<512xf32>
    %130 = vector.shape_cast %129 : vector<512xf32> to vector<1x512xf32>
    %cst_46 = arith.constant 8.000000e+00 : f32
    %131 = vector.broadcast %cst_46 : f32 to vector<1x512xf32>
    %132 = arith.divf %130, %131 : vector<1x512xf32>
    %133 = vector.broadcast %132 : vector<1x512xf32> to vector<8x512xf32>
    %134 = arith.subf %128, %133 : vector<8x512xf32>
    %135 = arith.mulf %134, %134 : vector<8x512xf32>
    %cst_47 = arith.constant dense<0.000000e+00> : vector<512xf32>
    %136 = vector.multi_reduction <add>, %135, %cst_47 [0] : vector<8x512xf32> to vector<512xf32>
    %137 = vector.shape_cast %136 : vector<512xf32> to vector<1x512xf32>
    %cst_48 = arith.constant 8.000000e+00 : f32
    %138 = vector.broadcast %cst_48 : f32 to vector<1x512xf32>
    %139 = arith.divf %137, %138 : vector<1x512xf32>
    %140 = vector.broadcast %132 : vector<1x512xf32> to vector<8x512xf32>
    %141 = arith.subf %128, %140 : vector<8x512xf32>
    %cst_49 = arith.constant 8.000000e-01 : f32
    %142 = vector.broadcast %cst_49 : f32 to vector<1x512xf32>
    %143 = arith.addf %139, %142 : vector<1x512xf32>
    %144 = math.rsqrt %143 : vector<1x512xf32>
    %145 = vector.broadcast %144 : vector<1x512xf32> to vector<8x512xf32>
    %146 = arith.mulf %141, %145 : vector<8x512xf32>
    %c0_50 = arith.constant 0 : index
    %c0_51 = arith.constant 0 : index
    %147 = vector.load %arg15[%c0_50, %c0_51] : memref<1x512xf32, #tpu.memory_space<vmem>>, vector<1x512xf32>
    %148 = vector.broadcast %147 : vector<1x512xf32> to vector<8x512xf32>
    %149 = arith.mulf %146, %148 : vector<8x512xf32>
    %c0_52 = arith.constant 0 : index
    %c0_53 = arith.constant 0 : index
    %150 = vector.load %arg16[%c0_52, %c0_53] : memref<1x512xf32, #tpu.memory_space<vmem>>, vector<1x512xf32>
    %151 = vector.broadcast %150 : vector<1x512xf32> to vector<8x512xf32>
    %152 = arith.addf %149, %151 : vector<8x512xf32>
    %cst_54 = arith.constant 0.000000e+00 : f32
    %153 = vector.broadcast %cst_54 : f32 to vector<8x512xf32>
    %154 = arith.cmpf oge, %152, %153 : vector<8x512xf32>
    %cst_55 = arith.constant 2.000000e-01 : f32
    %155 = vector.broadcast %cst_55 : f32 to vector<8x512xf32>
    %156 = arith.mulf %155, %152 : vector<8x512xf32>
    %157 = arith.select %154, %152, %156 : vector<8x512xi1>, vector<8x512xf32>
    %158 = arith.truncf %157 : vector<8x512xf32> to vector<8x512xbf16>
    %c0_56 = arith.constant 0 : index
    %c0_57 = arith.constant 0 : index
    %159 = vector.load %arg17[%c0_56, %c0_57] : memref<512x1024xbf16, #tpu.memory_space<vmem>>, vector<512x1024xbf16>
    %cst_58 = arith.constant dense<0.000000e+00> : vector<8x1024xf32>
    %160 = tpu.matmul %158, %159, %cst_58 {dimension_numbers = #tpu.dot_dimension_numbers<[1], [0], [0], [1], [0, 0, 1, 1], [], []>} : vector<8x512xbf16>, vector<512x1024xbf16>, vector<8x1024xf32> -> vector<8x1024xf32>
    %c0_59 = arith.constant 0 : index
    %c0_60 = arith.constant 0 : index
    %161 = vector.load %arg18[%c0_59, %c0_60] : memref<1x1024xf32, #tpu.memory_space<vmem>>, vector<1x1024xf32>
    %162 = vector.broadcast %161 : vector<1x1024xf32> to vector<8x1024xf32>
    %163 = arith.addf %160, %162 : vector<8x1024xf32>
    %cst_61 = arith.constant dense<0.000000e+00> : vector<1024xf32>
    %164 = vector.multi_reduction <add>, %163, %cst_61 [0] : vector<8x1024xf32> to vector<1024xf32>
    %165 = vector.shape_cast %164 : vector<1024xf32> to vector<1x1024xf32>
    %cst_62 = arith.constant 8.000000e+00 : f32
    %166 = vector.broadcast %cst_62 : f32 to vector<1x1024xf32>
    %167 = arith.divf %165, %166 : vector<1x1024xf32>
    %168 = vector.broadcast %167 : vector<1x1024xf32> to vector<8x1024xf32>
    %169 = arith.subf %163, %168 : vector<8x1024xf32>
    %170 = arith.mulf %169, %169 : vector<8x1024xf32>
    %cst_63 = arith.constant dense<0.000000e+00> : vector<1024xf32>
    %171 = vector.multi_reduction <add>, %170, %cst_63 [0] : vector<8x1024xf32> to vector<1024xf32>
    %172 = vector.shape_cast %171 : vector<1024xf32> to vector<1x1024xf32>
    %cst_64 = arith.constant 8.000000e+00 : f32
    %173 = vector.broadcast %cst_64 : f32 to vector<1x1024xf32>
    %174 = arith.divf %172, %173 : vector<1x1024xf32>
    %175 = vector.broadcast %167 : vector<1x1024xf32> to vector<8x1024xf32>
    %176 = arith.subf %163, %175 : vector<8x1024xf32>
    %cst_65 = arith.constant 8.000000e-01 : f32
    %177 = vector.broadcast %cst_65 : f32 to vector<1x1024xf32>
    %178 = arith.addf %174, %177 : vector<1x1024xf32>
    %179 = math.rsqrt %178 : vector<1x1024xf32>
    %180 = vector.broadcast %179 : vector<1x1024xf32> to vector<8x1024xf32>
    %181 = arith.mulf %176, %180 : vector<8x1024xf32>
    %c0_66 = arith.constant 0 : index
    %c0_67 = arith.constant 0 : index
    %182 = vector.load %arg19[%c0_66, %c0_67] : memref<1x1024xf32, #tpu.memory_space<vmem>>, vector<1x1024xf32>
    %183 = vector.broadcast %182 : vector<1x1024xf32> to vector<8x1024xf32>
    %184 = arith.mulf %181, %183 : vector<8x1024xf32>
    %c0_68 = arith.constant 0 : index
    %c0_69 = arith.constant 0 : index
    %185 = vector.load %arg20[%c0_68, %c0_69] : memref<1x1024xf32, #tpu.memory_space<vmem>>, vector<1x1024xf32>
    %186 = vector.broadcast %185 : vector<1x1024xf32> to vector<8x1024xf32>
    %187 = arith.addf %184, %186 : vector<8x1024xf32>
    %cst_70 = arith.constant 0.000000e+00 : f32
    %188 = vector.broadcast %cst_70 : f32 to vector<8x1024xf32>
    %189 = arith.cmpf oge, %187, %188 : vector<8x1024xf32>
    %cst_71 = arith.constant 2.000000e-01 : f32
    %190 = vector.broadcast %cst_71 : f32 to vector<8x1024xf32>
    %191 = arith.mulf %190, %187 : vector<8x1024xf32>
    %192 = arith.select %189, %187, %191 : vector<8x1024xi1>, vector<8x1024xf32>
    %c0_72 = arith.constant 0 : index
    %c0_73 = arith.constant 0 : index
    %c0_74 = arith.constant 0 : index
    %193 = vector.load %arg21[%c0_72, %c0_73, %c0_74] : memref<1x1024x768xi8, #tpu.memory_space<vmem>>, vector<1x1024x768xi8>
    %194 = vector.shape_cast %193 : vector<1x1024x768xi8> to vector<1024x768xi8>
    %195 = arith.sitofp %194 : vector<1024x768xi8> to vector<1024x768xbf16>
    %196 = arith.truncf %192 : vector<8x1024xf32> to vector<8x1024xbf16>
    %cst_75 = arith.constant dense<0.000000e+00> : vector<8x768xf32>
    %197 = tpu.matmul %196, %195, %cst_75 {dimension_numbers = #tpu.dot_dimension_numbers<[1], [0], [0], [1], [0, 0, 1, 1], [], []>} : vector<8x1024xbf16>, vector<1024x768xbf16>, vector<8x768xf32> -> vector<8x768xf32>
    %c0_76 = arith.constant 0 : index
    %c0_77 = arith.constant 0 : index
    %c0_78 = arith.constant 0 : index
    %198 = vector.load %arg22[%c0_76, %c0_77, %c0_78] : memref<1x1x768xf32, #tpu.memory_space<vmem>>, vector<1x1x768xf32>
    %199 = vector.shape_cast %198 : vector<1x1x768xf32> to vector<1x768xf32>
    %200 = vector.broadcast %199 : vector<1x768xf32> to vector<8x768xf32>
    %201 = arith.mulf %197, %200 : vector<8x768xf32>
    %c0_79 = arith.constant 0 : index
    %c0_80 = arith.constant 0 : index
    %c0_81 = arith.constant 0 : index
    %202 = vector.load %arg23[%c0_79, %c0_80, %c0_81] : memref<1x1x768xf32, #tpu.memory_space<vmem>>, vector<1x1x768xf32>
    %203 = vector.shape_cast %202 : vector<1x1x768xf32> to vector<1x768xf32>
    %204 = vector.broadcast %203 : vector<1x768xf32> to vector<8x768xf32>
    %205 = arith.addf %201, %204 : vector<8x768xf32>
    %206 = math.tanh %205 : vector<8x768xf32>
    %c0_82 = arith.constant 0 : index
    %c0_83 = arith.constant 0 : index
    %207 = vector.load %arg24[%c0_82, %c0_83] : memref<8x768xf32, #tpu.memory_space<vmem>>, vector<8x768xf32>
    tpu.vector_store %arg24[%c0_82, %c0_83], %206 {strides = array<i32>} : memref<8x768xf32, #tpu.memory_space<vmem>>, vector<8x768xf32>,
    return
  }
  func.func @transform_0(%arg0: i32, %arg1: memref<8xi32, #tpu.memory_space<smem>>) -> (i32, i32) {
    %c0_i32 = arith.constant 0 : i32
    %c0_i32_0 = arith.constant 0 : i32
    %c0_i32_1 = arith.constant 0 : i32
    return %c0_i32, %c0_i32_0 : i32, i32
  }
  func.func @transform_1(%arg0: i32, %arg1: memref<8xi32, #tpu.memory_space<smem>>) -> (i32, i32) {
    %c0_i32 = arith.constant 0 : i32
    %c0_i32_0 = arith.constant 0 : i32
    %c0_i32_1 = arith.constant 0 : i32
    return %c0_i32, %c0_i32_0 : i32, i32
  }
  func.func @transform_2(%arg0: i32, %arg1: memref<8xi32, #tpu.memory_space<smem>>) -> (i32, i32) {
    %c0_i32 = arith.constant 0 : i32
    %c0_i32_0 = arith.constant 0 : i32
    %c0_i32_1 = arith.constant 0 : i32
    return %c0_i32, %c0_i32_0 : i32, i32
  }
  func.func @transform_3(%arg0: i32, %arg1: memref<8xi32, #tpu.memory_space<smem>>) -> (i32, i32) {
    %c0_i32 = arith.constant 0 : i32
    %c0_i32_0 = arith.constant 0 : i32
    %c0_i32_1 = arith.constant 0 : i32
    return %c0_i32, %c0_i32_0 : i32, i32
  }
  func.func @transform_4(%arg0: i32, %arg1: memref<8xi32, #tpu.memory_space<smem>>) -> (i32, i32) {
    %c0_i32 = arith.constant 0 : i32
    %c0_i32_0 = arith.constant 0 : i32
    %c0_i32_1 = arith.constant 0 : i32
    return %c0_i32, %c0_i32_0 : i32, i32
  }
  func.func @transform_5(%arg0: i32, %arg1: memref<8xi32, #tpu.memory_space<smem>>) -> (i32, i32) {
    %c0_i32 = arith.constant 0 : i32
    %c0_i32_0 = arith.constant 0 : i32
    %c0_i32_1 = arith.constant 0 : i32
    return %c0_i32, %c0_i32_0 : i32, i32
  }
  func.func @transform_6(%arg0: i32, %arg1: memref<8xi32, #tpu.memory_space<smem>>) -> (i32, i32) {
    %c0_i32 = arith.constant 0 : i32
    %c0_i32_0 = arith.constant 0 : i32
    %c0_i32_1 = arith.constant 0 : i32
    return %c0_i32, %c0_i32_0 : i32, i32
  }
  func.func @transform_7(%arg0: i32, %arg1: memref<8xi32, #tpu.memory_space<smem>>) -> (i32, i32) {
    %c0_i32 = arith.constant 0 : i32
    %c0_i32_0 = arith.constant 0 : i32
    %c0_i32_1 = arith.constant 0 : i32
    return %c0_i32, %c0_i32_0 : i32, i32
  }
  func.func @transform_8(%arg0: i32, %arg1: memref<8xi32, #tpu.memory_space<smem>>) -> (i32, i32) {
    %c0_i32 = arith.constant 0 : i32
    %c0_i32_0 = arith.constant 0 : i32
    %c0_i32_1 = arith.constant 0 : i32
    return %c0_i32, %c0_i32_0 : i32, i32
  }
  func.func @transform_9(%arg0: i32, %arg1: memref<8xi32, #tpu.memory_space<smem>>) -> (i32, i32) {
    %c0_i32 = arith.constant 0 : i32
    %c0_i32_0 = arith.constant 0 : i32
    %c0_i32_1 = arith.constant 0 : i32
    return %c0_i32, %c0_i32_0 : i32, i32
  }
  func.func @transform_10(%arg0: i32, %arg1: memref<8xi32, #tpu.memory_space<smem>>) -> (i32, i32) {
    %c0_i32 = arith.constant 0 : i32
    %c0_i32_0 = arith.constant 0 : i32
    %c0_i32_1 = arith.constant 0 : i32
    return %c0_i32, %c0_i32_0 : i32, i32
  }
  func.func @transform_11(%arg0: i32, %arg1: memref<8xi32, #tpu.memory_space<smem>>) -> (i32, i32) {
    %c0_i32 = arith.constant 0 : i32
    %c0_i32_0 = arith.constant 0 : i32
    %c0_i32_1 = arith.constant 0 : i32
    return %c0_i32, %c0_i32_0 : i32, i32
  }
  func.func @transform_12(%arg0: i32, %arg1: memref<8xi32, #tpu.memory_space<smem>>) -> (i32, i32) {
    %c0_i32 = arith.constant 0 : i32
    %c0_i32_0 = arith.constant 0 : i32
    %c0_i32_1 = arith.constant 0 : i32
    return %c0_i32, %c0_i32_0 : i32, i32
  }
  func.func @transform_13(%arg0: i32, %arg1: memref<8xi32, #tpu.memory_space<smem>>) -> (i32, i32) {
    %c0_i32 = arith.constant 0 : i32
    %c0_i32_0 = arith.constant 0 : i32
    %c0_i32_1 = arith.constant 0 : i32
    return %c0_i32, %c0_i32_0 : i32, i32
  }
  func.func @transform_14(%arg0: i32, %arg1: memref<8xi32, #tpu.memory_space<smem>>) -> (i32, i32) {
    %c0_i32 = arith.constant 0 : i32
    %c0_i32_0 = arith.constant 0 : i32
    %c0_i32_1 = arith.constant 0 : i32
    return %c0_i32, %c0_i32_0 : i32, i32
  }
  func.func @transform_15(%arg0: i32, %arg1: memref<8xi32, #tpu.memory_space<smem>>) -> (i32, i32) {
    %c0_i32 = arith.constant 0 : i32
    %c0_i32_0 = arith.constant 0 : i32
    %c0_i32_1 = arith.constant 0 : i32
    return %c0_i32, %c0_i32_0 : i32, i32
  }
  func.func @transform_16(%arg0: i32, %arg1: memref<8xi32, #tpu.memory_space<smem>>) -> (i32, i32) {
    %c0_i32 = arith.constant 0 : i32
    %c0_i32_0 = arith.constant 0 : i32
    %c0_i32_1 = arith.constant 0 : i32
    return %c0_i32, %c0_i32_0 : i32, i32
  }
  func.func @transform_17(%arg0: i32, %arg1: memref<8xi32, #tpu.memory_space<smem>>) -> (i32, i32) {
    %c0_i32 = arith.constant 0 : i32
    %c0_i32_0 = arith.constant 0 : i32
    %c0_i32_1 = arith.constant 0 : i32
    return %c0_i32, %c0_i32_0 : i32, i32
  }
  func.func @transform_18(%arg0: i32, %arg1: memref<8xi32, #tpu.memory_space<smem>>) -> (i32, i32) {
    %c0_i32 = arith.constant 0 : i32
    %c0_i32_0 = arith.constant 0 : i32
    %c0_i32_1 = arith.constant 0 : i32
    return %c0_i32, %c0_i32_0 : i32, i32
  }
  func.func @transform_19(%arg0: i32, %arg1: memref<8xi32, #tpu.memory_space<smem>>) -> (i32, i32, i32) {
    %c0_i32 = arith.constant 0 : i32
    %c0_i32_0 = arith.constant 0 : i32
    %c0_i32_1 = arith.constant 0 : i32
    return %arg0, %c0_i32, %c0_i32_0 : i32, i32, i32
  }
  func.func @transform_20(%arg0: i32, %arg1: memref<8xi32, #tpu.memory_space<smem>>) -> (i32, i32, i32) {
    %c0_i32 = arith.constant 0 : i32
    %c0_i32_0 = arith.constant 0 : i32
    %c0_i32_1 = arith.constant 0 : i32
    return %arg0, %c0_i32, %c0_i32_0 : i32, i32, i32
  }
  func.func @transform_21(%arg0: i32, %arg1: memref<8xi32, #tpu.memory_space<smem>>) -> (i32, i32, i32) {
    %c0_i32 = arith.constant 0 : i32
    %c0_i32_0 = arith.constant 0 : i32
    %c0_i32_1 = arith.constant 0 : i32
    return %arg0, %c0_i32, %c0_i32_0 : i32, i32, i32
  }
  func.func @transform_22(%arg0: i32, %arg1: memref<8xi32, #tpu.memory_space<smem>>) -> (i32, i32) {
    %c0_i32 = arith.constant 0 : i32
    %c0_i32_0 = arith.constant 0 : i32
    return %c0_i32, %arg0 : i32, i32
  }
}

</mosaic_0001>

<bundles_post_ra>
// kernel: tpu_custom_call.1
= control target key start
LH: loop header
LB: loop body
LE: loop exit
PB: predicated region body
PF: predicated region fallthrough
CT: control target
= control target key end

     0   :  { %s8584_s0 = inlined_call_operand.hbm [shape: s32[8], index: 0, kind: input, shape index: {}]   ;;  %s8585_s1 = inlined_call_operand.hbm [shape: f32[16,128], index: 1, kind: input, shape index: {}]   ;;  %s8586_s2 = inlined_call_operand.hbm [shape: f32[8,32], index: 2, kind: input, shape index: {}]   ;;  %s8587_s3 = inlined_call_operand.hbm [shape: bf16[128,128], index: 3, kind: input, shape index: {}]   ;;  %s8588_s4 = inlined_call_operand.hbm [shape: bf16[32,128], index: 4, kind: input, shape index: {}]   ;;  %s8589_s5 = inlined_call_operand.hbm [shape: f32[1,128], index: 5, kind: input, shape index: {}]   ;;  %s8590_s6 = inlined_call_operand.hbm [shape: f32[1,128], index: 6, kind: input, shape index: {}]   ;;  %s8591_s7 = inlined_call_operand.hbm [shape: f32[1,128], index: 7, kind: input, shape index: {}]   ;;  %s8592_s8 = inlined_call_operand.hbm [shape: bf16[128,256], index: 8, kind: input, shape index: {}]   ;;  %s8593_s9 = inlined_call_operand.hbm [shape: f32[1,256], index: 9, kind: input, shape index: {}]   ;;  %s8594_s10 = inlined_call_operand.hbm [shape: f32[1,256], index: 10, kind: input, shape index: {}]   ;;  %s8595_s11 = inlined_call_operand.hbm [shape: f32[1,256], index: 11, kind: input, shape index: {}]   ;;  %s8596_s12 = inlined_call_operand.hbm [shape: bf16[256,512], index: 12, kind: input, shape index: {}]   ;;  %s8597_s13 = inlined_call_operand.hbm [shape: f32[1,512], index: 13, kind: input, shape index: {}]   ;;  %s8598_s14 = inlined_call_operand.hbm [shape: f32[1,512], index: 14, kind: input, shape index: {}]   ;;  %s8599_s15 = inlined_call_operand.hbm [shape: f32[1,512], index: 15, kind: input, shape index: {}]   ;;  %s8600_s16 = inlined_call_operand.hbm [shape: bf16[512,1024], index: 16, kind: input, shape index: {}]   ;;  %s8601_s17 = inlined_call_operand.hbm [shape: f32[1,1024], index: 17, kind: input, shape index: {}]   ;;  %s8602_s18 = inlined_call_operand.hbm [shape: f32[1,1024], index: 18, kind: input, shape index: {}]   ;;  %s8603_s19 = inlined_call_operand.hbm [shape: f32[1,1024], index: 19, kind: input, shape index: {}]   ;;  %s8604_s20 = inlined_call_operand.hbm [shape: s8[4,1024,768], index: 20, kind: input, shape index: {}]   ;;  %s8605_s21 = inlined_call_operand.hbm [shape: f32[4,1,768], index: 21, kind: input, shape index: {}]   ;;  %s8606_s22 = inlined_call_operand.hbm [shape: f32[4,1,768], index: 22, kind: input, shape index: {}]   ;;  %s8607_s23 = inlined_call_operand.hbm [shape: f32[8,3072], index: 23, kind: output, shape index: {}]  }
   0x1   :  { %8630 = sst [smem:[#allocation57_spill]] %s8584_s0 }
   0x2   :  { %8631 = sst [smem:[#allocation58_spill]] %s8585_s1 }
   0x3   :  { %8632 = sst [smem:[#allocation59_spill]] %s8586_s2 }
   0x4   :  { %8633 = sst [smem:[#allocation60_spill]] %s8587_s3 }
   0x5   :  { %8634 = sst [smem:[#allocation61_spill]] %s8588_s4  ;;  %s7473_s4 = smov [#allocation3]  }
   0x6   :  { %8635 = sst [smem:[#allocation62_spill]] %s8589_s5 }
   0x7   :  { %8636 = sst [smem:[#allocation63_spill]] %s8590_s6 }
   0x8   :  { %8637 = sst [smem:[#allocation64_spill]] %s8591_s7 }
   0x9   :  { %8638 = sst [smem:[#allocation65_spill]] %s8592_s8 }
   0xa   :  { %8639 = sst [smem:[#allocation66_spill]] %s8594_s10 }
   0xb   :  { %8640 = sst [smem:[#allocation67_spill]] %s8596_s12 }
   0xc   :  { %8641 = sst [smem:[#allocation68_spill]] %s8598_s14 }
   0xd   :  { %8642 = sst [smem:[#allocation69_spill]] %s8600_s16 }
   0xe   :  { %8643 = sst [smem:[#allocation70_spill]] %s8601_s17 }
   0xf   :  { %8644 = sst [smem:[#allocation71_spill]] %s8602_s18 }
  0x10   :  { %8645 = sst [smem:[#allocation72_spill]] %s8604_s20 }
  0x11   :  { %8646 = sst [smem:[#allocation73_spill]] %s8605_s21 }
  0x12   :  { %8647 = sst [smem:[#allocation74_spill]] %s8606_s22 }
  0x13   :  { %8648 = sst [smem:[#allocation75_spill]] %s8607_s23 }
  0x14   :  { %s8649_s17 = sld [smem:[#allocation57_spill]] }
  0x1a   :  { %29 = dma.hbm_to_smem %s8649_s17, 16, %s7473_s4, [#allocation2] }
  0x1b   :  { %7403 = dma.done.wait [#allocation2], 16 }
  0x1c   :  { %7404 = vsyncadd [#allocation2], 4294967280 }
  0x1d   :  { %31 = sfence }
  0x1e   :  { %32 = vsyncpa [#allocation5], 0 }
  0x1f   :  { %33 = vsyncpa [#allocation8], 0 }
  0x20   :  { %34 = vsyncpa [#allocation11], 0 }
  0x21   :  { %35 = vsyncpa [#allocation14], 0 }
  0x22   :  { %36 = vsyncpa [#allocation17], 0 }
  0x23   :  { %37 = vsyncpa [#allocation20], 0 }
  0x24   :  { %38 = vsyncpa [#allocation23], 0 }
  0x25   :  { %39 = vsyncpa [#allocation26], 0 }
  0x26   :  { %40 = vsyncpa [#allocation29], 0 }
  0x27   :  { %41 = vsyncpa [#allocation32], 0 }
  0x28   :  { %42 = vsyncpa [#allocation35], 0 }
  0x29   :  { %44 = vsyncpa [#allocation35 + $0x1], 0 }
  0x2a   :  { %45 = vsyncpa [#allocation38], 0 }
  0x2b   :  { %47 = vsyncpa [#allocation38 + $0x1], 0 }
  0x2c   :  { %48 = vsyncpa [#allocation6], 0 }
  0x2d   :  { %50 = vsyncpa [#allocation6 + $0x1], 0  ;;  %s7633_s17 = smov 0   ;;  %s7635_s25 = smov 0  }
  0x2e   :  { %s7637_s5 = smov 0   ;;  %s7639_s1 = smov 0  }
  0x2f LB: > { %8650 = sst [smem:[#allocation54_spill]] %s7467_s5  ;;  %s7474_s26 = smov [#allocation7]   ;;  %s7471_s1 = sphi %s7639_s1, %s8718_s1   ;;  %s7467_s5 = sphi %s7637_s5, %s8715_s5   ;;  %s7463_s25 = sphi %s7635_s25, %s8717_s25   ;;  %s7459_s17 = sphi %s7633_s17, %s8716_s17  }
  0x30   : > { %s590_s2 = sshll.u32 %s7474_s26, 4  ;;  %s7654_s6 = sadd.s32 4294967295, %s7471_s1   ;;  %s591_s2 = int_to_ptr.vmem [resolvable:$true] %s590_s2 }
  0x31   : > { %p5875_p0 = scmp.ge.s32.totalorder %s7471_s1, 1  ;;  %p8615_p1 = scmp.eq.s32.totalorder %s7654_s6, 0 }
  0x32   : > { %p564_p2 = scmp.lt.s32.totalorder %s7471_s1, 5  ;;  %s7475_s7 = smov [#allocation10]  }
  0x33   : > { %s613_s28 = sshll.u32 %s7475_s7, 4  ;;  %s7476_s3 = smov [#allocation13]   ;;  %s7671_s28 = int_to_ptr.vmem [resolvable:$true] %s613_s28 }
  0x34   : > { %p7659_p3 = pnand %p5875_p0, %p564_p2  ;;  %s638_s0 = sshll.u32 %s7476_s3, 4  ;;  %s7673_s0 = int_to_ptr.vmem [resolvable:$true] %s638_s0 }
  0x35   : > { %s6794_s30 = scalar_lea.vmem %s591_s2, 128  ;;  %p6802_p10 = scmp.lt.s32.totalorder %s591_s2, %s591_s2 }
  0x36   : > { %s8651_s27 = scalar_select %p7659_p3, 1, 0 }
  0x37   : > { %p6425_p4 = pneg %p7659_p3  ;;  %p6795_p7 = scmp.ne.s32.totalorder %s591_s2, %s6794_s30 }
  0x38   : > { %8652 = sst [smem:[#allocation55_spill]] %s8651_s27  ;;  %p6803_p11 = scmp.lt.s32.totalorder %s6794_s30, %s6794_s30 }
  0x39   : > { %p7667_p5 = pnand %p6425_p4, %p8615_p1 }
  0x3a   : > { %p6804_p12 = por %p6803_p11, %p6802_p10 }
  0x3b   : > { %s8653_s29 = scalar_select %p7667_p5, 1, 0 }
  0x3c   : > { %p7677_p6 = pneg %p7667_p5 }
  0x3e   : > { %s8654_s4 = scalar_select %p7677_p6, 1, 0 }
  0x3f   : > { %p6797_p8 = pnand %p6795_p7, %p7677_p6 }
  0x41   : > { %p6798_p9 = pneg %p6797_p8 }
  0x43   : > { %p6805_p13 = pnand %p6804_p12, %p6798_p9 }
  0x45   : > { %6808 = shalt.err (!%p6805_p13)
}
  0x46   : > { %s8655_s7 = sld [smem:[#allocation59_spill]]  ;;  %s6820_s3 = scalar_lea.vmem %s7671_s28, 256 }
  0x47   : > { %p6821_p0 = scmp.ne.s32.totalorder %s7671_s28, %s6820_s3  ;;  %p6828_p7 = scmp.lt.s32.totalorder %s7671_s28, %s7671_s28 }
  0x48   : > { %p6829_p8 = scmp.lt.s32.totalorder %s6820_s3, %s6820_s3 }
  0x49   : > { %p6823_p2 = pnand %p6821_p0, %p7677_p6 }
  0x4a   : > { %p6830_p9 = por %p6829_p8, %p6828_p7 }
  0x4b   : > { %p6824_p4 = pneg %p6823_p2 }
  0x4c   : > { %6431 = dma.hbm_to_vmem [thread:$0]  (!%p7667_p5), %s8655_s7, 128, %s591_s2, [#allocation8]  }
  0x4d   : > { %p6831_p10 = pnand %p6830_p9, %p6824_p4 }
  0x4f   : > { %6834 = shalt.err (!%p6831_p10)
}
  0x50   : > { %s8612_s30 = smov 64   ;;  %s8613_s2 = smov 4  }
  0x51   : > { %s8656_s7 = sld [smem:[#allocation61_spill]]  ;;  %s6846_s3 = scalar_lea.vmem %s7673_s0, 16 }
  0x52   : > { %p6847_p11 = scmp.ne.s32.totalorder %s7673_s0, %s6846_s3  ;;  %s6853_s23 = scalar_lea.vmem %s7673_s0, 32 }
  0x53   : > { %p6854_p0 = scmp.lt.s32.totalorder %s7673_s0, %s7673_s0  ;;  %p6855_p2 = scmp.lt.s32.totalorder %s6853_s23, %s6846_s3 }
  0x54   : > { %p6849_p12 = pnand %p6847_p11, %p7677_p6 }
  0x55   : > { %p6856_p4 = por %p6855_p2, %p6854_p0 }
  0x56   : > { %p6850_p13 = pneg %p6849_p12 }
  0x57   : > { %6437 = dma.hbm_to_vmem [thread:$0]  (!%p7667_p5), %s8656_s7, 256, %s7671_s28, [#allocation11], %s8612_s30, %s8612_s30, %s8613_s2  }
  0x58   : > { %p6857_p7 = pnand %p6856_p4, %p6850_p13 }
  0x5a   : > { %6860 = shalt.err (!%p6857_p7)
}
  0x5b   : > { %s8657_s21 = sld [smem:[#allocation63_spill]]  ;;  %s7479_s28 = smov [#allocation16]  }
  0x5c   : > { %s659_s24 = sshll.u32 %s7479_s28, 4  ;;  %s7480_s26 = smov [#allocation19]   ;;  %s660_s24 = int_to_ptr.vmem [resolvable:$true] %s659_s24 }
  0x5d   : > { %s684_s7 = sshll.u32 %s7480_s26, 4  ;;  %s6872_s30 = scalar_lea.vmem %s660_s24, 2048  ;;  %s685_s7 = int_to_ptr.vmem [resolvable:$true] %s684_s7 }
  0x5e   : > { %p6873_p8 = scmp.ne.s32.totalorder %s660_s24, %s6872_s30  ;;  %p6880_p11 = scmp.lt.s32.totalorder %s660_s24, %s660_s24 }
  0x5f   : > { %p6881_p12 = scmp.lt.s32.totalorder %s6872_s30, %s6872_s30 }
  0x60   : > { %p6875_p9 = pnand %p6873_p8, %p7677_p6 }
  0x61   : > { %6443 = dma.hbm_to_vmem [thread:$0]  (!%p7667_p5), %s8657_s21, 16, %s7673_s0, [#allocation14]  }
  0x62   : > { %p6876_p10 = pneg %p6875_p9  ;;  %p6882_p13 = por %p6881_p12, %p6880_p11 }
  0x64   : > { %p6883_p0 = pnand %p6882_p13, %p6876_p10 }
  0x66   : > { %6886 = shalt.err (!%p6883_p0)
}
  0x67   : > { %s8614_s23 = smov 128   ;;  %s8617_s22 = smov 8  }
  0x68   : > { %s8658_s8 = sld [smem:[#allocation65_spill]]  ;;  %s6898_s0 = scalar_lea.vmem %s685_s7, 32 }
  0x69   : > { %p6899_p2 = scmp.ne.s32.totalorder %s685_s7, %s6898_s0  ;;  %p6906_p8 = scmp.lt.s32.totalorder %s685_s7, %s685_s7 }
  0x6a   : > { %p6907_p9 = scmp.lt.s32.totalorder %s6898_s0, %s6898_s0 }
  0x6b   : > { %p6901_p4 = pnand %p6899_p2, %p7677_p6 }
  0x6c   : > { %p6908_p10 = por %p6907_p9, %p6906_p8 }
  0x6d   : > { %p6902_p7 = pneg %p6901_p4 }
  0x6e   : > { %6449 = dma.hbm_to_vmem [thread:$0]  (!%p7667_p5), %s8658_s8, 2048, %s660_s24, [#allocation17], %s8614_s23, %s8614_s23, %s8617_s22  }
  0x6f   : > { %p6909_p11 = pnand %p6908_p10, %p6902_p7 }
  0x71   : > { %6912 = shalt.err (!%p6909_p11)
}
  0x72   : > { %s8659_s10 = sld [smem:[#allocation66_spill]]  ;;  %s7483_s28 = smov [#allocation22]  }
  0x73   : > { %s705_s24 = sshll.u32 %s7483_s28, 4  ;;  %s706_s24 = int_to_ptr.vmem [resolvable:$true] %s705_s24 }
  0x74   : > { %s6924_s26 = scalar_lea.vmem %s706_s24, 8192  ;;  %p6932_p2 = scmp.lt.s32.totalorder %s706_s24, %s706_s24 }
  0x75   : > { %p6925_p12 = scmp.ne.s32.totalorder %s706_s24, %s6924_s26  ;;  %p6933_p4 = scmp.lt.s32.totalorder %s6924_s26, %s6924_s26 }
  0x77   : > { %p6927_p13 = pnand %p6925_p12, %p7677_p6  ;;  %p6934_p8 = por %p6933_p4, %p6932_p2 }
  0x78   : > { %6455 = dma.hbm_to_vmem [thread:$0]  (!%p7667_p5), %s8659_s10, 32, %s685_s7, [#allocation20]  }
  0x79   : > { %p6928_p0 = pneg %p6927_p13 }
  0x7b   : > { %p6935_p7 = pnand %p6934_p8, %p6928_p0 }
  0x7d   : > { %6938 = shalt.err (!%p6935_p7)
}
  0x7e   : > { %s7484_s21 = smov 256   ;;  %s7485_s27 = smov 16  }
  0x7f   : > { %s8660_s12 = sld [smem:[#allocation67_spill]]  ;;  %s7486_s30 = smov [#allocation25]  }
  0x80   : > { %s730_s3 = sshll.u32 %s7486_s30, 4  ;;  %s7487_s28 = smov [#allocation28]   ;;  %s731_s3 = int_to_ptr.vmem [resolvable:$true] %s730_s3 }
  0x81   : > { %s751_s2 = sshll.u32 %s7487_s28, 4  ;;  %s6950_s23 = scalar_lea.vmem %s731_s3, 64  ;;  %s752_s2 = int_to_ptr.vmem [resolvable:$true] %s751_s2 }
  0x82   : > { %p6951_p9 = scmp.ne.s32.totalorder %s731_s3, %s6950_s23  ;;  %p6958_p12 = scmp.lt.s32.totalorder %s731_s3, %s731_s3 }
  0x83   : > { %p6959_p13 = scmp.lt.s32.totalorder %s6950_s23, %s6950_s23 }
  0x84   : > { %p6953_p10 = pnand %p6951_p9, %p7677_p6 }
  0x85   : > { %6461 = dma.hbm_to_vmem [thread:$0]  (!%p7667_p5), %s8660_s12, 8192, %s706_s24, [#allocation23], %s7484_s21, %s7484_s21, %s7485_s27  }
  0x86   : > { %p6954_p11 = pneg %p6953_p10  ;;  %p6960_p0 = por %p6959_p13, %p6958_p12 }
  0x88   : > { %p6961_p2 = pnand %p6960_p0, %p6954_p11 }
  0x8a   : > { %6964 = shalt.err (!%p6961_p2)
}
  0x8b   : > { %s8661_s14 = sld [smem:[#allocation68_spill]]  ;;  %s6976_s21 = scalar_lea.vmem %s752_s2, 32768 }
  0x8c   : > { %p6977_p4 = scmp.ne.s32.totalorder %s752_s2, %s6976_s21  ;;  %p6984_p1 = scmp.lt.s32.totalorder %s752_s2, %s752_s2 }
  0x8d   : > { %p6985_p9 = scmp.lt.s32.totalorder %s6976_s21, %s6976_s21 }
  0x8e   : > { %p6979_p8 = pnand %p6977_p4, %p7677_p6 }
  0x8f   : > { %p6986_p10 = por %p6985_p9, %p6984_p1 }
  0x90   : > { %p6980_p7 = pneg %p6979_p8 }
  0x91   : > { %6467 = dma.hbm_to_vmem [thread:$0]  (!%p7667_p5), %s8661_s14, 64, %s731_s3, [#allocation26]  }
  0x92   : > { %p6987_p3 = pnand %p6986_p10, %p6980_p7 }
  0x94   : > { %6990 = shalt.err (!%p6987_p3)
}
  0x95   : > { %s7488_s23 = smov 512   ;;  %s7489_s27 = smov 32  }
  0x96   : > { %s8662_s16 = sld [smem:[#allocation69_spill]]  ;;  %s7490_s30 = smov [#allocation31]  }
  0x97   : > { %s776_s3 = sshll.u32 %s7490_s30, 4  ;;  %s777_s3 = int_to_ptr.vmem [resolvable:$true] %s776_s3 }
  0x98   : > { %s7002_s28 = scalar_lea.vmem %s777_s3, 128  ;;  %p7010_p1 = scmp.lt.s32.totalorder %s777_s3, %s777_s3 }
  0x99   : > { %p7003_p11 = scmp.ne.s32.totalorder %s777_s3, %s7002_s28  ;;  %p7011_p0 = scmp.lt.s32.totalorder %s7002_s28, %s7002_s28 }
  0x9b   : > { %p7005_p12 = pnand %p7003_p11, %p7677_p6  ;;  %p7012_p3 = por %p7011_p0, %p7010_p1 }
  0x9c   : > { %6473 = dma.hbm_to_vmem [thread:$0]  (!%p7667_p5), %s8662_s16, 32768, %s752_s2, [#allocation29], %s7488_s23, %s7488_s23, %s7489_s27  }
  0x9d   : > { %p7006_p13 = pneg %p7005_p12 }
  0x9f   : > { %p7013_p2 = pnand %p7012_p3, %p7006_p13 }
  0xa1   : > { %7016 = shalt.err (!%p7013_p2)
}
  0xa2   : > { %s8663_s18 = sld [smem:[#allocation71_spill]]  ;;  %s5874_s2 = sadd.s32 4294967294, %s7471_s1  }
  0xa3   : > { %s7763_s21 = sadd.s32 1, %s7471_s1   ;;  %s462_s23 = sadd.s32 1, %s7467_s5 }
  0xa4   : > { %s459_s27 = ssub.s32 %s7471_s1, %s7763_s21  ;;  %p469_p4 = scmp.ne.s32.totalorder %s7467_s5, %s7463_s25 }
  0xa5   : > { %p460_p8 = scmp.eq.s32.totalorder %s459_s27, 0  ;;  %p470_p7 = scmp.eq.s32.totalorder %s7471_s1, 0 }
  0xa6   : > { %p475_p9 = scmp.ne.s32.totalorder %s7463_s25, %s7459_s17  ;;  %p551_p10 = scmp.eq.s32.totalorder %s7654_s6, 3 }
  0xa7   : > { %s7775_s0 = scalar_select %p460_p8, %s7467_s5, %s462_s23  }
  0xa8   : > { %6479 = dma.hbm_to_vmem [thread:$0]  (!%p7667_p5), %s8663_s18, 128, %s777_s3, [#allocation32]  }
  0xa9   : > { %8664 = sst [smem:[#allocation56_spill]] %s7775_s0  ;;  %p471_p11 = por %p470_p7, %p469_p4 }
  0xaa   : > { %p8665_p12 = scmp.eq.s32.totalorder %s7654_s6, 0  ;;  %p7783_p1 = por %p551_p10, %p469_p4 }
  0xab   : > { %p557_p0 = scmp.eq.s32.totalorder %s5874_s2, 3  ;;  %p6516_p3 = scmp.lt.s32.totalorder %s7471_s1, 4 }
  0xac   : > { %p7779_p13 = por %p8665_p12, %p475_p9  ;;  %s798_s3 = sand.u32 1, %s7471_s1  }
  0xad   : > { %s8667_s30 = scalar_select %p7783_p1, 1, 0 }
  0xae   : > { %s8666_s7 = scalar_select %p7779_p13, 1, 0 }
  0xaf   : > { %p7789_p2 = por %p557_p0, %p475_p9  ;;  %s7794_s26 = sand.u32 1, %s7467_s5  }
  0xb0   : > { %s6333_s24 = smul.u32 24576, %s7471_s1  ;;  %p7798_p8 = pnand %p6516_p3, %p471_p11 }
  0xb1   : > { %s8668_s28 = scalar_select %p7789_p2, 1, 0 }
  0xb2   : > { %s6332_s23 = smul.u32 1536, %s7794_s26  ;;  %s8670_s20 = sld [smem:[#allocation72_spill]] }
  0xb3   : > { %s8669_s27 = scalar_select %p7798_p8, 1, 0 }
  0xb4   : > { %s802_s10 = scalar_lea.vmem [#allocation34], %s6332_s23  ;;  %s7809_s14 = scalar_lea.sflag [#allocation35], %s798_s3 }
  0xb5   : > { %s809_s12 = sshll.u32 %s802_s10, 4  ;;  %p7815_p7 = pneg %p7798_p8  ;;  %s7807_s12 = int_to_ptr.vmem [resolvable:$true] %s809_s12 }
  0xb7   : > { %s8671_s18 = scalar_select %p7815_p7, 1, 0 }
  0xb8   : > { %s7805_s2 = scalar_lea.hbm %s8670_s20, %s6333_s24  ;;  %s7022_s24 = scalar_lea.hbm %s8670_s20, 98304 }
  0xb9   : > { %s7017_s16 = scalar_lea.hbm %s7805_s2, 24576  ;;  %p7023_p11 = scmp.lt.s32.totalorder %s7805_s2, %s8670_s20 }
  0xba   : > { %p7018_p4 = scmp.ne.s32.totalorder %s7805_s2, %s7017_s16  ;;  %p7024_p12 = scmp.lt.s32.totalorder %s7022_s24, %s7017_s16 }
  0xbc   : > { %p7020_p9 = pnand %p7815_p7, %p7018_p4  ;;  %p7025_p0 = por %p7024_p12, %p7023_p11 }
  0xbe   : > { %p7021_p10 = pneg %p7020_p9 }
  0xc0   : > { %p7026_p3 = pnand %p7025_p0, %p7021_p10 }
  0xc2   : > { %7029 = shalt.err (!%p7026_p3)
}
  0xc3   : > { %s7030_s3 = scalar_lea.vmem %s7807_s12, 24576  ;;  %s7491_s0 = smov [#allocation34]  }
  0xc4   : > { %p7031_p2 = scmp.ne.s32.totalorder %s7807_s12, %s7030_s3  ;;  %s7035_s8 = sshll.u32 %s7491_s0, 4  ;;  %s7036_s8 = int_to_ptr.vmem [resolvable:$false] %s7035_s8 }
  0xc5   : > { %s7037_s22 = scalar_lea.vmem %s7036_s8, 49152  ;;  %p7038_p1 = scmp.lt.s32.totalorder %s7807_s12, %s7036_s8 }
  0xc6   : > { %p7033_p4 = pnand %p7031_p2, %p7815_p7  ;;  %p7039_p13 = scmp.lt.s32.totalorder %s7037_s22, %s7030_s3 }
  0xc8   : > { %p7034_p9 = pneg %p7033_p4  ;;  %p7040_p5 = por %p7039_p13, %p7038_p1 }
  0xca   : > { %p7041_p6 = pnand %p7040_p5, %p7034_p9 }
  0xcc   : > { %7044 = shalt.err (!%p7041_p6)
}
  0xcd   : > { %s7492_s16 = smov 768   ;;  %s7493_s24 = smov 48  }
  0xce   : > { %6486 = dma.hbm_to_vmem [thread:$0]  (!%p7798_p8), %s7805_s2, 24576, %s7807_s12, %s7809_s14, %s7492_s16, %s7492_s16, %s7493_s24  }
  0xcf   : > { %s7494_s10 = smov [#allocation4]   ;;  %s7495_s0 = smov [#allocation9]  }
  0xd0   : > { %s576_s23 = sshll.u32 %s7494_s10, 4  ;;  %s600_s20 = sshll.u32 %s7495_s0, 4  ;;  %s577_s23 = int_to_ptr.vmem [resolvable:$true] %s576_s23  ;;  %s601_s20 = int_to_ptr.vmem [resolvable:$true] %s600_s20 }
  0xd1   : > { %s7056_s5 = scalar_lea.vmem %s577_s23, 256  ;;  %p8672_p10 = scmp.ne.s32.totalorder %s8654_s4, 0 }
  0xd2   : > { %p7057_p2 = scmp.ne.s32.totalorder %s577_s23, %s7056_s5  ;;  %p7064_p6 = scmp.lt.s32.totalorder %s577_s23, %s577_s23 }
  0xd3   : > { %p7065_p1 = scmp.lt.s32.totalorder %s7056_s5, %s7056_s5 }
  0xd4   : > { %p7059_p13 = pnand %p7057_p2, %p8672_p10 }
  0xd5   : > { %p7066_p11 = por %p7065_p1, %p7064_p6 }
  0xd6   : > { %p7060_p5 = pneg %p7059_p13 }
  0xd8   : > { %p7067_p12 = pnand %p7066_p11, %p7060_p5 }
  0xda   : > { %7070 = shalt.err (!%p7067_p12)
}
  0xdb   : > { %p8673_p0 = scmp.ne.s32.totalorder %s8653_s29, 0  ;;  %s8674_s3 = smov 8  }
  0xdc   : > { %s8675_s8 = smov 128   ;;  %s8676_s22 = sld [smem:[#allocation58_spill]] }
  0xdd   : > { %s7082_s16 = scalar_lea.vmem %s601_s20, 1024  ;;  %p7090_p2 = scmp.lt.s32.totalorder %s601_s20, %s601_s20 }
  0xde   : > { %p7083_p3 = scmp.ne.s32.totalorder %s601_s20, %s7082_s16  ;;  %p7091_p13 = scmp.lt.s32.totalorder %s7082_s16, %s7082_s16 }
  0xe0   : > { %p7085_p4 = pnand %p7083_p3, %p8672_p10  ;;  %p7092_p5 = por %p7091_p13, %p7090_p2 }
  0xe2   : > { %6428 = dma.hbm_to_vmem [thread:$0]  (!%p8673_p0), %s8676_s22, 256, %s577_s23, [#allocation5], %s8675_s8, %s8675_s8, %s8674_s3  }
  0xe3   : > { %p7086_p9 = pneg %p7085_p4 }
  0xe5   : > { %p7093_p6 = pnand %p7092_p5, %p7086_p9 }
  0xe7   : > { %7096 = shalt.err (!%p7093_p6)
}
  0xe8   : > { %s8677_s5 = smov 4   ;;  %s8678_s24 = smov 64  }
  0xe9   : > { %s8679_s12 = sld [smem:[#allocation60_spill]]  ;;  %s7496_s23 = smov [#allocation12]  }
  0xea   : > { %s627_s3 = sshll.u32 %s7496_s23, 4  ;;  %s7497_s8 = smov [#allocation15]   ;;  %s628_s3 = int_to_ptr.vmem [resolvable:$true] %s627_s3 }
  0xeb   : > { %s649_s2 = sshll.u32 %s7497_s8, 4  ;;  %s7108_s22 = scalar_lea.vmem %s628_s3, 16  ;;  %s650_s2 = int_to_ptr.vmem [resolvable:$true] %s649_s2 }
  0xec   : > { %p7109_p1 = scmp.ne.s32.totalorder %s628_s3, %s7108_s22  ;;  %s7115_s16 = scalar_lea.vmem %s628_s3, 32 }
  0xed   : > { %p7116_p3 = scmp.lt.s32.totalorder %s628_s3, %s628_s3  ;;  %p7117_p4 = scmp.lt.s32.totalorder %s7115_s16, %s7108_s22 }
  0xee   : > { %p7111_p11 = pnand %p7109_p1, %p8672_p10 }
  0xef   : > { %6434 = dma.hbm_to_vmem [thread:$0]  (!%p8673_p0), %s8679_s12, 1024, %s601_s20, [#allocation8], %s8678_s24, %s8678_s24, %s8677_s5  }
  0xf0   : > { %p7112_p12 = pneg %p7111_p11  ;;  %p7118_p9 = por %p7117_p4, %p7116_p3 }
  0xf2   : > { %p7119_p2 = pnand %p7118_p9, %p7112_p12 }
  0xf4   : > { %7122 = shalt.err (!%p7119_p2)
}
  0xf5   : > { %s8680_s5 = sld [smem:[#allocation62_spill]]  ;;  %s7134_s24 = scalar_lea.vmem %s650_s2, 16 }
  0xf6   : > { %p7135_p13 = scmp.ne.s32.totalorder %s650_s2, %s7134_s24  ;;  %s7141_s0 = scalar_lea.vmem %s650_s2, 32 }
  0xf7   : > { %p7142_p1 = scmp.lt.s32.totalorder %s650_s2, %s650_s2  ;;  %p7143_p11 = scmp.lt.s32.totalorder %s7141_s0, %s7134_s24 }
  0xf8   : > { %p7137_p5 = pnand %p7135_p13, %p8672_p10 }
  0xf9   : > { %p7144_p8 = por %p7143_p11, %p7142_p1 }
  0xfa   : > { %p7138_p6 = pneg %p7137_p5 }
  0xfb   : > { %6440 = dma.hbm_to_vmem [thread:$0]  (!%p8673_p0), %s8680_s5, 16, %s628_s3, [#allocation11]  }
  0xfc   : > { %p7145_p3 = pnand %p7144_p8, %p7138_p6 }
  0xfe   : > { %7148 = shalt.err (!%p7145_p3)
}
  0xff   : > { %s8681_s8 = sld [smem:[#allocation64_spill]]  ;;  %s7498_s3 = smov [#allocation18]  }
 0x100   : > { %s673_s22 = sshll.u32 %s7498_s3, 4  ;;  %s7499_s16 = smov [#allocation21]   ;;  %s674_s22 = int_to_ptr.vmem [resolvable:$true] %s673_s22 }
 0x101   : > { %s695_s10 = sshll.u32 %s7499_s16, 4  ;;  %s7160_s20 = scalar_lea.vmem %s674_s22, 32  ;;  %s696_s10 = int_to_ptr.vmem [resolvable:$true] %s695_s10 }
 0x102   : > { %p7161_p12 = scmp.ne.s32.totalorder %s674_s22, %s7160_s20  ;;  %p7168_p2 = scmp.lt.s32.totalorder %s674_s22, %s674_s22 }
 0x103   : > { %p7169_p8 = scmp.lt.s32.totalorder %s7160_s20, %s7160_s20 }
 0x104   : > { %p7163_p4 = pnand %p7161_p12, %p8672_p10 }
 0x105   : > { %6446 = dma.hbm_to_vmem [thread:$0]  (!%p8673_p0), %s8681_s8, 16, %s650_s2, [#allocation14]  }
 0x106   : > { %p7164_p9 = pneg %p7163_p4  ;;  %p7170_p13 = por %p7169_p8, %p7168_p2 }
 0x108   : > { %p7171_p5 = pnand %p7170_p13, %p7164_p9 }
 0x10a   : > { %7174 = shalt.err (!%p7171_p5)
}
 0x10b   : > { %6452 = dma.hbm_to_vmem [thread:$0]  (!%p8673_p0), %s8593_s9, 32, %s674_s22, [#allocation17]  }
 0x10c   : > { %s7186_s2 = scalar_lea.vmem %s696_s10, 32  ;;  %p7194_p3 = scmp.lt.s32.totalorder %s696_s10, %s696_s10 }
 0x10d   : > { %p7187_p6 = scmp.ne.s32.totalorder %s696_s10, %s7186_s2  ;;  %p7195_p12 = scmp.lt.s32.totalorder %s7186_s2, %s7186_s2 }
 0x10f   : > { %p7189_p1 = pnand %p7187_p6, %p8672_p10  ;;  %p7196_p4 = por %p7195_p12, %p7194_p3 }
 0x111   : > { %p7190_p11 = pneg %p7189_p1 }
 0x113   : > { %p7197_p7 = pnand %p7196_p4, %p7190_p11 }
 0x115   : > { %7200 = shalt.err (!%p7197_p7)
}
 0x116   : > { %6458 = dma.hbm_to_vmem [thread:$0]  (!%p8673_p0), %s8595_s11, 32, %s696_s10, [#allocation20]  }
 0x117   : > { %s7500_s23 = smov [#allocation24]   ;;  %s7501_s3 = smov [#allocation27]  }
 0x118   : > { %s719_s8 = sshll.u32 %s7500_s23, 4  ;;  %s741_s22 = sshll.u32 %s7501_s3, 4  ;;  %s720_s8 = int_to_ptr.vmem [resolvable:$true] %s719_s8  ;;  %s742_s22 = int_to_ptr.vmem [resolvable:$true] %s741_s22 }
 0x119   : > { %s7212_s16 = scalar_lea.vmem %s720_s8, 64  ;;  %p7220_p13 = scmp.lt.s32.totalorder %s720_s8, %s720_s8 }
 0x11a   : > { %p7213_p9 = scmp.ne.s32.totalorder %s720_s8, %s7212_s16  ;;  %p7221_p5 = scmp.lt.s32.totalorder %s7212_s16, %s7212_s16 }
 0x11c   : > { %p7215_p2 = pnand %p7213_p9, %p8672_p10  ;;  %p7222_p7 = por %p7221_p5, %p7220_p13 }
 0x11e   : > { %p7216_p8 = pneg %p7215_p2 }
 0x120   : > { %p7223_p6 = pnand %p7222_p7, %p7216_p8 }
 0x122   : > { %7226 = shalt.err (!%p7223_p6)
}
 0x123   : > { %6464 = dma.hbm_to_vmem [thread:$0]  (!%p8673_p0), %s8597_s13, 64, %s720_s8, [#allocation23]  }
 0x124   : > { %s7238_s10 = scalar_lea.vmem %s742_s22, 64  ;;  %p7246_p12 = scmp.lt.s32.totalorder %s742_s22, %s742_s22 }
 0x125   : > { %p7239_p1 = scmp.ne.s32.totalorder %s742_s22, %s7238_s10  ;;  %p7247_p4 = scmp.lt.s32.totalorder %s7238_s10, %s7238_s10 }
 0x127   : > { %p7241_p11 = pnand %p7239_p1, %p8672_p10  ;;  %p7248_p9 = por %p7247_p4, %p7246_p12 }
 0x129   : > { %p7242_p3 = pneg %p7241_p11 }
 0x12b   : > { %p7249_p2 = pnand %p7248_p9, %p7242_p3 }
 0x12d   : > { %7252 = shalt.err (!%p7249_p2)
}
 0x12e   : > { %6470 = dma.hbm_to_vmem [thread:$0]  (!%p8673_p0), %s8599_s15, 64, %s742_s22, [#allocation26]  }
 0x12f   : > { %s7502_s0 = smov [#allocation30]   ;;  %s7503_s23 = smov [#allocation33]  }
 0x130   : > { %s765_s12 = sshll.u32 %s7502_s0, 4  ;;  %s787_s8 = sshll.u32 %s7503_s23, 4  ;;  %s766_s12 = int_to_ptr.vmem [resolvable:$true] %s765_s12  ;;  %s788_s8 = int_to_ptr.vmem [resolvable:$true] %s787_s8 }
 0x131   : > { %s7264_s3 = scalar_lea.vmem %s766_s12, 128  ;;  %p7272_p7 = scmp.lt.s32.totalorder %s766_s12, %s766_s12 }
 0x132   : > { %p7265_p8 = scmp.ne.s32.totalorder %s766_s12, %s7264_s3  ;;  %p7273_p6 = scmp.lt.s32.totalorder %s7264_s3, %s7264_s3 }
 0x134   : > { %p7267_p13 = pnand %p7265_p8, %p8672_p10  ;;  %p7274_p1 = por %p7273_p6, %p7272_p7 }
 0x136   : > { %p7268_p5 = pneg %p7267_p13 }
 0x138   : > { %p7275_p11 = pnand %p7274_p1, %p7268_p5 }
 0x13a   : > { %7278 = shalt.err (!%p7275_p11)
}
 0x13b   : > { %s8682_s22 = sld [smem:[#allocation70_spill]]  ;;  %s8629_s5 = smul.u32 6, %s7794_s26 }
 0x13c   : > { %s7290_s10 = scalar_lea.vmem %s788_s8, 128  ;;  %p7298_p9 = scmp.lt.s32.totalorder %s788_s8, %s788_s8 }
 0x13d   : > { %p7291_p3 = scmp.ne.s32.totalorder %s788_s8, %s7290_s10  ;;  %p7299_p2 = scmp.lt.s32.totalorder %s7290_s10, %s7290_s10 }
 0x13f   : > { %p7293_p12 = pnand %p7291_p3, %p8672_p10  ;;  %p7300_p8 = por %p7299_p2, %p7298_p9 }
 0x141   : > { %6476 = dma.hbm_to_vmem [thread:$0]  (!%p8673_p0), %s8682_s22, 128, %s766_s12, [#allocation29]  }
 0x142   : > { %p7294_p4 = pneg %p7293_p12 }
 0x144   : > { %p7301_p13 = pnand %p7300_p8, %p7294_p4 }
 0x146   : > { %7304 = shalt.err (!%p7301_p13)
}
 0x147   : > { %6482 = dma.hbm_to_vmem [thread:$0]  (!%p8673_p0), %s8603_s19, 128, %s788_s8, [#allocation32]  }
 0x148   : > { %s6335_s0 = smul.u32 96, %s7471_s1  ;;  %s823_s4 = scalar_lea.vmem [#allocation36], %s8629_s5 }
 0x149   : > { %s831_s12 = sshll.u32 %s823_s4, 4  ;;  %s8683_s16 = sld [smem:[#allocation73_spill]]  ;;  %s832_s12 = int_to_ptr.vmem [resolvable:$true] %s831_s12 }
 0x14a   : > { %p8684_p5 = scmp.ne.s32.totalorder %s8671_s18, 0 }
 0x14f   : > { %s829_s20 = scalar_lea.hbm %s8683_s16, %s6335_s0  ;;  %s7310_s24 = scalar_lea.hbm %s8683_s16, 384 }
 0x150   : > { %s7305_s22 = scalar_lea.hbm %s829_s20, 96  ;;  %p7311_p0 = scmp.lt.s32.totalorder %s829_s20, %s8683_s16 }
 0x151   : > { %p7306_p10 = scmp.ne.s32.totalorder %s829_s20, %s7305_s22  ;;  %p7312_p1 = scmp.lt.s32.totalorder %s7310_s24, %s7305_s22 }
 0x153   : > { %p7308_p7 = pnand %p7306_p10, %p8684_p5  ;;  %p7313_p11 = por %p7312_p1, %p7311_p0 }
 0x155   : > { %p7309_p6 = pneg %p7308_p7 }
 0x157   : > { %p7314_p3 = pnand %p7313_p11, %p7309_p6 }
 0x159   : > { %7317 = shalt.err (!%p7314_p3)
}
 0x15a   : > { %s7318_s4 = scalar_lea.vmem %s832_s12, 96  ;;  %s7504_s23 = smov [#allocation36]  }
 0x15b   : > { %p7319_p12 = scmp.ne.s32.totalorder %s832_s12, %s7318_s4  ;;  %s7323_s3 = sshll.u32 %s7504_s23, 4  ;;  %s7324_s3 = int_to_ptr.vmem [resolvable:$false] %s7323_s3 }
 0x15c   : > { %s7325_s5 = scalar_lea.vmem %s7324_s3, 192  ;;  %p7326_p2 = scmp.lt.s32.totalorder %s832_s12, %s7324_s3 }
 0x15d   : > { %p7321_p4 = pnand %p7319_p12, %p8684_p5  ;;  %p7327_p8 = scmp.lt.s32.totalorder %s7325_s5, %s7318_s4 }
 0x15f   : > { %p7322_p9 = pneg %p7321_p4  ;;  %p7328_p13 = por %p7327_p8, %p7326_p2 }
 0x161   : > { %p7329_p10 = pnand %p7328_p13, %p7322_p9 }
 0x163   : > { %7332 = shalt.err (!%p7329_p10)
}
 0x164   : > { %p8685_p7 = scmp.ne.s32.totalorder %s8669_s27, 0  ;;  %s8686_s10 = sld [smem:[#allocation74_spill]] }
 0x165   : > { %s8687_s8 = smul.u32 6, %s7794_s26  ;;  %s839_s4 = scalar_lea.sflag [#allocation38], %s7794_s26 }
 0x166   : > { %6489 = dma.hbm_to_vmem [thread:$0]  (!%p8685_p7), %s829_s20, 96, %s832_s12, %s7809_s14  }
 0x167   : > { %s842_s5 = scalar_lea.vmem [#allocation37], %s8687_s8 }
 0x168   : > { %s850_s2 = sshll.u32 %s842_s5, 4  ;;  %s851_s2 = int_to_ptr.vmem [resolvable:$true] %s850_s2 }
 0x16a   : > { %s7941_s24 = scalar_lea.hbm %s8686_s10, %s6335_s0  ;;  %s7338_s20 = scalar_lea.hbm %s8686_s10, 384 }
 0x16b   : > { %s7333_s23 = scalar_lea.hbm %s7941_s24, 96  ;;  %p7339_p11 = scmp.lt.s32.totalorder %s7941_s24, %s8686_s10 }
 0x16c   : > { %p7334_p6 = scmp.ne.s32.totalorder %s7941_s24, %s7333_s23  ;;  %p7340_p3 = scmp.lt.s32.totalorder %s7338_s20, %s7333_s23 }
 0x16e   : > { %p7336_p0 = pnand %p7334_p6, %p8684_p5  ;;  %p7341_p12 = por %p7340_p3, %p7339_p11 }
 0x170   : > { %p7337_p1 = pneg %p7336_p0 }
 0x172   : > { %p7342_p4 = pnand %p7341_p12, %p7337_p1 }
 0x174   : > { %7345 = shalt.err (!%p7342_p4)
}
 0x175   : > { %s7346_s22 = scalar_lea.vmem %s851_s2, 96  ;;  %s7505_s26 = smov [#allocation37]  }
 0x176   : > { %p7347_p9 = scmp.ne.s32.totalorder %s851_s2, %s7346_s22  ;;  %s7351_s29 = sshll.u32 %s7505_s26, 4  ;;  %s7352_s29 = int_to_ptr.vmem [resolvable:$false] %s7351_s29 }
 0x177   : > { %s7353_s8 = scalar_lea.vmem %s7352_s29, 192  ;;  %p7354_p13 = scmp.lt.s32.totalorder %s851_s2, %s7352_s29 }
 0x178   : > { %p7349_p2 = pnand %p7347_p9, %p8684_p5  ;;  %p7355_p10 = scmp.lt.s32.totalorder %s7353_s8, %s7346_s22 }
 0x17a   : > { %p7350_p8 = pneg %p7349_p2  ;;  %p7356_p6 = por %p7355_p10, %p7354_p13 }
 0x17c   : > { %p7357_p0 = pnand %p7356_p6, %p7350_p8 }
 0x17e   : > { %7360 = shalt.err (!%p7357_p0)
}
 0x17f   : > { %6492 = dma.hbm_to_vmem [thread:$0]  (!%p8685_p7), %s7941_s24, 96, %s851_s2, %s839_s4  }
 0x180   : > { %s8688_s5 = sld [smem:[#allocation55_spill]] }
 0x186   : > { %p8689_p1 = scmp.ne.s32.totalorder %s8688_s5, 0 }
 0x187   : > { %p8690_p11 = scmp.eq.s32.totalorder (!%p8689_p1), %s7654_s6, 0 }
 0x188   : > { %859 = sbr.rel (%p8689_p1) target bundleno = 2353 (0x931), region = 108 }
 0x18d   : > { %7406 = dma.done.wait (%p8690_p11), [#allocation5], 256   ;;  %p8691_p5 = pmov %p8690_p11 }
 0x18f   : > { %7408 = vsyncadd (%p8691_p5), [#allocation5], 4294967040  ;;  %p8692_p3 = pmov %p8691_p5 }
 0x191   : > { %7410 = dma.done.wait (%p8692_p3), [#allocation8], 1152   ;;  %p8693_p12 = pmov %p8692_p3 }
 0x192   : > { %p8694_p4 = pmov %p8692_p3 }
 0x193   : > { %7412 = vsyncadd (%p8693_p12), [#allocation8], 4294966144 }
 0x194   : > { %7414 = dma.done.wait (%p8694_p4), [#allocation11], 272   ;;  %p8695_p7 = pmov %p8692_p3 }
 0x195   : > { %p8696_p9 = pmov %p8692_p3 }
 0x196   : > { %7416 = vsyncadd (%p8695_p7), [#allocation11], 4294967024 }
 0x197   : > { %7418 = dma.done.wait (%p8696_p9), [#allocation14], 32   ;;  %p8697_p2 = pmov %p8692_p3 }
 0x199   : > { %7420 = vsyncadd (%p8697_p2), [#allocation14], 4294967264  ;;  %p8698_p8 = pmov %p8697_p2 }
 0x19a   : > { %p8699_p13 = pmov %p8697_p2 }
 0x19b   : > { %7422 = dma.done.wait (%p8698_p8), [#allocation17], 2080  }
 0x19c   : > { %7424 = vsyncadd (%p8699_p13), [#allocation17], 4294965216  ;;  %p8700_p10 = pmov %p8697_p2 }
 0x19d   : > { %p8701_p6 = pmov %p8697_p2 }
 0x19e   : > { %7426 = dma.done.wait (%p8700_p10), [#allocation20], 64  }
 0x19f   : > { %7428 = vsyncadd (%p8701_p6), [#allocation20], 4294967232  ;;  %p8702_p0 = pmov %p8697_p2 }
 0x1a1   : > { %7430 = dma.done.wait (%p8702_p0), [#allocation23], 8256   ;;  %p8703_p1 = pmov %p8702_p0 }
 0x1a2   : > { %p8704_p11 = pmov %p8702_p0 }
 0x1a3   : > { %7432 = vsyncadd (%p8703_p1), [#allocation23], 4294959040 }
 0x1a4   : > { %7434 = dma.done.wait (%p8704_p11), [#allocation26], 128   ;;  %p8705_p5 = pmov %p8702_p0 }
 0x1a5   : > { %p8706_p3 = pmov %p8702_p0 }
 0x1a6   : > { %7436 = vsyncadd (%p8705_p5), [#allocation26], 4294967168 }
 0x1a7   : > { %7438 = dma.done.wait (%p8706_p3), [#allocation29], 32896   ;;  %p8707_p12 = pmov %p8702_p0 }
 0x1a8   : > { %p8708_p4 = pmov %p8702_p0 }
 0x1a9   : > { %7440 = vsyncadd (%p8707_p12), [#allocation29], 4294934400 }
 0x1aa   : > { %7442 = dma.done.wait (%p8708_p4), [#allocation32], 256   ;;  %p8709_p7 = pmov %p8702_p0 }
 0x1ab   : > { %s937_s18 = sand.u32 1, %s7654_s6   ;;  %s8006_s27 = sand.u32 1, %s7463_s25  }
 0x1ac   : > { %7444 = vsyncadd (%p8709_p7), [#allocation32], 4294967040  ;;  %s6338_s24 = smul.u32 1536, %s8006_s27  ;;  %s938_s2 = scalar_lea.sflag [#allocation35], %s937_s18 }
 0x1ad   : > { %p8710_p9 = scmp.ne.s32.totalorder %s8666_s7, 0 }
 0x1ae   : > { %s8009_s4 = scalar_lea.vmem [#allocation34], %s6338_s24 }
 0x1af   : > { %7446 = dma.done.wait (%p8710_p9), %s938_s2, 24672  }
 0x1b0   : > { %7448 = vsyncadd (%p8710_p9), %s938_s2, 4294942624  ;;  %s6339_s23 = smul.u32 6, %s8006_s27  ;;  %s956_s12 = scalar_lea.sflag [#allocation38], %s8006_s27 }
 0x1b2   : > { %s8016_s14 = scalar_lea.vmem [#allocation36], %s6339_s23  ;;  %s8019_s20 = scalar_lea.vmem [#allocation37], %s6339_s23 }
 0x1b3   : > { %7450 = dma.done.wait (%p8710_p9), %s956_s12, 96  }
 0x1b4   : > { %7452 = vsyncadd (%p8710_p9), %s956_s12, 4294967200  ;;  %v1032_v0 = vlaneseq  ;;  %v7506_v1 = vmov 0.0   ;;  %vm7507_vm0 = vmmov 0   ;;  %s1037_s3 = sld [smem:[#allocation3]]  ;;  %v1072_v3 = vld [vmem:[#allocation4 + $0x8] sm:$0xff]  ;;  %v1071_v4 = vld [vmem:[#allocation4] sm:$0xff] }
 0x1b5   : > { %6297 = vmatprep.subr.mxu0 %v7506_v1  ;;  %6301 = vmatprep.mubr.msk.f32.mxu0 %vm7507_vm0, %v7506_v1  ;;  %s5919_s0 = sld [smem:[#allocation3 + $0x1]]  ;;  %v6607_v19 = vld [vmem:[#allocation10 + $0x8] sm:$0xff]   ;;  %v6602_v22 = vld [vmem:[#allocation9 + $0x38] sm:$0xff]   ;;  %vm1073_vm9 = vcmask 130048   ;;  %v6609_v24 = vld [vmem:[#allocation10] sm:$0xff]   ;;  %vm1182_vm11 = vcmask 261120  }
 0x1b6   : > { %v8028_v2 = vshrl.u32 %v1032_v0, 7  ;;  %6304 = vmatprep.subr.bf16.mxu1 %v7506_v1  ;;  %6308 = vmatprep.mubr.msk.bf16.mxu1 %vm7507_vm0, %v7506_v1  ;;  %s5920_s22 = sld [smem:[#allocation3 + $0x2]]  ;;  %v1035_v14 = vand.u32 127, %v1032_v0  ;;  %v6603_v26 = vld [vmem:[#allocation9 + $0x30] sm:$0xff]   ;;  %v1164_v27 = vld [vmem:[#allocation7] sm:$0xff]  ;;  %v6604_v29 = vld [vmem:[#allocation9 + $0x28] sm:$0xff]  }
 0x1b7   : > { %s5921_s7 = sld [smem:[#allocation3 + $0x3]]  ;;  %6298 = vmatpush3.msra.mxu0 %v1072_v3  ;;  %6305 = vmatpush3.bf16.msra.mxu1 %v6607_v19  ;;  %v1165_v28 = vpack.c.bf16 %v1164_v27, %v1164_v27  ;;  %v6605_v30 = vld [vmem:[#allocation9 + $0x20] sm:$0xff]   ;;  %v6606_v31 = vld [vmem:[#allocation9 + $0x18] sm:$0xff]   ;;  %v6608_v32 = vld [vmem:[#allocation9 + $0x10] sm:$0xff]   ;;  %v7508_v58 = vmov 0   ;;  %s6340_s18 = smul.u32 48, %s8006_s27 }
 0x1b8   : > { %vm1036_vm1 = vcmp.eq.s32.totalorder %v8028_v2, 0  ;;  %s5922_s26 = sld [smem:[#allocation3 + $0x4]]  ;;  %vm1040_vm2 = vcmp.eq.s32.totalorder %v8028_v2, 1  ;;  %vm1044_vm3 = vcmp.eq.s32.totalorder %v8028_v2, 2  ;;  %vm1048_vm4 = vcmp.eq.s32.totalorder %v8028_v2, 3  ;;  %6299 = vmatprep.subr.mxu0 %v7506_v1  ;;  %6306 = vmatprep.subr.bf16.mxu1 %v7506_v1  ;;  %v6610_v33 = vld [vmem:[#allocation9 + $0x8] sm:$0xff]  }
 0x1b9   : > { %s5923_s29 = sld [smem:[#allocation3 + $0x5]]  ;;  %vm1052_vm5 = vcmp.eq.s32.totalorder %v8028_v2, 4  ;;  %6300 = vmatpush3.msra.mxu0 %v1071_v4  ;;  %vm1056_vm6 = vcmp.eq.s32.totalorder %v8028_v2, 5  ;;  %vm1060_vm7 = vcmp.eq.s32.totalorder %v8028_v2, 6  ;;  %vm1064_vm8 = vcmp.eq.s32.totalorder %v8028_v2, 7  ;;  %v6611_v34 = vld [vmem:[#allocation9] sm:$0xff]  }
 0x1ba   : > { %v1038_v5 = vstv %s1037_s3  ;;  %s5924_s8 = sld [smem:[#allocation3 + $0x6]]  ;;  %6312 = vmatprep.subr.bf16.mxu0 %v7506_v1  ;;  %v6614_v42 = vld [vmem:[#allocation16 + $0x74] ss:$8 sps:$4 sm:$0xff]   ;;  %v6612_v43 = vld [vmem:[#allocation16 + $0x70] ss:$8 sps:$4 sm:$0xff]   ;;  %s8508_s24 = scalar_lea.vmem [#allocation39], %s6340_s18 }
 0x1bb   : > { %v1039_v6 = vsel %vm1036_vm1, %v1038_v5, 0  ;;  %v1042_v7 = vstv %s5919_s0  ;;  %s5925_s5 = sld [smem:[#allocation3 + $0x7]]  ;;  %6307 = vmatpush3.bf16.msra.mxu1 %v6609_v24  ;;  %v6617_v44 = vld [vmem:[#allocation16 + $0x64] ss:$8 sps:$4 sm:$0xff]   ;;  %v6615_v45 = vld [vmem:[#allocation16 + $0x60] ss:$8 sps:$4 sm:$0xff]  }
 0x1bc   : > { %v1043_v8 = vsel %vm1040_vm2, %v1042_v7, %v1039_v6  ;;  %v1046_v9 = vstv %s5920_s22  ;;  %1470 = vmatprep.subr.bf16.mxu1 %v6614_v42  ;;  %v6620_v46 = vld [vmem:[#allocation16 + $0x54] ss:$8 sps:$4 sm:$0xff]   ;;  %v6618_v47 = vld [vmem:[#allocation16 + $0x50] ss:$8 sps:$4 sm:$0xff]   ;;  %v6623_v48 = vld [vmem:[#allocation16 + $0x44] ss:$8 sps:$4 sm:$0xff]  }
 0x1bd   : > { %v1047_v10 = vsel %vm1044_vm3, %v1046_v9, %v1043_v8  ;;  %v1050_v11 = vstv %s5921_s7  ;;  %v6621_v49 = vld [vmem:[#allocation16 + $0x40] ss:$8 sps:$4 sm:$0xff]   ;;  %v6626_v50 = vld [vmem:[#allocation16 + $0x34] ss:$8 sps:$4 sm:$0xff]   ;;  %v6624_v51 = vld [vmem:[#allocation16 + $0x30] ss:$8 sps:$4 sm:$0xff]  }
 0x1be   : > { %v1051_v12 = vsel %vm1048_vm4, %v1050_v11, %v1047_v10  ;;  %v1054_v13 = vstv %s5922_s26  ;;  %6309 = vmatmul.mubr.msk.bf16.vlgmr.msra.gmra.mxu1 %vm1182_vm11, %v1165_v28  ;;  %v6629_v52 = vld [vmem:[#allocation16 + $0x24] ss:$8 sps:$4 sm:$0xff]   ;;  %v6627_v53 = vld [vmem:[#allocation16 + $0x20] ss:$8 sps:$4 sm:$0xff]   ;;  %v6632_v54 = vld [vmem:[#allocation16 + $0x14] ss:$8 sps:$4 sm:$0xff]  }
 0x1bf   : > { %v1055_v15 = vsel %vm1052_vm5, %v1054_v13, %v1051_v12  ;;  %v1058_v16 = vstv %s5923_s29  ;;  %1471 = vmatpush1.bf16.msra.mxu1 %v6612_v43  ;;  %v6630_v55 = vld [vmem:[#allocation16 + $0x10] ss:$8 sps:$4 sm:$0xff]   ;;  %v6635_v56 = vld [vmem:[#allocation16 + $0x4] ss:$8 sps:$4 sm:$0xff]   ;;  %v6633_v57 = vld [vmem:[#allocation16] ss:$8 sps:$4 sm:$0xff]   ;;  %1502 = vmatprep.mubr.bf16.mxu1 %v7508_v58 }
 0x1c0   : > { %v1059_v17 = vsel %vm1056_vm6, %v1058_v16, %v1055_v15  ;;  %v1062_v18 = vstv %s5924_s8  ;;  %1472 = vmatprep.subr.bf16.mxu1 %v6617_v44  ;;  %v5939_v60 = vld [vmem:[#allocation12] ss:$0 sm:$0xff]  ;;  %v6659_v42 = vld [vmem:[#allocation22 + $0x8c] ss:$16 sps:$4 sm:$0xff]   ;;  %v6654_v43 = vld [vmem:[#allocation22 + $0x80] ss:$16 sps:$4 sm:$0xff]  }
 0x1c1   : > { %v1063_v20 = vsel %vm1060_vm7, %v1062_v18, %v1059_v17  ;;  %v1066_v21 = vstv %s5925_s5  ;;  %v6657_v44 = vld [vmem:[#allocation22 + $0x88] ss:$16 sps:$4 sm:$0xff]   ;;  %v6683_v58 = vld [vmem:[#allocation22 + $0xc] ss:$16 sps:$4 sm:$0xff]   ;;  %s6281_s2 = smul.u32 768, %s7654_s6  ;;  %s8711_s12 = sld [smem:[#allocation75_spill]] }
 0x1c2   : > { %v1067_v23 = vsel %vm1064_vm8, %v1066_v21, %v1063_v20  ;;  %v5940_v21 = vld [vmem:[#allocation13] ss:$0 sm:$0xff]  ;;  %s5564_s3 = scalar_lea.sflag [#allocation6], %s8006_s27  ;;  %p8712_p8 = scmp.ne.s32.totalorder %s8667_s30, 0 }
 0x1c3   : > { %vm1068_vm10 = vcmp.eq.s32.totalorder %v1035_v14, %v1067_v23  ;;  %1473 = vmatpush1.bf16.msra.mxu1 %v6615_v45  ;;  %v5941_v23 = vld [vmem:[#allocation15] ss:$0 sm:$0xff]  ;;  %v6662_v45 = vld [vmem:[#allocation22 + $0x64] ss:$16 sps:$4 sm:$0xff]   ;;  %s7509_s22 = smov [#allocation39]  }
 0x1c4   : > { %v5926_v25 = vsel %vm1068_vm10, 1.0, %v7506_v1  ;;  %1474 = vmatprep.subr.bf16.mxu1 %v6620_v46  ;;  %v6665_v46 = vld [vmem:[#allocation22 + $0x6c] ss:$16 sps:$4 sm:$0xff]   ;;  %s7365_s7 = sshll.u32 %s7509_s22, 4  ;;  %s7366_s7 = int_to_ptr.vmem [resolvable:$false] %s7365_s7 }
 0x1c5   : > { %6302 = vmatmul.mubr.msk.f32.vlgmr.msra.gmra.mxu0 %vm1073_vm9, %v5926_v25  ;;  %s7367_s6 = scalar_lea.vmem %s7366_s7, 1536 }
 0x1c6   : > { %6313 = vmatpush3.bf16.msra.mxu0 %v6602_v22  ;;  %6328 = vmatprep.mubr.msk.bf16.mxu0 %vm7507_vm0, %v7506_v1 }
 0x1c7   : > { %6314 = vmatprep.subr.bf16.mxu0 %v7506_v1  ;;  %1475 = vmatpush1.bf16.msra.mxu1 %v6618_v47  ;;  %v6660_v47 = vld [vmem:[#allocation22 + $0x60] ss:$16 sps:$4 sm:$0xff]  }
 0x1c8   : > { %1476 = vmatprep.subr.bf16.mxu1 %v6623_v48  ;;  %v6663_v48 = vld [vmem:[#allocation22 + $0x68] ss:$16 sps:$4 sm:$0xff]  }
 0x1ca   : > { %6315 = vmatpush3.bf16.msra.mxu0 %v6603_v26 }
 0x1cb   : > { %6316 = vmatprep.subr.bf16.mxu0 %v7506_v1  ;;  %1477 = vmatpush1.bf16.msra.mxu1 %v6621_v49  ;;  %v6668_v49 = vld [vmem:[#allocation22 + $0x44] ss:$16 sps:$4 sm:$0xff]  }
 0x1cc   : > { %1478 = vmatprep.subr.bf16.mxu1 %v6626_v50  ;;  %v6671_v50 = vld [vmem:[#allocation22 + $0x4c] ss:$16 sps:$4 sm:$0xff]  }
 0x1ce   : > { %6317 = vmatpush3.bf16.msra.mxu0 %v6604_v29  ;;  %v6638_v29 = vld [vmem:[#allocation22 + $0xe4] ss:$16 sps:$4 sm:$0xff]  }
 0x1cf   : > { %6318 = vmatprep.subr.bf16.mxu0 %v7506_v1  ;;  %1479 = vmatpush1.bf16.msra.mxu1 %v6624_v51  ;;  %v6666_v51 = vld [vmem:[#allocation22 + $0x40] ss:$16 sps:$4 sm:$0xff]  }
 0x1d0   : > { %1480 = vmatprep.subr.bf16.mxu1 %v6629_v52  ;;  %v6669_v52 = vld [vmem:[#allocation22 + $0x48] ss:$16 sps:$4 sm:$0xff]  }
 0x1d2   : > { %6319 = vmatpush3.bf16.msra.mxu0 %v6605_v30  ;;  %v6641_v30 = vld [vmem:[#allocation22 + $0xec] ss:$16 sps:$4 sm:$0xff]  }
 0x1d3   : > { %6320 = vmatprep.subr.bf16.mxu0 %v7506_v1  ;;  %1481 = vmatpush1.bf16.msra.mxu1 %v6627_v53  ;;  %v6674_v53 = vld [vmem:[#allocation22 + $0x24] ss:$16 sps:$4 sm:$0xff]  }
 0x1d4   : > { %1482 = vmatprep.subr.bf16.mxu1 %v6632_v54  ;;  %v6677_v54 = vld [vmem:[#allocation22 + $0x2c] ss:$16 sps:$4 sm:$0xff]  }
 0x1d6   : > { %6321 = vmatpush3.bf16.msra.mxu0 %v6606_v31  ;;  %v6636_v31 = vld [vmem:[#allocation22 + $0xe0] ss:$16 sps:$4 sm:$0xff]  }
 0x1d7   : > { %6322 = vmatprep.subr.bf16.mxu0 %v7506_v1  ;;  %1483 = vmatpush1.bf16.msra.mxu1 %v6630_v55  ;;  %v6672_v55 = vld [vmem:[#allocation22 + $0x20] ss:$16 sps:$4 sm:$0xff]  }
 0x1d8   : > { %1484 = vmatprep.subr.bf16.mxu1 %v6635_v56  ;;  %v6675_v56 = vld [vmem:[#allocation22 + $0x28] ss:$16 sps:$4 sm:$0xff]  }
 0x1da   : > { %6323 = vmatpush3.bf16.msra.mxu0 %v6608_v32  ;;  %v6639_v32 = vld [vmem:[#allocation22 + $0xe8] ss:$16 sps:$4 sm:$0xff]  }
 0x1db   : > { %6324 = vmatprep.subr.bf16.mxu0 %v7506_v1  ;;  %1485 = vmatpush1.bf16.msra.mxu1 %v6633_v57  ;;  %v6680_v57 = vld [vmem:[#allocation22 + $0x4] ss:$16 sps:$4 sm:$0xff]  }
 0x1dc   : > { %2032 = vmatprep.subr.bf16.mxu1 %v6641_v30  ;;  %v8057_v30 = vsub.s32 0, %v8028_v2 }
 0x1de   : > { %6325 = vmatpush3.bf16.msra.mxu0 %v6610_v33  ;;  %v6644_v33 = vld [vmem:[#allocation22 + $0xc4] ss:$16 sps:$4 sm:$0xff]  }
 0x1df   : > { %6326 = vmatprep.subr.bf16.mxu0 %v7506_v1 }
 0x1e2   : > { %6327 = vmatpush3.bf16.msra.mxu0 %v6611_v34  ;;  %v6647_v34 = vld [vmem:[#allocation22 + $0xcc] ss:$16 sps:$4 sm:$0xff]  }
 0x1e3   : > { %1991 = vmatprep.subr.bf16.mxu0 %v6638_v29  ;;  %v6729_v29 = vld [vmem:[#allocation22 + $0x108] ss:$16 sps:$4 sm:$0xff]  }
 0x27e   : > { %v1220_v38 = vpop.f32.mrf.mxu1 }
 0x280   : > { %v6310_v39 = vpop.f32.mrf.mxu1 }
 0x281   : > { %v6648_v39 = vld [vmem:[#allocation22 + $0xa0] ss:$16 sps:$4 sm:$0xff]  }
 0x282   : > { %v1223_v40 = vpop.f32.mrf.mxu1 }
 0x283   : > { %v6651_v40 = vld [vmem:[#allocation22 + $0xa8] ss:$16 sps:$4 sm:$0xff]  }
 0x284   : > { %v6311_v41 = vpop.f32.mrf.mxu1 }
 0x285   : > { %v1143_v35 = vpop.f32.mrf.mxu0  ;;  %v6656_v41 = vld [vmem:[#allocation22 + $0x84] ss:$16 sps:$4 sm:$0xff]  }
 0x286   : > { %v1147_v36 = vpack.c.bf16 %v1143_v35, %v1143_v35  ;;  %v6642_v35 = vld [vmem:[#allocation22 + $0xc0] ss:$16 sps:$4 sm:$0xff]  }
 0x287   : > { %v6303_v37 = vpop.f32.mrf.mxu0 }
 0x288   : > { %6329 = vmatmul.mubr.bf16.vlgmr.msra.gmra.mxu0 %v1147_v36  ;;  %v6645_v36 = vld [vmem:[#allocation22 + $0xc8] ss:$16 sps:$4 sm:$0xff]   ;;  %v6650_v37 = vld [vmem:[#allocation22 + $0xa4] ss:$16 sps:$4 sm:$0xff]  }
 0x289   : > { %1992 = vmatpush1.bf16.msra.mxu0 %v6636_v31  ;;  %v1378_v31 = vld [vmem:[#allocation18] sm:$0x3] }
 0x28a   : > { %1993 = vmatprep.subr.bf16.mxu0 %v6644_v33  ;;  %v1383_v33 = vrot.slane %v1378_v31, %v8057_v30 }
 0x28d   : > { %1994 = vmatpush1.bf16.msra.mxu0 %v6642_v35 }
 0x28e   : > { %1995 = vmatprep.subr.bf16.mxu0 %v6650_v37 }
 0x291   : > { %1996 = vmatpush1.bf16.msra.mxu0 %v6648_v39 }
 0x292   : > { %1997 = vmatprep.subr.bf16.mxu0 %v6656_v41 }
 0x295   : > { %1998 = vmatpush1.bf16.msra.mxu0 %v6654_v43 }
 0x296   : > { %1999 = vmatprep.subr.bf16.mxu0 %v6662_v45 }
 0x299   : > { %2000 = vmatpush1.bf16.msra.mxu0 %v6660_v47 }
 0x29a   : > { %2001 = vmatprep.subr.bf16.mxu0 %v6668_v49 }
 0x29d   : > { %2002 = vmatpush1.bf16.msra.mxu0 %v6666_v51 }
 0x29e   : > { %2003 = vmatprep.subr.bf16.mxu0 %v6674_v53 }
 0x2a1   : > { %2004 = vmatpush1.bf16.msra.mxu0 %v6672_v55 }
 0x2a2   : > { %2005 = vmatprep.subr.bf16.mxu0 %v6680_v57 }
 0x348   : > { %v1308_v59 = vpop.f32.mrf.mxu0 }
 0x349   : > { %v1309_v61 = vadd.f32 %v1308_v59, %v1220_v38  ;;  %v6653_v38 = vld [vmem:[#allocation22 + $0xac] ss:$16 sps:$4 sm:$0xff]   ;;  %v6678_v59 = vld [vmem:[#allocation22] ss:$16 sps:$4 sm:$0xff]  }
 0x34a   : > { %v6330_v62 = vpop.f32.mrf.mxu0  ;;  %2006 = vmatpush1.bf16.msra.mxu0 %v6678_v59 }
 0x34b   : > { %v1321_v63 = vadd.f32 %v5939_v60, %v1309_v61  ;;  %v6681_v60 = vld [vmem:[#allocation22 + $0x8] ss:$16 sps:$4 sm:$0xff]   ;;  %v6686_v61 = vld [vmem:[#allocation22 + $0x1e4] ss:$16 sps:$4 sm:$0xff]   ;;  %v6689_v62 = vld [vmem:[#allocation22 + $0x1ec] ss:$16 sps:$4 sm:$0xff]  }
 0x34c   : > { %v1311_v0 = vpop.f32.mrf.mxu0  ;;  %2007 = vmatprep.subr.bf16.mxu0 %v6686_v61 }
 0x34d   : > { %v1322_v1 = vrot.slane %v1321_v63, 4  ;;  %v6687_v0 = vld [vmem:[#allocation22 + $0x1e8] ss:$16 sps:$4 sm:$0xff]  }
 0x34e   : > { %v6331_v3 = vpop.f32.mrf.mxu0 }
 0x34f   : > { %v1323_v4 = vadd.f32 %v1322_v1, %v1321_v63  ;;  %v6692_v1 = vld [vmem:[#allocation22 + $0x1c4] ss:$16 sps:$4 sm:$0xff]   ;;  %v6695_v3 = vld [vmem:[#allocation22 + $0x1cc] ss:$16 sps:$4 sm:$0xff]  }
 0x351   : > { %v1324_v5 = vrot.slane %v1323_v4, 2 }
 0x353   : > { %v1325_v6 = vadd.f32 %v1324_v5, %v1323_v4  ;;  %v6690_v4 = vld [vmem:[#allocation22 + $0x1c0] ss:$16 sps:$4 sm:$0xff]   ;;  %v6693_v5 = vld [vmem:[#allocation22 + $0x1c8] ss:$16 sps:$4 sm:$0xff]  }
 0x355   : > { %v1326_v7 = vrot.slane %v1325_v6, 1 }
 0x357   : > { %v1327_v8 = vadd.f32 %v1326_v7, %v1325_v6  ;;  %v6698_v6 = vld [vmem:[#allocation22 + $0x1a4] ss:$16 sps:$4 sm:$0xff]   ;;  %v6701_v7 = vld [vmem:[#allocation22 + $0x1ac] ss:$16 sps:$4 sm:$0xff]  }
 0x359   : > { %v1329_v9 = vmul.f32 0.125, %v1327_v8  ;;  %v6696_v8 = vld [vmem:[#allocation22 + $0x1a0] ss:$16 sps:$4 sm:$0xff]  }
 0x35b   : > { %v1330_v10 = vsub.f32 %v1321_v63, %v1329_v9  ;;  %v6684_v63 = vld [vmem:[#allocation22 + $0x1e0] ss:$16 sps:$4 sm:$0xff]   ;;  %v6699_v9 = vld [vmem:[#allocation22 + $0x1a8] ss:$16 sps:$4 sm:$0xff]  }
 0x35c   : > { %2008 = vmatpush2.bf16.msra.mxu0 %v6684_v63 }
 0x35d   : > { %v1331_v11 = vmul.f32 %v1330_v10, %v1330_v10  ;;  %2009 = vmatprep.subr.bf16.mxu0 %v6692_v1 }
 0x35f   : > { %v1332_v12 = vrot.slane %v1331_v11, 4 }
 0x360   : > { %2010 = vmatpush2.bf16.msra.mxu0 %v6690_v4 }
 0x361   : > { %v1333_v13 = vadd.f32 %v1332_v12, %v1331_v11  ;;  %2011 = vmatprep.subr.bf16.mxu0 %v6698_v6  ;;  %v6707_v11 = vld [vmem:[#allocation22 + $0x18c] ss:$16 sps:$4 sm:$0xff]   ;;  %v6702_v12 = vld [vmem:[#allocation22 + $0x180] ss:$16 sps:$4 sm:$0xff]  }
 0x363   : > { %v1334_v14 = vrot.slane %v1333_v13, 2 }
 0x364   : > { %2012 = vmatpush2.bf16.msra.mxu0 %v6696_v8 }
 0x365   : > { %v1335_v15 = vadd.f32 %v1334_v14, %v1333_v13  ;;  %v6705_v13 = vld [vmem:[#allocation22 + $0x188] ss:$16 sps:$4 sm:$0xff]   ;;  %v6710_v14 = vld [vmem:[#allocation22 + $0x164] ss:$16 sps:$4 sm:$0xff]  }
 0x367   : > { %v1336_v16 = vrot.slane %v1335_v15, 1 }
 0x369   : > { %v1337_v17 = vadd.f32 %v1336_v16, %v1335_v15  ;;  %v6713_v15 = vld [vmem:[#allocation22 + $0x16c] ss:$16 sps:$4 sm:$0xff]   ;;  %v6708_v16 = vld [vmem:[#allocation22 + $0x160] ss:$16 sps:$4 sm:$0xff]  }
 0x36b   : > { %v1338_v18 = vmul.f32 0.125, %v1337_v17  ;;  %v6711_v17 = vld [vmem:[#allocation22 + $0x168] ss:$16 sps:$4 sm:$0xff]  }
 0x36d   : > { %v1339_v19 = vadd.f32 0.8, %v1338_v18  ;;  %v6716_v18 = vld [vmem:[#allocation22 + $0x144] ss:$16 sps:$4 sm:$0xff]  }
 0x36f   : > { %6732 = vrsqrt.f32 %v1339_v19  ;;  %v6719_v19 = vld [vmem:[#allocation22 + $0x14c] ss:$16 sps:$4 sm:$0xff]  }
 0x37c   : > { %v6733_v20 = vpop.eup %6732 }
 0x37d   : > { %v1341_v22 = vmul.f32 %v6733_v20, %v1330_v10  ;;  %v6704_v10 = vld [vmem:[#allocation22 + $0x184] ss:$16 sps:$4 sm:$0xff]   ;;  %v6714_v20 = vld [vmem:[#allocation22 + $0x140] ss:$16 sps:$4 sm:$0xff]  }
 0x37e   : > { %2013 = vmatprep.subr.bf16.mxu0 %v6704_v10 }
 0x37f   : > { %v1349_v24 = vmul.f32 %v5940_v21, %v1341_v22  ;;  %2014 = vmatpush2.bf16.msra.mxu0 %v6702_v12  ;;  %v6717_v21 = vld [vmem:[#allocation22 + $0x148] ss:$16 sps:$4 sm:$0xff]   ;;  %v6720_v22 = vld [vmem:[#allocation22 + $0x120] ss:$16 sps:$4 sm:$0xff]   ;;  %v1549_v12 = vld [vmem:[#allocation19] sm:$0x3] }
 0x380   : > { %2015 = vmatprep.subr.bf16.mxu0 %v6710_v14  ;;  %v1554_v14 = vrot.slane %v1549_v12, %v8057_v30 }
 0x381   : > { %v1357_v25 = vadd.f32 %v5941_v23, %v1349_v24  ;;  %v6722_v23 = vld [vmem:[#allocation22 + $0x124] ss:$16 sps:$4 sm:$0xff]   ;;  %v6723_v24 = vld [vmem:[#allocation22 + $0x128] ss:$16 sps:$4 sm:$0xff]  }
 0x383   : > { %vm1358_vm12 = vcmp.ge.f32.partialorder %v1357_v25, 0.0  ;;  %v1359_v26 = vmul.f32 0.2, %v1357_v25  ;;  %2016 = vmatpush2.bf16.msra.mxu0 %v6708_v16 }
 0x384   : > { %2017 = vmatprep.subr.bf16.mxu0 %v6716_v18 }
 0x385   : > { %v1360_v27 = vsel %vm1358_vm12, %v1357_v25, %v1359_v26  ;;  %v6725_v25 = vld [vmem:[#allocation22 + $0x12c] ss:$16 sps:$4 sm:$0xff]   ;;  %v6728_v26 = vld [vmem:[#allocation22 + $0x104] ss:$16 sps:$4 sm:$0xff]  }
 0x386   : > { %v1361_v28 = vpack.c.bf16 %v1360_v27, %v1360_v27  ;;  %v6731_v27 = vld [vmem:[#allocation22 + $0x10c] ss:$16 sps:$4 sm:$0xff]  }
 0x387   : > { %2018 = vmatpush2.bf16.msra.mxu0 %v6714_v20 }
 0x388   : > { %1503 = vmatmul.mubr.bf16.vlgmr.msra.gmra.mxu1 %v1361_v28  ;;  %2019 = vmatprep.subr.bf16.mxu0 %v6722_v23  ;;  %v6726_v28 = vld [vmem:[#allocation22 + $0x100] ss:$16 sps:$4 sm:$0xff]  }
 0x389   : > { %2033 = vmatpush1.bf16.msra.mxu1 %v6639_v32  ;;  %v8060_v32 = vsub.s32 1, %v8028_v2 }
 0x38a   : > { %2034 = vmatprep.subr.bf16.mxu1 %v6647_v34 }
 0x38b   : > { %2020 = vmatpush2.bf16.msra.mxu0 %v6720_v22  ;;  %v1387_v34 = vrot.slane %v1378_v31, %v8060_v32  ;;  %v1558_v18 = vrot.slane %v1549_v12, %v8060_v32  ;;  %v2237_v12 = vld [vmem:[#allocation28 + $0xa0] sm:$0xff] }
 0x38c   : > { %2021 = vmatprep.subr.bf16.mxu0 %v6728_v26 }
 0x38d   : > { %2035 = vmatpush1.bf16.msra.mxu1 %v6645_v36 }
 0x38e   : > { %2036 = vmatprep.subr.bf16.mxu1 %v6653_v38 }
 0x38f   : > { %2022 = vmatpush2.bf16.msra.mxu0 %v6726_v28 }
 0x391   : > { %2037 = vmatpush1.bf16.msra.mxu1 %v6651_v40 }
 0x392   : > { %2038 = vmatprep.subr.bf16.mxu1 %v6659_v42 }
 0x395   : > { %2039 = vmatpush1.bf16.msra.mxu1 %v6657_v44 }
 0x396   : > { %2040 = vmatprep.subr.bf16.mxu1 %v6665_v46 }
 0x399   : > { %2041 = vmatpush1.bf16.msra.mxu1 %v6663_v48 }
 0x39a   : > { %2042 = vmatprep.subr.bf16.mxu1 %v6671_v50 }
 0x39d   : > { %2043 = vmatpush1.bf16.msra.mxu1 %v6669_v52 }
 0x39e   : > { %2044 = vmatprep.subr.bf16.mxu1 %v6677_v54 }
 0x3a1   : > { %2045 = vmatpush1.bf16.msra.mxu1 %v6675_v56 }
 0x3a2   : > { %2046 = vmatprep.subr.bf16.mxu1 %v6683_v58 }
 0x3a5   : > { %2047 = vmatpush1.bf16.msra.mxu1 %v6681_v60 }
 0x3a6   : > { %2048 = vmatprep.subr.bf16.mxu1 %v6689_v62 }
 0x3a9   : > { %2049 = vmatpush2.bf16.msra.mxu1 %v6687_v0 }
 0x3aa   : > { %2050 = vmatprep.subr.bf16.mxu1 %v6695_v3 }
 0x3ad   : > { %2051 = vmatpush2.bf16.msra.mxu1 %v6693_v5 }
 0x3ae   : > { %2052 = vmatprep.subr.bf16.mxu1 %v6701_v7 }
 0x3b1   : > { %2053 = vmatpush2.bf16.msra.mxu1 %v6699_v9 }
 0x3b2   : > { %2054 = vmatprep.subr.bf16.mxu1 %v6707_v11 }
 0x3b5   : > { %2055 = vmatpush2.bf16.msra.mxu1 %v6705_v13  ;;  %v1563_v13 = vld [vmem:[#allocation21] sm:$0x3] }
 0x3b6   : > { %2056 = vmatprep.subr.bf16.mxu1 %v6713_v15  ;;  %v1572_v22 = vrot.slane %v1563_v13, %v8060_v32 }
 0x3b9   : > { %2057 = vmatpush2.bf16.msra.mxu1 %v6711_v17  ;;  %v1568_v17 = vrot.slane %v1563_v13, %v8057_v30  ;;  %v2361_v13 = vld [vmem:[#allocation28 + $0x480] sm:$0xff] }
 0x3ba   : > { %2058 = vmatprep.subr.bf16.mxu1 %v6719_v19 }
 0x3bd   : > { %2059 = vmatpush2.bf16.msra.mxu1 %v6717_v21 }
 0x3be   : > { %2060 = vmatprep.subr.bf16.mxu1 %v6725_v25 }
 0x3c1   : > { %2061 = vmatpush2.bf16.msra.mxu1 %v6723_v24 }
 0x3c2   : > { %2062 = vmatprep.subr.bf16.mxu1 %v6731_v27 }
 0x3c5   : > { %2063 = vmatpush2.bf16.msra.mxu1 %v6729_v29 }
 0x448   : > { %v1504_v35 = vpop.f32.mrf.mxu1 }
 0x449   : > { %v1505_v36 = vadd.f32 %v1504_v35, %v1383_v33  ;;  %v2277_v35 = vld [vmem:[#allocation28 + $0x1e0] sm:$0xff] }
 0x44a   : > { %v1506_v37 = vpop.f32.mrf.mxu1 }
 0x44b   : > { %v1511_v38 = vrot.slane %v1505_v36, 4  ;;  %v1507_v39 = vadd.f32 %v1506_v37, %v1387_v34  ;;  %v2273_v34 = vld [vmem:[#allocation28 + $0x1c0] sm:$0xff] }
 0x44c   : > { %v1508_v40 = vpop.f32.mrf.mxu1  ;;  %v6079_v37 = vcombine.high %v2273_v34, %v2277_v35 }
 0x44d   : > { %v1512_v41 = vadd.f32 %v1511_v38, %v1505_v36  ;;  %v1517_v42 = vrot.slane %v1507_v39, 4  ;;  %v2405_v38 = vld [vmem:[#allocation28 + $0x5e0] sm:$0xff] }
 0x44e   : > { %v1509_v43 = vpop.f32.mrf.mxu1  ;;  %3795 = vmatprep.subr.bf16.mxu0 %v6079_v37  ;;  %v2337_v37 = vld [vmem:[#allocation28 + $0x3c0] sm:$0xff] }
 0x44f   : > { %v1513_v44 = vrot.slane %v1512_v41, 2  ;;  %v1518_v45 = vadd.f32 %v1517_v42, %v1507_v39  ;;  %v2265_v42 = vld [vmem:[#allocation28 + $0x180] sm:$0xff] }
 0x450   : > { %v2269_v43 = vld [vmem:[#allocation28 + $0x1a0] sm:$0xff] }
 0x451   : > { %v1514_v46 = vadd.f32 %v1513_v44, %v1512_v41  ;;  %v1519_v47 = vrot.slane %v1518_v45, 2  ;;  %v2393_v44 = vld [vmem:[#allocation28 + $0x580] sm:$0xff] }
 0x453   : > { %v1515_v48 = vrot.slane %v1514_v46, 1  ;;  %v1520_v49 = vadd.f32 %v1519_v47, %v1518_v45  ;;  %v6071_v45 = vcombine.high %v2265_v42, %v2269_v43  ;;  %v6070_v47 = vcombine.low %v2265_v42, %v2269_v43 }
 0x455   : > { %v1516_v50 = vadd.f32 %v1515_v48, %v1514_v46  ;;  %v1521_v51 = vrot.slane %v1520_v49, 1  ;;  %v2397_v46 = vld [vmem:[#allocation28 + $0x5a0] sm:$0xff] }
 0x456   : > { %v6198_v48 = vcombine.low %v2393_v44, %v2397_v46 }
 0x457   : > { %v1523_v52 = vmul.f32 0.125, %v1516_v50  ;;  %v1522_v53 = vadd.f32 %v1521_v51, %v1520_v49  ;;  %v6199_v49 = vcombine.high %v2393_v44, %v2397_v46  ;;  %v2257_v50 = vld [vmem:[#allocation28 + $0x140] sm:$0xff] }
 0x458   : > { %v2261_v51 = vld [vmem:[#allocation28 + $0x160] sm:$0xff] }
 0x459   : > { %v1525_v54 = vsub.f32 %v1505_v36, %v1523_v52  ;;  %v1524_v55 = vmul.f32 0.125, %v1522_v53  ;;  %v2401_v36 = vld [vmem:[#allocation28 + $0x5c0] sm:$0xff]  ;;  %v6063_v53 = vcombine.high %v2257_v50, %v2261_v51 }
 0x45a   : > { %v6206_v40 = vcombine.low %v2401_v36, %v2405_v38  ;;  %v6207_v41 = vcombine.high %v2401_v36, %v2405_v38  ;;  %v2385_v52 = vld [vmem:[#allocation28 + $0x540] sm:$0xff] }
 0x45b   : > { %v1527_v56 = vmul.f32 %v1525_v54, %v1525_v54  ;;  %v1526_v57 = vsub.f32 %v1507_v39, %v1524_v55  ;;  %v6078_v39 = vcombine.low %v2273_v34, %v2277_v35  ;;  %v6062_v55 = vcombine.low %v2257_v50, %v2261_v51  ;;  %v2341_v38 = vld [vmem:[#allocation28 + $0x3e0] sm:$0xff] }
 0x45c   : > { %3836 = vmatprep.subr.bf16.mxu1 %v6207_v41  ;;  %v2469_v41 = vld [vmem:[#allocation28 + $0x7e0] sm:$0xff]  ;;  %v6142_v42 = vcombine.low %v2337_v37, %v2341_v38 }
 0x45d   : > { %v1529_v58 = vrot.slane %v1527_v56, 4  ;;  %v1528_v59 = vmul.f32 %v1526_v57, %v1526_v57  ;;  %v2333_v46 = vld [vmem:[#allocation28 + $0x3a0] sm:$0xff] }
 0x45f   : > { %v1530_v60 = vadd.f32 %v1529_v58, %v1527_v56  ;;  %v1535_v61 = vrot.slane %v1528_v59, 4  ;;  %v2249_v58 = vld [vmem:[#allocation28 + $0x100] sm:$0xff] }
 0x461   : > { %v1531_v62 = vrot.slane %v1530_v60, 2  ;;  %v1536_v63 = vadd.f32 %v1535_v61, %v1528_v59  ;;  %v2253_v59 = vld [vmem:[#allocation28 + $0x120] sm:$0xff] }
 0x462   : > { %v6055_v61 = vcombine.high %v2249_v58, %v2253_v59 }
 0x463   : > { %v1532_v0 = vadd.f32 %v1531_v62, %v1530_v60  ;;  %v1537_v1 = vrot.slane %v1536_v63, 2  ;;  %v2377_v60 = vld [vmem:[#allocation28 + $0x500] sm:$0xff] }
 0x464   : > { %v2381_v62 = vld [vmem:[#allocation28 + $0x520] sm:$0xff] }
 0x465   : > { %v1533_v3 = vrot.slane %v1532_v0, 1  ;;  %v1538_v4 = vadd.f32 %v1537_v1, %v1536_v63  ;;  %v6054_v63 = vcombine.low %v2249_v58, %v2253_v59  ;;  %v6183_v1 = vcombine.high %v2377_v60, %v2381_v62 }
 0x467   : > { %v1534_v5 = vadd.f32 %v1533_v3, %v1532_v0  ;;  %v1539_v6 = vrot.slane %v1538_v4, 1  ;;  %v6182_v0 = vcombine.low %v2377_v60, %v2381_v62  ;;  %v2241_v3 = vld [vmem:[#allocation28 + $0xc0] sm:$0xff] }
 0x468   : > { %v2317_v62 = vld [vmem:[#allocation28 + $0x320] sm:$0xff] }
 0x469   : > { %v1541_v7 = vmul.f32 0.125, %v1534_v5  ;;  %v1540_v8 = vadd.f32 %v1539_v6, %v1538_v4  ;;  %v2245_v4 = vld [vmem:[#allocation28 + $0xe0] sm:$0xff] }
 0x46a   : > { %v2369_v5 = vld [vmem:[#allocation28 + $0x4c0] sm:$0xff]  ;;  %v6047_v6 = vcombine.high %v2241_v3, %v2245_v4 }
 0x46b   : > { %v1543_v9 = vadd.f32 0.8, %v1541_v7  ;;  %v1542_v10 = vmul.f32 0.125, %v1540_v8  ;;  %v2373_v7 = vld [vmem:[#allocation28 + $0x4e0] sm:$0xff]  ;;  %v6046_v8 = vcombine.low %v2241_v3, %v2245_v4 }
 0x46d   : > { %6734 = vrsqrt.f32 %v1543_v9  ;;  %v1544_v11 = vadd.f32 0.8, %v1542_v10  ;;  %v6174_v9 = vcombine.low %v2369_v5, %v2373_v7  ;;  %v6175_v10 = vcombine.high %v2369_v5, %v2373_v7  ;;  %v2309_v7 = vld [vmem:[#allocation28 + $0x2e0] sm:$0xff] }
 0x46f   : > { %6736 = vrsqrt.f32 %v1544_v11  ;;  %v2233_v11 = vld [vmem:[#allocation28 + $0x80] sm:$0xff] }
 0x47a   : > { %v6735_v15 = vpop.eup %6734 }
 0x47b   : > { %v1547_v16 = vmul.f32 %v6735_v15, %v1525_v54  ;;  %v2389_v54 = vld [vmem:[#allocation28 + $0x560] sm:$0xff] }
 0x47c   : > { %v6737_v19 = vpop.eup %6736  ;;  %v6190_v56 = vcombine.low %v2385_v52, %v2389_v54  ;;  %v2365_v15 = vld [vmem:[#allocation28 + $0x4a0] sm:$0xff] }
 0x47d   : > { %v1561_v20 = vmul.f32 %v1554_v14, %v1547_v16  ;;  %v1548_v21 = vmul.f32 %v6737_v19, %v1526_v57  ;;  %v6191_v57 = vcombine.high %v2385_v52, %v2389_v54  ;;  %v6039_v14 = vcombine.high %v2233_v11, %v2237_v12  ;;  %v2225_v19 = vld [vmem:[#allocation28 + $0x40] sm:$0xff] }
 0x47e   : > { %v6038_v16 = vcombine.low %v2233_v11, %v2237_v12  ;;  %v2325_v54 = vld [vmem:[#allocation28 + $0x360] sm:$0xff] }
 0x47f   : > { %v1575_v23 = vadd.f32 %v1568_v17, %v1561_v20  ;;  %v1562_v24 = vmul.f32 %v1558_v18, %v1548_v21  ;;  %v6166_v17 = vcombine.low %v2361_v13, %v2365_v15  ;;  %v6167_v18 = vcombine.high %v2361_v13, %v2365_v15  ;;  %v2229_v20 = vld [vmem:[#allocation28 + $0x60] sm:$0xff] }
 0x480   : > { %v2353_v21 = vld [vmem:[#allocation28 + $0x440] sm:$0xff] }
 0x481   : > { %v1576_v25 = vadd.f32 %v1572_v22, %v1562_v24  ;;  %vm1577_vm13 = vcmp.ge.f32.partialorder %v1575_v23, 0.0  ;;  %v1579_v26 = vmul.f32 0.2, %v1575_v23  ;;  %v6031_v22 = vcombine.high %v2225_v19, %v2229_v20  ;;  %v2301_v15 = vld [vmem:[#allocation28 + $0x2a0] sm:$0xff] }
 0x482   : > { %v6030_v24 = vcombine.low %v2225_v19, %v2229_v20 }
 0x483   : > { %vm1578_vm14 = vcmp.ge.f32.partialorder %v1576_v25, 0.0  ;;  %v1580_v27 = vmul.f32 0.2, %v1576_v25  ;;  %v1581_v28 = vsel %vm1577_vm13, %v1575_v23, %v1579_v26  ;;  %v2357_v23 = vld [vmem:[#allocation28 + $0x460] sm:$0xff] }
 0x484   : > { %v1583_v33 = vpack.c.bf16 %v1581_v28, %v1581_v28  ;;  %v6159_v26 = vcombine.high %v2353_v21, %v2357_v23  ;;  %v2221_v28 = vld [vmem:[#allocation28 + $0x20] sm:$0xff] }
 0x485   : > { %v1582_v29 = vsel %vm1578_vm14, %v1576_v25, %v1580_v27  ;;  %v6158_v25 = vcombine.low %v2353_v21, %v2357_v23  ;;  %v2217_v27 = vld [vmem:[#allocation28] sm:$0xff] }
 0x486   : > { %v1584_v31 = vpack.c.bf16 %v1582_v29, %v1582_v29  ;;  %v2345_v29 = vld [vmem:[#allocation28 + $0x400] sm:$0xff]  ;;  %v6022_v34 = vcombine.low %v2217_v27, %v2221_v28 }
 0x487   : > { %v2293_v23 = vld [vmem:[#allocation28 + $0x260] sm:$0xff] }
 0x488   : > { %2023 = vmatprep.mubr.bf16.mxu0 %v1584_v31  ;;  %2064 = vmatprep.mubr.bf16.mxu1 %v1584_v31  ;;  %v6023_v31 = vcombine.high %v2217_v27, %v2221_v28 }
 0x489   : > { %2024 = vmatmul.mubr.bf16.vlgmr.msra.gmra.mxu0 %v1583_v33  ;;  %2065 = vmatmul.mubr.bf16.vlgmr.msra.gmra.mxu1 %v1583_v33  ;;  %v2349_v33 = vld [vmem:[#allocation28 + $0x420] sm:$0xff] }
 0x48a   : > { %3796 = vmatpush1.bf16.msra.mxu0 %v6078_v39  ;;  %3837 = vmatpush1.bf16.msra.mxu1 %v6206_v40  ;;  %v6150_v35 = vcombine.low %v2345_v29, %v2349_v33  ;;  %v6151_v36 = vcombine.high %v2345_v29, %v2349_v33  ;;  %v2465_v39 = vld [vmem:[#allocation28 + $0x7c0] sm:$0xff]  ;;  %v6143_v40 = vcombine.high %v2337_v37, %v2341_v38 }
 0x48b   : > { %3797 = vmatprep.subr.bf16.mxu0 %v6071_v45  ;;  %3838 = vmatprep.subr.bf16.mxu1 %v6199_v49  ;;  %v6270_v43 = vcombine.low %v2465_v39, %v2469_v41  ;;  %v6271_v44 = vcombine.high %v2465_v39, %v2469_v41  ;;  %v2329_v45 = vld [vmem:[#allocation28 + $0x380] sm:$0xff]  ;;  %v8070_v41 = vld [vmem:[#allocation28 + $0x1e8] sm:$0xff] }
 0x48c   : > { %v2461_v49 = vld [vmem:[#allocation28 + $0x7a0] sm:$0xff]  ;;  %v6134_v50 = vcombine.low %v2329_v45, %v2333_v46 }
 0x48d   : > { %v2285_v33 = vld [vmem:[#allocation28 + $0x220] sm:$0xff] }
 0x48e   : > { %3798 = vmatpush1.bf16.msra.mxu0 %v6070_v47  ;;  %3839 = vmatpush1.bf16.msra.mxu1 %v6198_v48  ;;  %v2457_v47 = vld [vmem:[#allocation28 + $0x780] sm:$0xff]  ;;  %v6135_v48 = vcombine.high %v2329_v45, %v2333_v46 }
 0x48f   : > { %3799 = vmatprep.subr.bf16.mxu0 %v6063_v53  ;;  %3840 = vmatprep.subr.bf16.mxu1 %v6191_v57  ;;  %v6262_v51 = vcombine.low %v2457_v47, %v2461_v49  ;;  %v6263_v52 = vcombine.high %v2457_v47, %v2461_v49  ;;  %v2321_v53 = vld [vmem:[#allocation28 + $0x340] sm:$0xff]  ;;  %v1649_v49 = vld [vmem:[#allocation24] sm:$0xf] }
 0x490   : > { %v2453_v57 = vld [vmem:[#allocation28 + $0x760] sm:$0xff]  ;;  %v6126_v58 = vcombine.low %v2321_v53, %v2325_v54 }
 0x491   : > { %v2413_v37 = vld [vmem:[#allocation28 + $0x620] sm:$0xff] }
 0x492   : > { %3800 = vmatpush1.bf16.msra.mxu0 %v6062_v55  ;;  %3841 = vmatpush1.bf16.msra.mxu1 %v6190_v56  ;;  %v2449_v55 = vld [vmem:[#allocation28 + $0x740] sm:$0xff]  ;;  %v6127_v56 = vcombine.high %v2321_v53, %v2325_v54  ;;  %v1658_v53 = vrot.slane %v1649_v49, %v8060_v32 }
 0x493   : > { %3801 = vmatprep.subr.bf16.mxu0 %v6055_v61  ;;  %3842 = vmatprep.subr.bf16.mxu1 %v6183_v1  ;;  %v6254_v59 = vcombine.low %v2449_v55, %v2453_v57  ;;  %v6255_v60 = vcombine.high %v2449_v55, %v2453_v57  ;;  %v2313_v61 = vld [vmem:[#allocation28 + $0x300] sm:$0xff] }
 0x494   : > { %v2445_v1 = vld [vmem:[#allocation28 + $0x720] sm:$0xff]  ;;  %v6118_v3 = vcombine.low %v2313_v61, %v2317_v62 }
 0x496   : > { %3802 = vmatpush1.bf16.msra.mxu0 %v6054_v63  ;;  %3843 = vmatpush1.bf16.msra.mxu1 %v6182_v0  ;;  %v2441_v63 = vld [vmem:[#allocation28 + $0x700] sm:$0xff]  ;;  %v6119_v0 = vcombine.high %v2313_v61, %v2317_v62 }
 0x497   : > { %3803 = vmatprep.subr.bf16.mxu0 %v6047_v6  ;;  %3844 = vmatprep.subr.bf16.mxu1 %v6175_v10  ;;  %v6246_v4 = vcombine.low %v2441_v63, %v2445_v1  ;;  %v6247_v5 = vcombine.high %v2441_v63, %v2445_v1  ;;  %v2305_v6 = vld [vmem:[#allocation28 + $0x2c0] sm:$0xff] }
 0x498   : > { %v2437_v10 = vld [vmem:[#allocation28 + $0x6e0] sm:$0xff]  ;;  %v6110_v11 = vcombine.low %v2305_v6, %v2309_v7 }
 0x49a   : > { %3804 = vmatpush1.bf16.msra.mxu0 %v6046_v8  ;;  %3845 = vmatpush1.bf16.msra.mxu1 %v6174_v9  ;;  %v2433_v8 = vld [vmem:[#allocation28 + $0x6c0] sm:$0xff]  ;;  %v6111_v9 = vcombine.high %v2305_v6, %v2309_v7 }
 0x49b   : > { %3805 = vmatprep.subr.bf16.mxu0 %v6039_v14  ;;  %3846 = vmatprep.subr.bf16.mxu1 %v6167_v18  ;;  %v6238_v12 = vcombine.low %v2433_v8, %v2437_v10  ;;  %v6239_v13 = vcombine.high %v2433_v8, %v2437_v10  ;;  %v2297_v14 = vld [vmem:[#allocation28 + $0x280] sm:$0xff] }
 0x49c   : > { %v2429_v18 = vld [vmem:[#allocation28 + $0x6a0] sm:$0xff]  ;;  %v6102_v19 = vcombine.low %v2297_v14, %v2301_v15 }
 0x49e   : > { %3806 = vmatpush1.bf16.msra.mxu0 %v6038_v16  ;;  %3847 = vmatpush1.bf16.msra.mxu1 %v6166_v17  ;;  %v6103_v16 = vcombine.high %v2297_v14, %v2301_v15  ;;  %v2425_v17 = vld [vmem:[#allocation28 + $0x680] sm:$0xff] }
 0x49f   : > { %3807 = vmatprep.subr.bf16.mxu0 %v6031_v22  ;;  %3848 = vmatprep.subr.bf16.mxu1 %v6159_v26  ;;  %v6230_v20 = vcombine.low %v2425_v17, %v2429_v18  ;;  %v6231_v21 = vcombine.high %v2425_v17, %v2429_v18  ;;  %v2289_v22 = vld [vmem:[#allocation28 + $0x240] sm:$0xff] }
 0x4a0   : > { %v2421_v26 = vld [vmem:[#allocation28 + $0x660] sm:$0xff]  ;;  %v6094_v27 = vcombine.low %v2289_v22, %v2293_v23 }
 0x4a2   : > { %3808 = vmatpush1.bf16.msra.mxu0 %v6030_v24  ;;  %3849 = vmatpush1.bf16.msra.mxu1 %v6158_v25  ;;  %v2417_v24 = vld [vmem:[#allocation28 + $0x640] sm:$0xff]  ;;  %v6095_v25 = vcombine.high %v2289_v22, %v2293_v23 }
 0x4a3   : > { %3809 = vmatprep.subr.bf16.mxu0 %v6023_v31  ;;  %3850 = vmatprep.subr.bf16.mxu1 %v6151_v36  ;;  %v6222_v28 = vcombine.low %v2417_v24, %v2421_v26  ;;  %v6223_v29 = vcombine.high %v2417_v24, %v2421_v26  ;;  %v2281_v31 = vld [vmem:[#allocation28 + $0x200] sm:$0xff] }
 0x4a4   : > { %v6087_v36 = vcombine.high %v2281_v31, %v2285_v33 }
 0x4a6   : > { %3810 = vmatpush1.bf16.msra.mxu0 %v6022_v34  ;;  %3851 = vmatpush1.bf16.msra.mxu1 %v6150_v35  ;;  %v2409_v34 = vld [vmem:[#allocation28 + $0x600] sm:$0xff]  ;;  %v6086_v35 = vcombine.low %v2281_v31, %v2285_v33 }
 0x4a7   : > { %3811 = vmatprep.subr.bf16.mxu0 %v6143_v40  ;;  %3852 = vmatprep.subr.bf16.mxu1 %v6271_v44  ;;  %v6214_v38 = vcombine.low %v2409_v34, %v2413_v37  ;;  %v6215_v39 = vcombine.high %v2409_v34, %v2413_v37  ;;  %v8068_v40 = vld [vmem:[#allocation28 + $0x1c8] sm:$0xff] }
 0x4a8   : > { %v8076_v44 = vld [vmem:[#allocation28 + $0x5e8] sm:$0xff]  ;;  %v6080_v45 = vcombine.low %v8068_v40, %v8070_v41 }
 0x4aa   : > { %3812 = vmatpush2.bf16.msra.mxu0 %v6142_v42  ;;  %3853 = vmatpush2.bf16.msra.mxu1 %v6270_v43  ;;  %v8072_v42 = vld [vmem:[#allocation28 + $0x5c8] sm:$0xff]  ;;  %v6081_v43 = vcombine.high %v8068_v40, %v8070_v41 }
 0x4ab   : > { %3813 = vmatprep.subr.bf16.mxu0 %v6135_v48  ;;  %3854 = vmatprep.subr.bf16.mxu1 %v6263_v52  ;;  %v6208_v46 = vcombine.low %v8072_v42, %v8076_v44  ;;  %v6209_v47 = vcombine.high %v8072_v42, %v8076_v44  ;;  %v8085_v48 = vsub.s32 2, %v8028_v2 }
 0x4ad   : > { %v1662_v52 = vrot.slane %v1649_v49, %v8085_v48 }
 0x4ae   : > { %3814 = vmatpush2.bf16.msra.mxu0 %v6134_v50  ;;  %3855 = vmatpush2.bf16.msra.mxu1 %v6262_v51  ;;  %v8088_v50 = vsub.s32 3, %v8028_v2  ;;  %v1654_v51 = vrot.slane %v1649_v49, %v8057_v30 }
 0x4af   : > { %3815 = vmatprep.subr.bf16.mxu0 %v6127_v56  ;;  %3856 = vmatprep.subr.bf16.mxu1 %v6255_v60 }
 0x4b0   : > { %v1666_v54 = vrot.slane %v1649_v49, %v8088_v50 }
 0x4b2   : > { %3816 = vmatpush2.bf16.msra.mxu0 %v6126_v58  ;;  %3857 = vmatpush2.bf16.msra.mxu1 %v6254_v59 }
 0x4b3   : > { %3817 = vmatprep.subr.bf16.mxu0 %v6119_v0  ;;  %3858 = vmatprep.subr.bf16.mxu1 %v6247_v5 }
 0x4b6   : > { %3818 = vmatpush2.bf16.msra.mxu0 %v6118_v3  ;;  %3859 = vmatpush2.bf16.msra.mxu1 %v6246_v4 }
 0x4b7   : > { %3819 = vmatprep.subr.bf16.mxu0 %v6111_v9  ;;  %3860 = vmatprep.subr.bf16.mxu1 %v6239_v13 }
 0x4ba   : > { %3820 = vmatpush2.bf16.msra.mxu0 %v6110_v11  ;;  %3861 = vmatpush2.bf16.msra.mxu1 %v6238_v12 }
 0x4bb   : > { %3821 = vmatprep.subr.bf16.mxu0 %v6103_v16  ;;  %3862 = vmatprep.subr.bf16.mxu1 %v6231_v21 }
 0x4be   : > { %3822 = vmatpush2.bf16.msra.mxu0 %v6102_v19  ;;  %3863 = vmatpush2.bf16.msra.mxu1 %v6230_v20 }
 0x4bf   : > { %3823 = vmatprep.subr.bf16.mxu0 %v6095_v25  ;;  %3864 = vmatprep.subr.bf16.mxu1 %v6223_v29 }
 0x4c2   : > { %3824 = vmatpush2.bf16.msra.mxu0 %v6094_v27  ;;  %3865 = vmatpush2.bf16.msra.mxu1 %v6222_v28 }
 0x4c3   : > { %3825 = vmatprep.subr.bf16.mxu0 %v6087_v36  ;;  %3866 = vmatprep.subr.bf16.mxu1 %v6215_v39 }
 0x4c6   : > { %3826 = vmatpush2.bf16.msra.mxu0 %v6086_v35  ;;  %3867 = vmatpush2.bf16.msra.mxu1 %v6214_v38 }
 0x4c7   : > { %3877 = vmatprep.subr.bf16.mxu0 %v6081_v43  ;;  %3918 = vmatprep.subr.bf16.mxu1 %v6209_v47 }
 0x549   : > { %v2025_v55 = vpop.f32.mrf.mxu0  ;;  %v2066_v56 = vpop.f32.mrf.mxu1 }
 0x54a   : > { %v2026_v57 = vadd.f32 %v2025_v55, %v1654_v51  ;;  %v2067_v58 = vadd.f32 %v2066_v56, %v1662_v52 }
 0x54b   : > { %v2027_v59 = vpop.f32.mrf.mxu0  ;;  %v2068_v60 = vpop.f32.mrf.mxu1 }
 0x54c   : > { %v2073_v61 = vrot.slane %v2026_v57, 4  ;;  %v2085_v62 = vrot.slane %v2067_v58, 4  ;;  %v2028_v63 = vadd.f32 %v2027_v59, %v1658_v53  ;;  %v2069_v0 = vadd.f32 %v2068_v60, %v1666_v54 }
 0x54d   : > { %v2029_v1 = vpop.f32.mrf.mxu0  ;;  %v2070_v3 = vpop.f32.mrf.mxu1 }
 0x54e   : > { %v2074_v4 = vadd.f32 %v2073_v61, %v2026_v57  ;;  %v2086_v5 = vadd.f32 %v2085_v62, %v2067_v58  ;;  %v2079_v6 = vrot.slane %v2028_v63, 4  ;;  %v2091_v7 = vrot.slane %v2069_v0, 4 }
 0x54f   : > { %v2030_v8 = vpop.f32.mrf.mxu0  ;;  %v2071_v9 = vpop.f32.mrf.mxu1 }
 0x550   : > { %v2075_v10 = vrot.slane %v2074_v4, 2  ;;  %v2087_v11 = vrot.slane %v2086_v5, 2  ;;  %v2080_v12 = vadd.f32 %v2079_v6, %v2028_v63  ;;  %v2092_v13 = vadd.f32 %v2091_v7, %v2069_v0 }
 0x552   : > { %v2076_v14 = vadd.f32 %v2075_v10, %v2074_v4  ;;  %v2088_v15 = vadd.f32 %v2087_v11, %v2086_v5  ;;  %v2081_v16 = vrot.slane %v2080_v12, 2  ;;  %v2093_v17 = vrot.slane %v2092_v13, 2 }
 0x554   : > { %v2077_v18 = vrot.slane %v2076_v14, 1  ;;  %v2089_v19 = vrot.slane %v2088_v15, 1  ;;  %v2082_v20 = vadd.f32 %v2081_v16, %v2080_v12  ;;  %v2094_v21 = vadd.f32 %v2093_v17, %v2092_v13 }
 0x556   : > { %v2078_v22 = vadd.f32 %v2077_v18, %v2076_v14  ;;  %v2090_v23 = vadd.f32 %v2089_v19, %v2088_v15  ;;  %v2083_v24 = vrot.slane %v2082_v20, 1  ;;  %v2095_v25 = vrot.slane %v2094_v21, 1  ;;  %v2149_v19 = vld [vmem:[#allocation25] sm:$0xf] }
 0x558   : > { %v2097_v26 = vmul.f32 0.125, %v2078_v22  ;;  %v2099_v27 = vmul.f32 0.125, %v2090_v23  ;;  %v2084_v28 = vadd.f32 %v2083_v24, %v2082_v20  ;;  %v2096_v29 = vadd.f32 %v2095_v25, %v2094_v21  ;;  %v2175_v20 = vld [vmem:[#allocation27] sm:$0xf] }
 0x559   : > { %v2154_v21 = vrot.slane %v2149_v19, %v8057_v30  ;;  %v2162_v23 = vrot.slane %v2149_v19, %v8085_v48 }
 0x55a   : > { %v2101_v31 = vsub.f32 %v2026_v57, %v2097_v26  ;;  %v2103_v33 = vsub.f32 %v2067_v58, %v2099_v27  ;;  %v2098_v34 = vmul.f32 0.125, %v2084_v28  ;;  %v2100_v35 = vmul.f32 0.125, %v2096_v29 }
 0x55b   : > { %v2180_v26 = vrot.slane %v2175_v20, %v8057_v30  ;;  %v2158_v27 = vrot.slane %v2149_v19, %v8060_v32 }
 0x55c   : > { %v2105_v36 = vmul.f32 %v2101_v31, %v2101_v31  ;;  %v2107_v37 = vmul.f32 %v2103_v33, %v2103_v33  ;;  %v2102_v38 = vsub.f32 %v2028_v63, %v2098_v34  ;;  %v2104_v39 = vsub.f32 %v2069_v0, %v2100_v35 }
 0x55d   : > { %v2188_v34 = vrot.slane %v2175_v20, %v8085_v48  ;;  %v2166_v35 = vrot.slane %v2149_v19, %v8088_v50  ;;  %v2254_v19 = vld [vmem:[#allocation28 + $0x128] sm:$0xff] }
 0x55e   : > { %v2109_v43 = vrot.slane %v2105_v36, 4  ;;  %v2121_v47 = vrot.slane %v2107_v37, 4  ;;  %v2106_v49 = vmul.f32 %v2102_v38, %v2102_v38  ;;  %v2108_v51 = vmul.f32 %v2104_v39, %v2104_v39 }
 0x560   : > { %v2110_v52 = vadd.f32 %v2109_v43, %v2105_v36  ;;  %v2122_v53 = vadd.f32 %v2121_v47, %v2107_v37  ;;  %v2115_v54 = vrot.slane %v2106_v49, 4  ;;  %v2127_v55 = vrot.slane %v2108_v51, 4 }
 0x561   : > { %v2184_v47 = vrot.slane %v2175_v20, %v8060_v32 }
 0x562   : > { %v2111_v56 = vrot.slane %v2110_v52, 2  ;;  %v2123_v59 = vrot.slane %v2122_v53, 2  ;;  %v2116_v60 = vadd.f32 %v2115_v54, %v2106_v49  ;;  %v2128_v61 = vadd.f32 %v2127_v55, %v2108_v51 }
 0x564   : > { %v2112_v57 = vadd.f32 %v2111_v56, %v2110_v52  ;;  %v2124_v58 = vadd.f32 %v2123_v59, %v2122_v53  ;;  %v2117_v62 = vrot.slane %v2116_v60, 2  ;;  %v2129_v1 = vrot.slane %v2128_v61, 2 }
 0x565   : > { %v2192_v52 = vrot.slane %v2175_v20, %v8088_v50  ;;  %v2378_v20 = vld [vmem:[#allocation28 + $0x508] sm:$0xff] }
 0x566   : > { %v2113_v3 = vrot.slane %v2112_v57, 1  ;;  %v2125_v4 = vrot.slane %v2124_v58, 1  ;;  %v2118_v63 = vadd.f32 %v2117_v62, %v2116_v60  ;;  %v2130_v0 = vadd.f32 %v2129_v1, %v2128_v61  ;;  %v2270_v1 = vld [vmem:[#allocation28 + $0x1a8] sm:$0xff] }
 0x568   : > { %v2114_v5 = vadd.f32 %v2113_v3, %v2112_v57  ;;  %v2126_v6 = vadd.f32 %v2125_v4, %v2124_v58  ;;  %v2119_v7 = vrot.slane %v2118_v63, 1  ;;  %v2131_v8 = vrot.slane %v2130_v0, 1 }
 0x56a   : > { %v2133_v9 = vmul.f32 0.125, %v2114_v5  ;;  %v2135_v10 = vmul.f32 0.125, %v2126_v6  ;;  %v2120_v11 = vadd.f32 %v2119_v7, %v2118_v63  ;;  %v2132_v12 = vadd.f32 %v2131_v8, %v2130_v0  ;;  %v2394_v63 = vld [vmem:[#allocation28 + $0x588] sm:$0xff] }
 0x56b   : > { %v2398_v0 = vld [vmem:[#allocation28 + $0x5a8] sm:$0xff] }
 0x56c   : > { %v2137_v13 = vadd.f32 0.8, %v2133_v9  ;;  %v2139_v14 = vadd.f32 0.8, %v2135_v10  ;;  %v2134_v15 = vmul.f32 0.125, %v2120_v11  ;;  %v2136_v16 = vmul.f32 0.125, %v2132_v12 }
 0x56d   : > { %v2258_v9 = vld [vmem:[#allocation28 + $0x148] sm:$0xff]  ;;  %v6201_v11 = vcombine.high %v2394_v63, %v2398_v0 }
 0x56e   : > { %6738 = vrsqrt.f32 %v2137_v13  ;;  %v2138_v17 = vadd.f32 0.8, %v2134_v15  ;;  %v2140_v18 = vadd.f32 0.8, %v2136_v16  ;;  %v2262_v10 = vld [vmem:[#allocation28 + $0x168] sm:$0xff]  ;;  %v6200_v15 = vcombine.low %v2394_v63, %v2398_v0 }
 0x56f   : > { %6740 = vrsqrt.f32 %v2139_v14  ;;  %v2386_v12 = vld [vmem:[#allocation28 + $0x548] sm:$0xff]  ;;  %v6065_v16 = vcombine.high %v2258_v9, %v2262_v10  ;;  %v6064_v40 = vcombine.low %v2258_v9, %v2262_v10 }
 0x570   : > { %6742 = vrsqrt.f32 %v2138_v17  ;;  %v2390_v13 = vld [vmem:[#allocation28 + $0x568] sm:$0xff] }
 0x571   : > { %6744 = vrsqrt.f32 %v2140_v18  ;;  %v6193_v17 = vcombine.high %v2386_v12, %v2390_v13  ;;  %v2250_v18 = vld [vmem:[#allocation28 + $0x108] sm:$0xff]  ;;  %v6192_v41 = vcombine.low %v2386_v12, %v2390_v13 }
 0x572   : > { %v6057_v42 = vcombine.high %v2250_v18, %v2254_v19  ;;  %v2470_v63 = vld [vmem:[#allocation28 + $0x7e8] sm:$0xff] }
 0x573   : > { %v2334_v12 = vld [vmem:[#allocation28 + $0x3a8] sm:$0xff] }
 0x574   : > { %v2458_v13 = vld [vmem:[#allocation28 + $0x788] sm:$0xff] }
 0x57b   : > { %v6739_v22 = vpop.eup %6738 }
 0x57c   : > { %v6741_v24 = vpop.eup %6740  ;;  %v2145_v25 = vmul.f32 %v6739_v22, %v2101_v31  ;;  %v2370_v22 = vld [vmem:[#allocation28 + $0x4c8] sm:$0xff] }
 0x57d   : > { %v6743_v28 = vpop.eup %6742  ;;  %v2147_v29 = vmul.f32 %v6741_v24, %v2103_v33  ;;  %v6056_v24 = vcombine.low %v2250_v18, %v2254_v19  ;;  %v2322_v19 = vld [vmem:[#allocation28 + $0x348] sm:$0xff] }
 0x57e   : > { %v6745_v36 = vpop.eup %6744  ;;  %v2171_v37 = vmul.f32 %v2154_v21, %v2145_v25  ;;  %v2146_v43 = vmul.f32 %v6743_v28, %v2102_v38  ;;  %v2382_v21 = vld [vmem:[#allocation28 + $0x528] sm:$0xff] }
 0x57f   : > { %v2173_v49 = vmul.f32 %v2162_v23, %v2147_v29  ;;  %v2148_v51 = vmul.f32 %v6745_v36, %v2104_v39  ;;  %v2266_v39 = vld [vmem:[#allocation28 + $0x188] sm:$0xff]  ;;  %v6185_v44 = vcombine.high %v2378_v20, %v2382_v21  ;;  %v6184_v25 = vcombine.low %v2378_v20, %v2382_v21 }
 0x580   : > { %v2197_v31 = vadd.f32 %v2180_v26, %v2171_v37  ;;  %v2172_v53 = vmul.f32 %v2158_v27, %v2146_v43  ;;  %v6073_v8 = vcombine.high %v2266_v39, %v2270_v1  ;;  %v6072_v14 = vcombine.low %v2266_v39, %v2270_v1  ;;  %v2374_v23 = vld [vmem:[#allocation28 + $0x4e8] sm:$0xff] }
 0x581   : > { %v2199_v54 = vadd.f32 %v2188_v34, %v2173_v49  ;;  %v2174_v55 = vmul.f32 %v2166_v35, %v2148_v51  ;;  %v6177_v27 = vcombine.high %v2370_v22, %v2374_v23  ;;  %v2234_v28 = vld [vmem:[#allocation28 + $0x88] sm:$0xff]  ;;  %v6176_v37 = vcombine.low %v2370_v22, %v2374_v23 }
 0x582   : > { %v2198_v56 = vadd.f32 %v2184_v47, %v2172_v53  ;;  %vm2201_vm15 = vcmp.ge.f32.partialorder %v2197_v31, 0.0  ;;  %v2205_v33 = vmul.f32 0.2, %v2197_v31  ;;  %v2238_v29 = vld [vmem:[#allocation28 + $0xa8] sm:$0xff] }
 0x583   : > { %v2200_v59 = vadd.f32 %v2192_v52, %v2174_v55  ;;  %vm2203_vm0 = vcmp.ge.f32.partialorder %v2199_v54, 0.0  ;;  %v2207_v60 = vmul.f32 0.2, %v2199_v54  ;;  %v2362_v34 = vld [vmem:[#allocation28 + $0x488] sm:$0xff]  ;;  %v6041_v43 = vcombine.high %v2234_v28, %v2238_v29 }
 0x584   : > { %vm2202_vm1 = vcmp.ge.f32.partialorder %v2198_v56, 0.0  ;;  %v2206_v61 = vmul.f32 0.2, %v2198_v56  ;;  %v2209_v57 = vsel %vm2201_vm15, %v2197_v31, %v2205_v33  ;;  %v2366_v35 = vld [vmem:[#allocation28 + $0x4a8] sm:$0xff]  ;;  %v6040_v53 = vcombine.low %v2234_v28, %v2238_v29 }
 0x585   : > { %vm2204_vm2 = vcmp.ge.f32.partialorder %v2200_v59, 0.0  ;;  %v2208_v38 = vmul.f32 0.2, %v2200_v59  ;;  %v2211_v62 = vsel %vm2203_vm0, %v2199_v54, %v2207_v60  ;;  %v8106_v6 = vpack.c.bf16 %v2209_v57, %v2209_v57  ;;  %v2226_v49 = vld [vmem:[#allocation28 + $0x48] sm:$0xff] }
 0x586   : > { %v2210_v58 = vsel %vm2202_vm1, %v2198_v56, %v2206_v61  ;;  %v8109_v7 = vpack.c.bf16 %v2211_v62, %v2211_v62  ;;  %v6169_v47 = vcombine.high %v2362_v34, %v2366_v35  ;;  %v2230_v51 = vld [vmem:[#allocation28 + $0x68] sm:$0xff]  ;;  %v6168_v54 = vcombine.low %v2362_v34, %v2366_v35 }
 0x587   : > { %v8102_v3 = vpack.c.bf16 %v2210_v58, %v2210_v58  ;;  %v2212_v4 = vsel %vm2204_vm2, %v2200_v59, %v2208_v38  ;;  %v2354_v52 = vld [vmem:[#allocation28 + $0x448] sm:$0xff]  ;;  %v6033_v55 = vcombine.high %v2226_v49, %v2230_v51  ;;  %v6032_v38 = vcombine.low %v2226_v49, %v2230_v51 }
 0x588   : > { %v8104_v5 = vpack.c.bf16 %v2212_v4, %v2212_v4  ;;  %v2358_v31 = vld [vmem:[#allocation28 + $0x468] sm:$0xff] }
 0x589   : > { %3827 = vmatprep.mubr.bf16.mxu0 %v8102_v3  ;;  %v6161_v56 = vcombine.high %v2354_v52, %v2358_v31  ;;  %v2218_v33 = vld [vmem:[#allocation28 + $0x8] sm:$0xff]  ;;  %v6160_v57 = vcombine.low %v2354_v52, %v2358_v31 }
 0x58a   : > { %3868 = vmatprep.mubr.bf16.mxu1 %v8104_v5  ;;  %3828 = vmatmul.mubr.bf16.vlgmr.msra.gmra.mxu0 %v8106_v6  ;;  %v2222_v59 = vld [vmem:[#allocation28 + $0x28] sm:$0xff] }
 0x58b   : > { %3869 = vmatmul.mubr.bf16.vlgmr.msra.gmra.mxu1 %v8109_v7  ;;  %3878 = vmatpush1.bf16.msra.mxu0 %v6080_v45  ;;  %v2242_v45 = vld [vmem:[#allocation28 + $0xc8] sm:$0xff]  ;;  %v6025_v58 = vcombine.high %v2218_v33, %v2222_v59  ;;  %v6024_v0 = vcombine.low %v2218_v33, %v2222_v59 }
 0x58c   : > { %3919 = vmatpush1.bf16.msra.mxu1 %v6208_v46  ;;  %3909 = vmatprep.mubr.bf16.mxu0 %v8102_v3  ;;  %v2246_v46 = vld [vmem:[#allocation28 + $0xe8] sm:$0xff] }
 0x58d   : > { %3950 = vmatprep.mubr.bf16.mxu1 %v8104_v5  ;;  %3879 = vmatprep.subr.bf16.mxu0 %v6073_v8  ;;  %v6049_v26 = vcombine.high %v2242_v45, %v2246_v46  ;;  %v6048_v36 = vcombine.low %v2242_v45, %v2246_v46  ;;  %v2346_v60 = vld [vmem:[#allocation28 + $0x408] sm:$0xff] }
 0x58e   : > { %3920 = vmatprep.subr.bf16.mxu1 %v6201_v11  ;;  %v2350_v61 = vld [vmem:[#allocation28 + $0x428] sm:$0xff] }
 0x58f   : > { %3880 = vmatpush1.bf16.msra.mxu0 %v6072_v14  ;;  %v6153_v62 = vcombine.high %v2346_v60, %v2350_v61  ;;  %v2338_v39 = vld [vmem:[#allocation28 + $0x3c8] sm:$0xff]  ;;  %v6152_v8 = vcombine.low %v2346_v60, %v2350_v61 }
 0x590   : > { %3921 = vmatpush1.bf16.msra.mxu1 %v6200_v15  ;;  %3881 = vmatprep.subr.bf16.mxu0 %v6065_v16  ;;  %v2342_v1 = vld [vmem:[#allocation28 + $0x3e8] sm:$0xff] }
 0x591   : > { %3922 = vmatprep.subr.bf16.mxu1 %v6193_v17  ;;  %v2466_v4 = vld [vmem:[#allocation28 + $0x7c8] sm:$0xff]  ;;  %v6145_v9 = vcombine.high %v2338_v39, %v2342_v1  ;;  %v6144_v15 = vcombine.low %v2338_v39, %v2342_v1 }
 0x592   : > { %v6273_v10 = vcombine.high %v2466_v4, %v2470_v63  ;;  %v2330_v11 = vld [vmem:[#allocation28 + $0x388] sm:$0xff]  ;;  %v6272_v16 = vcombine.low %v2466_v4, %v2470_v63 }
 0x593   : > { %3882 = vmatpush1.bf16.msra.mxu0 %v6064_v40  ;;  %v2462_v14 = vld [vmem:[#allocation28 + $0x7a8] sm:$0xff]  ;;  %v6137_v17 = vcombine.high %v2330_v11, %v2334_v12 }
 0x594   : > { %3923 = vmatpush1.bf16.msra.mxu1 %v6192_v41  ;;  %3883 = vmatprep.subr.bf16.mxu0 %v6057_v42  ;;  %v6265_v18 = vcombine.high %v2458_v13, %v2462_v14  ;;  %v2326_v20 = vld [vmem:[#allocation28 + $0x368] sm:$0xff]  ;;  %v6136_v41 = vcombine.low %v2330_v11, %v2334_v12  ;;  %v6264_v42 = vcombine.low %v2458_v13, %v2462_v14  ;;  %v2275_v12 = vld [vmem:[#allocation28 + $0x1d0] sm:$0xff] }
 0x595   : > { %3924 = vmatprep.subr.bf16.mxu1 %v6185_v44  ;;  %v2450_v21 = vld [vmem:[#allocation28 + $0x748] sm:$0xff]  ;;  %v6129_v44 = vcombine.high %v2322_v19, %v2326_v20  ;;  %v2279_v13 = vld [vmem:[#allocation28 + $0x1f0] sm:$0xff] }
 0x596   : > { %v2454_v40 = vld [vmem:[#allocation28 + $0x768] sm:$0xff]  ;;  %v2403_v14 = vld [vmem:[#allocation28 + $0x5d0] sm:$0xff] }
 0x597   : > { %3884 = vmatpush1.bf16.msra.mxu0 %v6056_v24  ;;  %v6257_v45 = vcombine.high %v2450_v21, %v2454_v40  ;;  %v2314_v46 = vld [vmem:[#allocation28 + $0x308] sm:$0xff] }
 0x598   : > { %3925 = vmatpush1.bf16.msra.mxu1 %v6184_v25  ;;  %3885 = vmatprep.subr.bf16.mxu0 %v6049_v26  ;;  %v2318_v22 = vld [vmem:[#allocation28 + $0x328] sm:$0xff]  ;;  %v6128_v25 = vcombine.low %v2322_v19, %v2326_v20  ;;  %v6256_v26 = vcombine.low %v2450_v21, %v2454_v40  ;;  %v2267_v20 = vld [vmem:[#allocation28 + $0x190] sm:$0xff]  ;;  %v6082_v40 = vcombine.low %v2275_v12, %v2279_v13 }
 0x599   : > { %3926 = vmatprep.subr.bf16.mxu1 %v6177_v27  ;;  %v2442_v23 = vld [vmem:[#allocation28 + $0x708] sm:$0xff]  ;;  %v6121_v27 = vcombine.high %v2314_v46, %v2318_v22  ;;  %v2271_v21 = vld [vmem:[#allocation28 + $0x1b0] sm:$0xff] }
 0x59a   : > { %v2446_v24 = vld [vmem:[#allocation28 + $0x728] sm:$0xff] }
 0x59b   : > { %3886 = vmatpush1.bf16.msra.mxu0 %v6048_v36  ;;  %v6249_v28 = vcombine.high %v2442_v23, %v2446_v24  ;;  %v2306_v29 = vld [vmem:[#allocation28 + $0x2c8] sm:$0xff] }
 0x59c   : > { %3927 = vmatpush1.bf16.msra.mxu1 %v6176_v37  ;;  %3887 = vmatprep.subr.bf16.mxu0 %v6041_v43  ;;  %v2310_v34 = vld [vmem:[#allocation28 + $0x2e8] sm:$0xff]  ;;  %v6120_v37 = vcombine.low %v2314_v46, %v2318_v22  ;;  %v6248_v43 = vcombine.low %v2442_v23, %v2446_v24  ;;  %v2259_v46 = vld [vmem:[#allocation28 + $0x150] sm:$0xff] }
 0x59d   : > { %3928 = vmatprep.subr.bf16.mxu1 %v6169_v47  ;;  %v2434_v35 = vld [vmem:[#allocation28 + $0x6c8] sm:$0xff]  ;;  %v6113_v47 = vcombine.high %v2306_v29, %v2310_v34  ;;  %v2263_v22 = vld [vmem:[#allocation28 + $0x170] sm:$0xff] }
 0x59e   : > { %v2438_v36 = vld [vmem:[#allocation28 + $0x6e8] sm:$0xff]  ;;  %v2387_v24 = vld [vmem:[#allocation28 + $0x550] sm:$0xff] }
 0x59f   : > { %3888 = vmatpush1.bf16.msra.mxu0 %v6040_v53  ;;  %v6241_v49 = vcombine.high %v2434_v35, %v2438_v36  ;;  %v2298_v51 = vld [vmem:[#allocation28 + $0x288] sm:$0xff] }
 0x5a0   : > { %3929 = vmatpush1.bf16.msra.mxu1 %v6168_v54  ;;  %3889 = vmatprep.subr.bf16.mxu0 %v6033_v55  ;;  %v2302_v52 = vld [vmem:[#allocation28 + $0x2a8] sm:$0xff]  ;;  %v6112_v54 = vcombine.low %v2306_v29, %v2310_v34  ;;  %v6240_v55 = vcombine.low %v2434_v35, %v2438_v36  ;;  %v2251_v34 = vld [vmem:[#allocation28 + $0x110] sm:$0xff] }
 0x5a1   : > { %3930 = vmatprep.subr.bf16.mxu1 %v6161_v56  ;;  %v2426_v31 = vld [vmem:[#allocation28 + $0x688] sm:$0xff]  ;;  %v6105_v56 = vcombine.high %v2298_v51, %v2302_v52  ;;  %v2255_v35 = vld [vmem:[#allocation28 + $0x130] sm:$0xff] }
 0x5a2   : > { %v2430_v53 = vld [vmem:[#allocation28 + $0x6a8] sm:$0xff]  ;;  %v2379_v36 = vld [vmem:[#allocation28 + $0x510] sm:$0xff] }
 0x5a3   : > { %3890 = vmatpush1.bf16.msra.mxu0 %v6032_v38  ;;  %v6233_v33 = vcombine.high %v2426_v31, %v2430_v53  ;;  %v2290_v59 = vld [vmem:[#allocation28 + $0x248] sm:$0xff] }
 0x5a4   : > { %3931 = vmatpush1.bf16.msra.mxu1 %v6160_v57  ;;  %3891 = vmatprep.subr.bf16.mxu0 %v6025_v58  ;;  %v2294_v60 = vld [vmem:[#allocation28 + $0x268] sm:$0xff]  ;;  %v6104_v57 = vcombine.low %v2298_v51, %v2302_v52  ;;  %v6232_v58 = vcombine.low %v2426_v31, %v2430_v53  ;;  %v2243_v52 = vld [vmem:[#allocation28 + $0xd0] sm:$0xff] }
 0x5a5   : > { %3932 = vmatprep.subr.bf16.mxu1 %v6153_v62  ;;  %v2418_v61 = vld [vmem:[#allocation28 + $0x648] sm:$0xff]  ;;  %v6097_v62 = vcombine.high %v2290_v59, %v2294_v60  ;;  %v2247_v31 = vld [vmem:[#allocation28 + $0xf0] sm:$0xff] }
 0x5a6   : > { %v2422_v38 = vld [vmem:[#allocation28 + $0x668] sm:$0xff]  ;;  %v2371_v53 = vld [vmem:[#allocation28 + $0x4d0] sm:$0xff] }
 0x5a7   : > { %3892 = vmatpush1.bf16.msra.mxu0 %v6024_v0  ;;  %v6225_v39 = vcombine.high %v2418_v61, %v2422_v38  ;;  %v2282_v1 = vld [vmem:[#allocation28 + $0x208] sm:$0xff] }
 0x5a8   : > { %3933 = vmatpush1.bf16.msra.mxu1 %v6152_v8  ;;  %3893 = vmatprep.subr.bf16.mxu0 %v6145_v9  ;;  %v2286_v4 = vld [vmem:[#allocation28 + $0x228] sm:$0xff]  ;;  %v6096_v8 = vcombine.low %v2290_v59, %v2294_v60  ;;  %v6224_v9 = vcombine.low %v2418_v61, %v2422_v38  ;;  %v2235_v60 = vld [vmem:[#allocation28 + $0x90] sm:$0xff] }
 0x5a9   : > { %3934 = vmatprep.subr.bf16.mxu1 %v6273_v10  ;;  %v2410_v63 = vld [vmem:[#allocation28 + $0x608] sm:$0xff]  ;;  %v6089_v10 = vcombine.high %v2282_v1, %v2286_v4  ;;  %v2239_v61 = vld [vmem:[#allocation28 + $0xb0] sm:$0xff] }
 0x5aa   : > { %v2414_v0 = vld [vmem:[#allocation28 + $0x628] sm:$0xff]  ;;  %v2363_v38 = vld [vmem:[#allocation28 + $0x490] sm:$0xff] }
 0x5ab   : > { %3894 = vmatpush2.bf16.msra.mxu0 %v6144_v15  ;;  %v6217_v11 = vcombine.high %v2410_v63, %v2414_v0  ;;  %v2407_v15 = vld [vmem:[#allocation28 + $0x5f0] sm:$0xff] }
 0x5ac   : > { %3935 = vmatpush2.bf16.msra.mxu1 %v6272_v16  ;;  %3895 = vmatprep.subr.bf16.mxu0 %v6137_v17  ;;  %v6088_v16 = vcombine.low %v2282_v1, %v2286_v4  ;;  %v6216_v17 = vcombine.low %v2410_v63, %v2414_v0  ;;  %v6211_v19 = vcombine.high %v2403_v14, %v2407_v15  ;;  %v2227_v4 = vld [vmem:[#allocation28 + $0x50] sm:$0xff] }
 0x5ad   : > { %3936 = vmatprep.subr.bf16.mxu1 %v6265_v18  ;;  %v6083_v18 = vcombine.high %v2275_v12, %v2279_v13  ;;  %v2231_v63 = vld [vmem:[#allocation28 + $0x70] sm:$0xff] }
 0x5ae   : > { %v2355_v0 = vld [vmem:[#allocation28 + $0x450] sm:$0xff] }
 0x5af   : > { %3896 = vmatpush2.bf16.msra.mxu0 %v6136_v41  ;;  %v2395_v41 = vld [vmem:[#allocation28 + $0x590] sm:$0xff] }
 0x5b0   : > { %3937 = vmatpush2.bf16.msra.mxu1 %v6264_v42  ;;  %3897 = vmatprep.subr.bf16.mxu0 %v6129_v44  ;;  %v2399_v42 = vld [vmem:[#allocation28 + $0x5b0] sm:$0xff]  ;;  %v6210_v44 = vcombine.low %v2403_v14, %v2407_v15 }
 0x5b1   : > { %3938 = vmatprep.subr.bf16.mxu1 %v6257_v45  ;;  %v6075_v45 = vcombine.high %v2267_v20, %v2271_v21  ;;  %v6203_v23 = vcombine.high %v2395_v41, %v2399_v42  ;;  %v2219_v13 = vld [vmem:[#allocation28 + $0x10] sm:$0xff] }
 0x5b2   : > { %v2223_v14 = vld [vmem:[#allocation28 + $0x30] sm:$0xff] }
 0x5b3   : > { %3898 = vmatpush2.bf16.msra.mxu0 %v6128_v25  ;;  %v2391_v25 = vld [vmem:[#allocation28 + $0x570] sm:$0xff] }
 0x5b4   : > { %3939 = vmatpush2.bf16.msra.mxu1 %v6256_v26  ;;  %3899 = vmatprep.subr.bf16.mxu0 %v6121_v27  ;;  %v6074_v26 = vcombine.low %v2267_v20, %v2271_v21  ;;  %v6202_v27 = vcombine.low %v2395_v41, %v2399_v42  ;;  %v6195_v29 = vcombine.high %v2387_v24, %v2391_v25  ;;  %v2347_v15 = vld [vmem:[#allocation28 + $0x410] sm:$0xff] }
 0x5b5   : > { %3940 = vmatprep.subr.bf16.mxu1 %v6249_v28  ;;  %v6067_v28 = vcombine.high %v2259_v46, %v2263_v22  ;;  %v2339_v21 = vld [vmem:[#allocation28 + $0x3d0] sm:$0xff] }
 0x5b6   : > { %v2467_v41 = vld [vmem:[#allocation28 + $0x7d0] sm:$0xff] }
 0x5b7   : > { %3900 = vmatpush2.bf16.msra.mxu0 %v6120_v37  ;;  %v2383_v37 = vld [vmem:[#allocation28 + $0x530] sm:$0xff] }
 0x5b8   : > { %3941 = vmatpush2.bf16.msra.mxu1 %v6248_v43  ;;  %3901 = vmatprep.subr.bf16.mxu0 %v6113_v47  ;;  %v6066_v43 = vcombine.low %v2259_v46, %v2263_v22  ;;  %v6194_v47 = vcombine.low %v2387_v24, %v2391_v25  ;;  %v6187_v51 = vcombine.high %v2379_v36, %v2383_v37  ;;  %v2471_v42 = vld [vmem:[#allocation28 + $0x7f0] sm:$0xff] }
 0x5b9   : > { %3942 = vmatprep.subr.bf16.mxu1 %v6241_v49  ;;  %v6059_v49 = vcombine.high %v2251_v34, %v2255_v35  ;;  %v6275_v22 = vcombine.high %v2467_v41, %v2471_v42  ;;  %v2335_v24 = vld [vmem:[#allocation28 + $0x3b0] sm:$0xff] }
 0x5ba   : > { %v2459_v25 = vld [vmem:[#allocation28 + $0x790] sm:$0xff] }
 0x5bb   : > { %3902 = vmatpush2.bf16.msra.mxu0 %v6112_v54  ;;  %v2375_v54 = vld [vmem:[#allocation28 + $0x4f0] sm:$0xff] }
 0x5bc   : > { %3943 = vmatpush2.bf16.msra.mxu1 %v6240_v55  ;;  %3903 = vmatprep.subr.bf16.mxu0 %v6105_v56  ;;  %v6058_v55 = vcombine.low %v2251_v34, %v2255_v35  ;;  %v6186_v56 = vcombine.low %v2379_v36, %v2383_v37  ;;  %v6179_v59 = vcombine.high %v2371_v53, %v2375_v54  ;;  %v2323_v35 = vld [vmem:[#allocation28 + $0x350] sm:$0xff] }
 0x5bd   : > { %3944 = vmatprep.subr.bf16.mxu1 %v6233_v33  ;;  %v6051_v33 = vcombine.high %v2243_v52, %v2247_v31  ;;  %v2327_v36 = vld [vmem:[#allocation28 + $0x370] sm:$0xff] }
 0x5be   : > { %v2451_v37 = vld [vmem:[#allocation28 + $0x750] sm:$0xff] }
 0x5bf   : > { %3904 = vmatpush2.bf16.msra.mxu0 %v6104_v57  ;;  %v2367_v57 = vld [vmem:[#allocation28 + $0x4b0] sm:$0xff] }
 0x5c0   : > { %3945 = vmatpush2.bf16.msra.mxu1 %v6232_v58  ;;  %3905 = vmatprep.subr.bf16.mxu0 %v6097_v62  ;;  %v6050_v58 = vcombine.low %v2243_v52, %v2247_v31  ;;  %v6178_v62 = vcombine.low %v2371_v53, %v2375_v54  ;;  %v6171_v1 = vcombine.high %v2363_v38, %v2367_v57  ;;  %v2315_v31 = vld [vmem:[#allocation28 + $0x310] sm:$0xff] }
 0x5c1   : > { %3946 = vmatprep.subr.bf16.mxu1 %v6225_v39  ;;  %v6043_v39 = vcombine.high %v2235_v60, %v2239_v61  ;;  %v2319_v53 = vld [vmem:[#allocation28 + $0x330] sm:$0xff] }
 0x5c2   : > { %v2443_v54 = vld [vmem:[#allocation28 + $0x710] sm:$0xff] }
 0x5c3   : > { %3906 = vmatpush2.bf16.msra.mxu0 %v6096_v8  ;;  %v2359_v8 = vld [vmem:[#allocation28 + $0x470] sm:$0xff] }
 0x5c4   : > { %3947 = vmatpush2.bf16.msra.mxu1 %v6224_v9  ;;  %3907 = vmatprep.subr.bf16.mxu0 %v6089_v10  ;;  %v6042_v9 = vcombine.low %v2235_v60, %v2239_v61  ;;  %v6170_v10 = vcombine.low %v2363_v38, %v2367_v57  ;;  %v6163_v12 = vcombine.high %v2355_v0, %v2359_v8  ;;  %v2307_v61 = vld [vmem:[#allocation28 + $0x2d0] sm:$0xff] }
 0x5c5   : > { %3948 = vmatprep.subr.bf16.mxu1 %v6217_v11  ;;  %v6035_v11 = vcombine.high %v2227_v4, %v2231_v63  ;;  %v2311_v38 = vld [vmem:[#allocation28 + $0x2f0] sm:$0xff] }
 0x5c6   : > { %v2435_v57 = vld [vmem:[#allocation28 + $0x6d0] sm:$0xff] }
 0x5c7   : > { %3908 = vmatpush2.bf16.msra.mxu0 %v6088_v16  ;;  %v2351_v16 = vld [vmem:[#allocation28 + $0x430] sm:$0xff] }
 0x5c8   : > { %3949 = vmatpush2.bf16.msra.mxu1 %v6216_v17  ;;  %3959 = vmatprep.subr.bf16.mxu0 %v6083_v18  ;;  %v6034_v17 = vcombine.low %v2227_v4, %v2231_v63  ;;  %v6162_v18 = vcombine.low %v2355_v0, %v2359_v8  ;;  %v6155_v20 = vcombine.high %v2347_v15, %v2351_v16  ;;  %v2299_v63 = vld [vmem:[#allocation28 + $0x290] sm:$0xff] }
 0x5c9   : > { %4000 = vmatprep.subr.bf16.mxu1 %v6211_v19  ;;  %v6027_v19 = vcombine.high %v2219_v13, %v2223_v14  ;;  %v2303_v0 = vld [vmem:[#allocation28 + $0x2b0] sm:$0xff] }
 0x5ca   : > { %3910 = vmatmul.mubr.bf16.vlgmr.msra.gmra.mxu0 %v8106_v6  ;;  %v2427_v8 = vld [vmem:[#allocation28 + $0x690] sm:$0xff] }
 0x5cb   : > { %3951 = vmatmul.mubr.bf16.vlgmr.msra.gmra.mxu1 %v8109_v7  ;;  %3960 = vmatpush1.bf16.msra.mxu0 %v6082_v40  ;;  %v2343_v40 = vld [vmem:[#allocation28 + $0x3f0] sm:$0xff] }
 0x5cc   : > { %3991 = vmatprep.mubr.bf16.mxu0 %v8102_v3  ;;  %4001 = vmatpush1.bf16.msra.mxu1 %v6210_v44  ;;  %v6026_v44 = vcombine.low %v2219_v13, %v2223_v14  ;;  %v6147_v46 = vcombine.high %v2339_v21, %v2343_v40  ;;  %v2291_v14 = vld [vmem:[#allocation28 + $0x250] sm:$0xff] }
 0x5cd   : > { %4032 = vmatprep.mubr.bf16.mxu1 %v8104_v5  ;;  %3961 = vmatprep.subr.bf16.mxu0 %v6075_v45  ;;  %v6154_v45 = vcombine.low %v2347_v15, %v2351_v16  ;;  %v2295_v15 = vld [vmem:[#allocation28 + $0x270] sm:$0xff] }
 0x5ce   : > { %4002 = vmatprep.subr.bf16.mxu1 %v6203_v23  ;;  %v2331_v23 = vld [vmem:[#allocation28 + $0x390] sm:$0xff] }
 0x5cf   : > { %3962 = vmatpush1.bf16.msra.mxu0 %v6074_v26  ;;  %v2463_v26 = vld [vmem:[#allocation28 + $0x7b0] sm:$0xff] }
 0x5d0   : > { %4003 = vmatpush1.bf16.msra.mxu1 %v6202_v27  ;;  %3963 = vmatprep.subr.bf16.mxu0 %v6067_v28  ;;  %v6146_v27 = vcombine.low %v2339_v21, %v2343_v40  ;;  %v6274_v28 = vcombine.low %v2467_v41, %v2471_v42  ;;  %v6267_v34 = vcombine.high %v2459_v25, %v2463_v26  ;;  %v2419_v16 = vld [vmem:[#allocation28 + $0x650] sm:$0xff] }
 0x5d1   : > { %4004 = vmatprep.subr.bf16.mxu1 %v6195_v29  ;;  %v6139_v29 = vcombine.high %v2331_v23, %v2335_v24  ;;  %v2283_v40 = vld [vmem:[#allocation28 + $0x210] sm:$0xff] }
 0x5d2   : > { %v2287_v41 = vld [vmem:[#allocation28 + $0x230] sm:$0xff] }
 0x5d3   : > { %3964 = vmatpush1.bf16.msra.mxu0 %v6066_v43  ;;  %v2455_v43 = vld [vmem:[#allocation28 + $0x770] sm:$0xff] }
 0x5d4   : > { %4005 = vmatpush1.bf16.msra.mxu1 %v6194_v47  ;;  %3965 = vmatprep.subr.bf16.mxu0 %v6059_v49  ;;  %v6138_v47 = vcombine.low %v2331_v23, %v2335_v24  ;;  %v6266_v49 = vcombine.low %v2459_v25, %v2463_v26  ;;  %v6259_v52 = vcombine.high %v2451_v37, %v2455_v43  ;;  %v2411_v42 = vld [vmem:[#allocation28 + $0x610] sm:$0xff]  ;;  %v2276_v24 = vld [vmem:[#allocation28 + $0x1d8] sm:$0xff] }
 0x5d5   : > { %4006 = vmatprep.subr.bf16.mxu1 %v6187_v51  ;;  %v6131_v51 = vcombine.high %v2323_v35, %v2327_v36  ;;  %v2280_v25 = vld [vmem:[#allocation28 + $0x1f8] sm:$0xff] }
 0x5d6   : > { %v2404_v26 = vld [vmem:[#allocation28 + $0x5d8] sm:$0xff] }
 0x5d7   : > { %3966 = vmatpush1.bf16.msra.mxu0 %v6058_v55  ;;  %v2447_v55 = vld [vmem:[#allocation28 + $0x730] sm:$0xff] }
 0x5d8   : > { %4007 = vmatpush1.bf16.msra.mxu1 %v6186_v56  ;;  %3967 = vmatprep.subr.bf16.mxu0 %v6051_v33  ;;  %v6130_v56 = vcombine.low %v2323_v35, %v2327_v36  ;;  %v6258_v33 = vcombine.low %v2451_v37, %v2455_v43  ;;  %v6251_v60 = vcombine.high %v2443_v54, %v2447_v55  ;;  %v2268_v36 = vld [vmem:[#allocation28 + $0x198] sm:$0xff] }
 0x5d9   : > { %4008 = vmatprep.subr.bf16.mxu1 %v6179_v59  ;;  %v6123_v59 = vcombine.high %v2315_v31, %v2319_v53  ;;  %v2272_v37 = vld [vmem:[#allocation28 + $0x1b8] sm:$0xff]  ;;  %v6084_v43 = vcombine.low %v2276_v24, %v2280_v25 }
 0x5db   : > { %3968 = vmatpush1.bf16.msra.mxu0 %v6050_v58  ;;  %v2439_v58 = vld [vmem:[#allocation28 + $0x6f0] sm:$0xff] }
 0x5dc   : > { %4009 = vmatpush1.bf16.msra.mxu1 %v6178_v62  ;;  %3969 = vmatprep.subr.bf16.mxu0 %v6043_v39  ;;  %v6122_v62 = vcombine.low %v2315_v31, %v2319_v53  ;;  %v6250_v39 = vcombine.low %v2443_v54, %v2447_v55  ;;  %v6243_v4 = vcombine.high %v2435_v57, %v2439_v58  ;;  %v2260_v31 = vld [vmem:[#allocation28 + $0x158] sm:$0xff] }
 0x5dd   : > { %4010 = vmatprep.subr.bf16.mxu1 %v6171_v1  ;;  %v6115_v1 = vcombine.high %v2307_v61, %v2311_v38  ;;  %v2264_v53 = vld [vmem:[#allocation28 + $0x178] sm:$0xff] }
 0x5de   : > { %v2388_v55 = vld [vmem:[#allocation28 + $0x558] sm:$0xff] }
 0x5df   : > { %3970 = vmatpush1.bf16.msra.mxu0 %v6042_v9  ;;  %v2431_v9 = vld [vmem:[#allocation28 + $0x6b0] sm:$0xff] }
 0x5e0   : > { %4011 = vmatpush1.bf16.msra.mxu1 %v6170_v10  ;;  %3971 = vmatprep.subr.bf16.mxu0 %v6035_v11  ;;  %v6114_v10 = vcombine.low %v2307_v61, %v2311_v38  ;;  %v6242_v11 = vcombine.low %v2435_v57, %v2439_v58  ;;  %v6235_v13 = vcombine.high %v2427_v8, %v2431_v9  ;;  %v2252_v38 = vld [vmem:[#allocation28 + $0x118] sm:$0xff] }
 0x5e1   : > { %4012 = vmatprep.subr.bf16.mxu1 %v6163_v12  ;;  %v6107_v12 = vcombine.high %v2299_v63, %v2303_v0  ;;  %v2256_v57 = vld [vmem:[#allocation28 + $0x138] sm:$0xff] }
 0x5e2   : > { %v2380_v58 = vld [vmem:[#allocation28 + $0x518] sm:$0xff] }
 0x5e3   : > { %3972 = vmatpush1.bf16.msra.mxu0 %v6034_v17  ;;  %v2423_v17 = vld [vmem:[#allocation28 + $0x670] sm:$0xff] }
 0x5e4   : > { %4013 = vmatpush1.bf16.msra.mxu1 %v6162_v18  ;;  %3973 = vmatprep.subr.bf16.mxu0 %v6027_v19  ;;  %v6106_v18 = vcombine.low %v2299_v63, %v2303_v0  ;;  %v6234_v19 = vcombine.low %v2427_v8, %v2431_v9  ;;  %v6227_v21 = vcombine.high %v2419_v16, %v2423_v17  ;;  %v2244_v63 = vld [vmem:[#allocation28 + $0xd8] sm:$0xff] }
 0x5e5   : > { %4014 = vmatprep.subr.bf16.mxu1 %v6155_v20  ;;  %v6099_v20 = vcombine.high %v2291_v14, %v2295_v15  ;;  %v2248_v0 = vld [vmem:[#allocation28 + $0xf8] sm:$0xff] }
 0x5e6   : > { %v2372_v8 = vld [vmem:[#allocation28 + $0x4d8] sm:$0xff] }
 0x5e7   : > { %3974 = vmatpush1.bf16.msra.mxu0 %v6026_v44  ;;  %v2415_v44 = vld [vmem:[#allocation28 + $0x630] sm:$0xff]  ;;  %v2376_v9 = vld [vmem:[#allocation28 + $0x4f8] sm:$0xff] }
 0x5e8   : > { %4015 = vmatpush1.bf16.msra.mxu1 %v6154_v45  ;;  %3975 = vmatprep.subr.bf16.mxu0 %v6147_v46  ;;  %v6098_v45 = vcombine.low %v2291_v14, %v2295_v15  ;;  %v6226_v46 = vcombine.low %v2419_v16, %v2423_v17  ;;  %v6219_v23 = vcombine.high %v2411_v42, %v2415_v44  ;;  %v2240_v14 = vld [vmem:[#allocation28 + $0xb8] sm:$0xff] }
 0x5e9   : > { %4016 = vmatprep.subr.bf16.mxu1 %v6275_v22  ;;  %v6091_v22 = vcombine.high %v2283_v40, %v2287_v41  ;;  %v2364_v15 = vld [vmem:[#allocation28 + $0x498] sm:$0xff]  ;;  %v6052_v17 = vcombine.low %v2244_v63, %v2248_v0 }
 0x5ea   : > { %v2368_v16 = vld [vmem:[#allocation28 + $0x4b8] sm:$0xff] }
 0x5eb   : > { %3976 = vmatpush2.bf16.msra.mxu0 %v6146_v27  ;;  %v2408_v27 = vld [vmem:[#allocation28 + $0x5f8] sm:$0xff] }
 0x5ec   : > { %4017 = vmatpush2.bf16.msra.mxu1 %v6274_v28  ;;  %3977 = vmatprep.subr.bf16.mxu0 %v6139_v29  ;;  %v6090_v28 = vcombine.low %v2283_v40, %v2287_v41  ;;  %v6218_v29 = vcombine.low %v2411_v42, %v2415_v44  ;;  %v6213_v35 = vcombine.high %v2404_v26, %v2408_v27  ;;  %v2232_v40 = vld [vmem:[#allocation28 + $0x78] sm:$0xff] }
 0x5ed   : > { %4018 = vmatprep.subr.bf16.mxu1 %v6267_v34  ;;  %v6085_v34 = vcombine.high %v2276_v24, %v2280_v25  ;;  %v2356_v41 = vld [vmem:[#allocation28 + $0x458] sm:$0xff] }
 0x5ee   : > { %v2360_v42 = vld [vmem:[#allocation28 + $0x478] sm:$0xff] }
 0x5ef   : > { %3978 = vmatpush2.bf16.msra.mxu0 %v6138_v47  ;;  %v2396_v47 = vld [vmem:[#allocation28 + $0x598] sm:$0xff] }
 0x5f0   : > { %4019 = vmatpush2.bf16.msra.mxu1 %v6266_v49  ;;  %3979 = vmatprep.subr.bf16.mxu0 %v6131_v51  ;;  %v2400_v49 = vld [vmem:[#allocation28 + $0x5b8] sm:$0xff]  ;;  %v6212_v51 = vcombine.low %v2404_v26, %v2408_v27 }
 0x5f1   : > { %4020 = vmatprep.subr.bf16.mxu1 %v6259_v52  ;;  %v6077_v52 = vcombine.high %v2268_v36, %v2272_v37  ;;  %v6205_v54 = vcombine.high %v2396_v47, %v2400_v49  ;;  %v2224_v24 = vld [vmem:[#allocation28 + $0x38] sm:$0xff] }
 0x5f2   : > { %v2348_v25 = vld [vmem:[#allocation28 + $0x418] sm:$0xff] }
 0x5f3   : > { %3980 = vmatpush2.bf16.msra.mxu0 %v6130_v56  ;;  %v2392_v56 = vld [vmem:[#allocation28 + $0x578] sm:$0xff] }
 0x5f4   : > { %4021 = vmatpush2.bf16.msra.mxu1 %v6258_v33  ;;  %3981 = vmatprep.subr.bf16.mxu0 %v6123_v59  ;;  %v6076_v33 = vcombine.low %v2268_v36, %v2272_v37  ;;  %v6204_v59 = vcombine.low %v2396_v47, %v2400_v49  ;;  %v6197_v61 = vcombine.high %v2388_v55, %v2392_v56  ;;  %v2352_v26 = vld [vmem:[#allocation28 + $0x438] sm:$0xff] }
 0x5f5   : > { %4022 = vmatprep.subr.bf16.mxu1 %v6251_v60  ;;  %v6069_v60 = vcombine.high %v2260_v31, %v2264_v53  ;;  %v2344_v36 = vld [vmem:[#allocation28 + $0x3f8] sm:$0xff]  ;;  %v6156_v49 = vcombine.low %v2348_v25, %v2352_v26 }
 0x5f6   : > { %v2468_v37 = vld [vmem:[#allocation28 + $0x7d8] sm:$0xff] }
 0x5f7   : > { %3982 = vmatpush2.bf16.msra.mxu0 %v6122_v62  ;;  %v2384_v62 = vld [vmem:[#allocation28 + $0x538] sm:$0xff] }
 0x5f8   : > { %4023 = vmatpush2.bf16.msra.mxu1 %v6250_v39  ;;  %3983 = vmatprep.subr.bf16.mxu0 %v6115_v1  ;;  %v6068_v39 = vcombine.low %v2260_v31, %v2264_v53  ;;  %v6196_v1 = vcombine.low %v2388_v55, %v2392_v56  ;;  %v2332_v31 = vld [vmem:[#allocation28 + $0x398] sm:$0xff] }
 0x5f9   : > { %4024 = vmatprep.subr.bf16.mxu1 %v6243_v4  ;;  %v6061_v4 = vcombine.high %v2252_v38, %v2256_v57  ;;  %v2336_v53 = vld [vmem:[#allocation28 + $0x3b8] sm:$0xff] }
 0x5fa   : > { %v2464_v55 = vld [vmem:[#allocation28 + $0x7b8] sm:$0xff] }
 0x5fb   : > { %3984 = vmatpush2.bf16.msra.mxu0 %v6114_v10  ;;  %v6188_v10 = vcombine.low %v2380_v58, %v2384_v62 }
 0x5fc   : > { %4025 = vmatpush2.bf16.msra.mxu1 %v6242_v11  ;;  %3985 = vmatprep.subr.bf16.mxu0 %v6107_v12  ;;  %v6053_v11 = vcombine.high %v2244_v63, %v2248_v0  ;;  %v6181_v12 = vcombine.high %v2372_v8, %v2376_v9  ;;  %v2320_v63 = vld [vmem:[#allocation28 + $0x338] sm:$0xff] }
 0x5fd   : > { %4026 = vmatprep.subr.bf16.mxu1 %v6235_v13  ;;  %v2236_v13 = vld [vmem:[#allocation28 + $0x98] sm:$0xff] }
 0x5fe   : > { %v6044_v44 = vcombine.low %v2236_v13, %v2240_v14  ;;  %v2444_v0 = vld [vmem:[#allocation28 + $0x718] sm:$0xff] }
 0x5ff   : > { %3986 = vmatpush2.bf16.msra.mxu0 %v6106_v18  ;;  %v6180_v18 = vcombine.low %v2372_v8, %v2376_v9  ;;  %v2448_v8 = vld [vmem:[#allocation28 + $0x738] sm:$0xff] }
 0x600   : > { %4027 = vmatpush2.bf16.msra.mxu1 %v6234_v19  ;;  %3987 = vmatprep.subr.bf16.mxu0 %v6099_v20  ;;  %v6045_v19 = vcombine.high %v2236_v13, %v2240_v14  ;;  %v6173_v20 = vcombine.high %v2364_v15, %v2368_v16  ;;  %v2312_v13 = vld [vmem:[#allocation28 + $0x2f8] sm:$0xff] }
 0x601   : > { %4028 = vmatprep.subr.bf16.mxu1 %v6227_v21  ;;  %v2228_v21 = vld [vmem:[#allocation28 + $0x58] sm:$0xff] }
 0x602   : > { %v6036_v27 = vcombine.low %v2228_v21, %v2232_v40  ;;  %v2436_v14 = vld [vmem:[#allocation28 + $0x6d8] sm:$0xff] }
 0x603   : > { %3988 = vmatpush2.bf16.msra.mxu0 %v6098_v45  ;;  %v6172_v45 = vcombine.low %v2364_v15, %v2368_v16  ;;  %v2440_v15 = vld [vmem:[#allocation28 + $0x6f8] sm:$0xff] }
 0x604   : > { %4029 = vmatpush2.bf16.msra.mxu1 %v6226_v46  ;;  %3989 = vmatprep.subr.bf16.mxu0 %v6091_v22  ;;  %v6037_v46 = vcombine.high %v2228_v21, %v2232_v40  ;;  %v6165_v22 = vcombine.high %v2356_v41, %v2360_v42  ;;  %v2304_v21 = vld [vmem:[#allocation28 + $0x2b8] sm:$0xff] }
 0x605   : > { %4030 = vmatprep.subr.bf16.mxu1 %v6219_v23  ;;  %v2220_v23 = vld [vmem:[#allocation28 + $0x18] sm:$0xff] }
 0x606   : > { %v6028_v47 = vcombine.low %v2220_v23, %v2224_v24  ;;  %v2428_v40 = vld [vmem:[#allocation28 + $0x698] sm:$0xff] }
 0x607   : > { %3990 = vmatpush2.bf16.msra.mxu0 %v6090_v28  ;;  %v6164_v28 = vcombine.low %v2356_v41, %v2360_v42  ;;  %v2432_v41 = vld [vmem:[#allocation28 + $0x6b8] sm:$0xff] }
 0x608   : > { %4031 = vmatpush2.bf16.msra.mxu1 %v6218_v29  ;;  %4041 = vmatprep.subr.bf16.mxu0 %v6085_v34  ;;  %v6029_v29 = vcombine.high %v2220_v23, %v2224_v24  ;;  %v6157_v34 = vcombine.high %v2348_v25, %v2352_v26  ;;  %v2296_v23 = vld [vmem:[#allocation28 + $0x278] sm:$0xff] }
 0x609   : > { %4082 = vmatprep.subr.bf16.mxu1 %v6213_v35  ;;  %v2340_v35 = vld [vmem:[#allocation28 + $0x3d8] sm:$0xff] }
 0x60a   : > { %3992 = vmatmul.mubr.bf16.vlgmr.msra.gmra.mxu0 %v8106_v6  ;;  %v6148_v56 = vcombine.low %v2340_v35, %v2344_v36  ;;  %v2420_v24 = vld [vmem:[#allocation28 + $0x658] sm:$0xff] }
 0x60b   : > { %4033 = vmatmul.mubr.bf16.vlgmr.msra.gmra.mxu1 %v8109_v7  ;;  %4042 = vmatpush1.bf16.msra.mxu0 %v6084_v43  ;;  %v2472_v43 = vld [vmem:[#allocation28 + $0x7f8] sm:$0xff] }
 0x60c   : > { %4073 = vmatprep.mubr.bf16.mxu0 %v8102_v3  ;;  %4083 = vmatpush1.bf16.msra.mxu1 %v6212_v51  ;;  %v6189_v3 = vcombine.high %v2380_v58, %v2384_v62  ;;  %v6149_v51 = vcombine.high %v2340_v35, %v2344_v36  ;;  %v2456_v58 = vld [vmem:[#allocation28 + $0x778] sm:$0xff]  ;;  %v6140_v62 = vcombine.low %v2332_v31, %v2336_v53 }
 0x60d   : > { %4114 = vmatprep.mubr.bf16.mxu1 %v8104_v5  ;;  %4043 = vmatprep.subr.bf16.mxu0 %v6077_v52  ;;  %v6060_v5 = vcombine.low %v2252_v38, %v2256_v57  ;;  %v6277_v52 = vcombine.high %v2468_v37, %v2472_v43  ;;  %v2328_v38 = vld [vmem:[#allocation28 + $0x378] sm:$0xff] }
 0x60e   : > { %4084 = vmatprep.subr.bf16.mxu1 %v6205_v54  ;;  %v2460_v54 = vld [vmem:[#allocation28 + $0x798] sm:$0xff] }
 0x60f   : > { %4044 = vmatpush1.bf16.msra.mxu0 %v6076_v33  ;;  %v6276_v33 = vcombine.low %v2468_v37, %v2472_v43  ;;  %v2452_v57 = vld [vmem:[#allocation28 + $0x758] sm:$0xff] }
 0x610   : > { %4085 = vmatpush1.bf16.msra.mxu1 %v6204_v59  ;;  %4045 = vmatprep.subr.bf16.mxu0 %v6069_v60  ;;  %v6141_v59 = vcombine.high %v2332_v31, %v2336_v53  ;;  %v6269_v60 = vcombine.high %v2460_v54, %v2464_v55  ;;  %v2424_v25 = vld [vmem:[#allocation28 + $0x678] sm:$0xff]  ;;  %v4466_v31 = vld [vmem:[%s8009_s4 + $0x218] sm:$0xff] }
 0x611   : > { %4086 = vmatprep.subr.bf16.mxu1 %v6197_v61  ;;  %v2324_v61 = vld [vmem:[#allocation28 + $0x358] sm:$0xff] }
 0x612   : > { %v6132_v9 = vcombine.low %v2324_v61, %v2328_v38  ;;  %v2288_v35 = vld [vmem:[#allocation28 + $0x238] sm:$0xff] }
 0x613   : > { %4046 = vmatpush1.bf16.msra.mxu0 %v6068_v39  ;;  %v6268_v39 = vcombine.low %v2460_v54, %v2464_v55  ;;  %v2412_v36 = vld [vmem:[#allocation28 + $0x618] sm:$0xff]  ;;  %v8132_v55 = vld [vmem:[#allocation30] sm:$0xff] }
 0x614   : > { %4087 = vmatpush1.bf16.msra.mxu1 %v6196_v1  ;;  %4047 = vmatprep.subr.bf16.mxu0 %v6061_v4  ;;  %v6133_v1 = vcombine.high %v2324_v61, %v2328_v38  ;;  %v6261_v4 = vcombine.high %v2452_v57, %v2456_v58  ;;  %v2416_v37 = vld [vmem:[#allocation28 + $0x638] sm:$0xff]  ;;  %v2478_v61 = vrot.slane %v8132_v55, %v8057_v30 }
 0x615   : > { %4088 = vmatprep.subr.bf16.mxu1 %v6189_v3  ;;  %v2316_v3 = vld [vmem:[#allocation28 + $0x318] sm:$0xff]  ;;  %v6220_v54 = vcombine.low %v2412_v36, %v2416_v37 }
 0x616   : > { %v6124_v16 = vcombine.low %v2316_v3, %v2320_v63 }
 0x617   : > { %4048 = vmatpush1.bf16.msra.mxu0 %v6060_v5  ;;  %v6260_v5 = vcombine.low %v2452_v57, %v2456_v58 }
 0x618   : > { %4089 = vmatpush1.bf16.msra.mxu1 %v6188_v10  ;;  %4049 = vmatprep.subr.bf16.mxu0 %v6053_v11  ;;  %v6125_v10 = vcombine.high %v2316_v3, %v2320_v63  ;;  %v6253_v11 = vcombine.high %v2444_v0, %v2448_v8  ;;  %v4460_v3 = vld [vmem:[%s8009_s4 + $0x1e8] sm:$0xff] }
 0x619   : > { %4090 = vmatprep.subr.bf16.mxu1 %v6181_v12  ;;  %v2308_v12 = vld [vmem:[#allocation28 + $0x2d8] sm:$0xff] }
 0x61a   : > { %v6116_v42 = vcombine.low %v2308_v12, %v2312_v13 }
 0x61b   : > { %4050 = vmatpush1.bf16.msra.mxu0 %v6052_v17  ;;  %v6252_v17 = vcombine.low %v2444_v0, %v2448_v8 }
 0x61c   : > { %4091 = vmatpush1.bf16.msra.mxu1 %v6180_v18  ;;  %4051 = vmatprep.subr.bf16.mxu0 %v6045_v19  ;;  %v6117_v18 = vcombine.high %v2308_v12, %v2312_v13  ;;  %v6245_v19 = vcombine.high %v2436_v14, %v2440_v15 }
 0x61d   : > { %4092 = vmatprep.subr.bf16.mxu1 %v6173_v20  ;;  %v2300_v20 = vld [vmem:[#allocation28 + $0x298] sm:$0xff] }
 0x61e   : > { %v6108_v26 = vcombine.low %v2300_v20, %v2304_v21 }
 0x61f   : > { %4052 = vmatpush1.bf16.msra.mxu0 %v6044_v44  ;;  %v6244_v44 = vcombine.low %v2436_v14, %v2440_v15  ;;  %v4459_v15 = vld [vmem:[%s8009_s4 + $0x1e0] sm:$0xff] }
 0x620   : > { %4093 = vmatpush1.bf16.msra.mxu1 %v6172_v45  ;;  %4053 = vmatprep.subr.bf16.mxu0 %v6037_v46  ;;  %v6109_v45 = vcombine.high %v2300_v20, %v2304_v21  ;;  %v6237_v46 = vcombine.high %v2428_v40, %v2432_v41 }
 0x621   : > { %4094 = vmatprep.subr.bf16.mxu1 %v6165_v22  ;;  %v2292_v22 = vld [vmem:[#allocation28 + $0x258] sm:$0xff] }
 0x622   : > { %v6100_v43 = vcombine.low %v2292_v22, %v2296_v23 }
 0x623   : > { %4054 = vmatpush1.bf16.msra.mxu0 %v6036_v27  ;;  %v6236_v27 = vcombine.low %v2428_v40, %v2432_v41  ;;  %v4717_v40 = vunpack.c.h.s8.bf16 %v4459_v15 }
 0x624   : > { %4095 = vmatpush1.bf16.msra.mxu1 %v6164_v28  ;;  %4055 = vmatprep.subr.bf16.mxu0 %v6029_v29  ;;  %v6101_v28 = vcombine.high %v2292_v22, %v2296_v23  ;;  %v6229_v29 = vcombine.high %v2420_v24, %v2424_v25  ;;  %v4454_v22 = vld [vmem:[%s8009_s4 + $0x1b8] sm:$0xff] }
 0x625   : > { %4096 = vmatprep.subr.bf16.mxu1 %v6157_v34  ;;  %v2284_v34 = vld [vmem:[#allocation28 + $0x218] sm:$0xff] }
 0x626   : > { %v6092_v53 = vcombine.low %v2284_v34, %v2288_v35 }
 0x627   : > { %4056 = vmatpush1.bf16.msra.mxu0 %v6028_v47  ;;  %v6228_v47 = vcombine.low %v2420_v24, %v2424_v25 }
 0x628   : > { %4097 = vmatpush1.bf16.msra.mxu1 %v6156_v49  ;;  %4057 = vmatprep.subr.bf16.mxu0 %v6149_v51  ;;  %v6093_v49 = vcombine.high %v2284_v34, %v2288_v35  ;;  %v6221_v51 = vcombine.high %v2412_v36, %v2416_v37  ;;  %v4706_v35 = vunpack.c.h.s8.bf16 %v4454_v22  ;;  %v4453_v36 = vld [vmem:[%s8009_s4 + $0x1b0] sm:$0xff] }
 0x629   : > { %4098 = vmatprep.subr.bf16.mxu1 %v6277_v52  ;;  %v4418_v52 = vld [vmem:[%s8009_s4 + $0x98] sm:$0xff] }
 0x62a   : > { %v4628_v57 = vunpack.c.l.s8.bf16 %v4418_v52 }
 0x62b   : > { %4058 = vmatpush2.bf16.msra.mxu0 %v6148_v56  ;;  %v4634_v56 = vunpack.c.h.s8.bf16 %v4418_v52 }
 0x62c   : > { %4099 = vmatpush2.bf16.msra.mxu1 %v6276_v33  ;;  %4059 = vmatprep.subr.bf16.mxu0 %v6141_v59  ;;  %v4417_v33 = vld [vmem:[%s8009_s4 + $0x90] sm:$0xff]  ;;  %v4730_v59 = vunpack.c.h.s8.bf16 %v4466_v31 }
 0x62d   : > { %4100 = vmatprep.subr.bf16.mxu1 %v6269_v60  ;;  %v4465_v60 = vld [vmem:[%s8009_s4 + $0x210] sm:$0xff]  ;;  %v4633_v38 = vunpack.c.h.s8.bf16 %v4417_v33  ;;  %v4627_v8 = vunpack.c.l.s8.bf16 %v4417_v33 }
 0x62e   : > { %v4729_v58 = vunpack.c.h.s8.bf16 %v4465_v60 }
 0x62f   : > { %4060 = vmatpush2.bf16.msra.mxu0 %v6140_v62  ;;  %v2482_v62 = vrot.slane %v8132_v55, %v8060_v32 }
 0x630   : > { %4101 = vmatpush2.bf16.msra.mxu1 %v6268_v39  ;;  %4061 = vmatprep.subr.bf16.mxu0 %v6133_v1  ;;  %v4412_v39 = vld [vmem:[%s8009_s4 + $0x68] sm:$0xff]  ;;  %v4724_v1 = vunpack.c.l.s8.bf16 %v4466_v31 }
 0x631   : > { %4102 = vmatprep.subr.bf16.mxu1 %v6261_v4  ;;  %v4616_v21 = vunpack.c.l.s8.bf16 %v4412_v39 }
 0x633   : > { %4062 = vmatpush2.bf16.msra.mxu0 %v6132_v9 }
 0x634   : > { %4103 = vmatpush2.bf16.msra.mxu1 %v6260_v5  ;;  %4063 = vmatprep.subr.bf16.mxu0 %v6125_v10  ;;  %v4622_v5 = vunpack.c.h.s8.bf16 %v4412_v39  ;;  %v4411_v10 = vld [vmem:[%s8009_s4 + $0x60] sm:$0xff] }
 0x635   : > { %4104 = vmatprep.subr.bf16.mxu1 %v6253_v11  ;;  %v4723_v11 = vunpack.c.l.s8.bf16 %v4465_v60  ;;  %v4615_v25 = vunpack.c.l.s8.bf16 %v4411_v10 }
 0x637   : > { %4064 = vmatpush2.bf16.msra.mxu0 %v6124_v16 }
 0x638   : > { %4105 = vmatpush2.bf16.msra.mxu1 %v6252_v17  ;;  %4065 = vmatprep.subr.bf16.mxu0 %v6117_v18 }
 0x639   : > { %4106 = vmatprep.subr.bf16.mxu1 %v6245_v19  ;;  %v4621_v19 = vunpack.c.h.s8.bf16 %v4411_v10  ;;  %v4442_v10 = vld [vmem:[%s8009_s4 + $0x158] sm:$0xff] }
 0x63b   : > { %4066 = vmatpush2.bf16.msra.mxu0 %v6116_v42 }
 0x63c   : > { %4107 = vmatpush2.bf16.msra.mxu1 %v6244_v44  ;;  %4067 = vmatprep.subr.bf16.mxu0 %v6109_v45  ;;  %v4406_v45 = vld [vmem:[%s8009_s4 + $0x38] sm:$0xff] }
 0x63d   : > { %4108 = vmatprep.subr.bf16.mxu1 %v6237_v46  ;;  %v4712_v46 = vunpack.c.l.s8.bf16 %v4460_v3 }
 0x63f   : > { %4068 = vmatpush2.bf16.msra.mxu0 %v6108_v26  ;;  %v4610_v26 = vunpack.c.h.s8.bf16 %v4406_v45 }
 0x640   : > { %4109 = vmatpush2.bf16.msra.mxu1 %v6236_v27  ;;  %4069 = vmatprep.subr.bf16.mxu0 %v6101_v28  ;;  %v4405_v27 = vld [vmem:[%s8009_s4 + $0x30] sm:$0xff]  ;;  %v4711_v28 = vunpack.c.l.s8.bf16 %v4459_v15  ;;  %v4682_v15 = vunpack.c.h.s8.bf16 %v4442_v10 }
 0x641   : > { %4110 = vmatprep.subr.bf16.mxu1 %v6229_v29  ;;  %v4603_v60 = vunpack.c.l.s8.bf16 %v4405_v27 }
 0x643   : > { %4070 = vmatpush2.bf16.msra.mxu0 %v6100_v43 }
 0x644   : > { %4111 = vmatpush2.bf16.msra.mxu1 %v6228_v47  ;;  %4071 = vmatprep.subr.bf16.mxu0 %v6093_v49  ;;  %v4609_v47 = vunpack.c.h.s8.bf16 %v4405_v27  ;;  %v4604_v49 = vunpack.c.l.s8.bf16 %v4406_v45 }
 0x645   : > { %4112 = vmatprep.subr.bf16.mxu1 %v6221_v51  ;;  %v4705_v51 = vunpack.c.h.s8.bf16 %v4453_v36 }
 0x647   : > { %4072 = vmatpush2.bf16.msra.mxu0 %v6092_v53  ;;  %v4400_v53 = vld [vmem:[%s8009_s4 + $0x8] sm:$0xff] }
 0x648   : > { %4113 = vmatpush2.bf16.msra.mxu1 %v6220_v54  ;;  %4983 = vmatprep.subr.bf16.mxu0 %v4634_v56  ;;  %v4700_v54 = vunpack.c.l.s8.bf16 %v4454_v22  ;;  %v4448_v56 = vld [vmem:[%s8009_s4 + $0x188] sm:$0xff] }
 0x649   : > { %5024 = vmatprep.subr.bf16.mxu1 %v4730_v59  ;;  %v4694_v39 = vunpack.c.h.s8.bf16 %v4448_v56  ;;  %v4436_v22 = vld [vmem:[%s8009_s4 + $0x128] sm:$0xff] }
 0x64a   : > { %4074 = vmatmul.mubr.bf16.vlgmr.msra.gmra.mxu0 %v8106_v6  ;;  %v3829_v4 = vpop.f32.mrf.mxu0  ;;  %v4718_v6 = vunpack.c.h.s8.bf16 %v4460_v3 }
 0x64b   : > { %4115 = vmatmul.mubr.bf16.vlgmr.msra.gmra.mxu1 %v8109_v7  ;;  %v3830_v63 = vadd.f32 %v3829_v4, %v2478_v61  ;;  %v3870_v0 = vpop.f32.mrf.mxu1  ;;  %4984 = vmatpush1.bf16.msra.mxu0 %v4633_v38  ;;  %v4598_v61 = vunpack.c.h.s8.bf16 %v4400_v53  ;;  %v4399_v38 = vld [vmem:[%s8009_s4] sm:$0xff] }
 0x64c   : > { %v3831_v9 = vpop.f32.mrf.mxu0  ;;  %4985 = vmatprep.subr.bf16.mxu0 %v4628_v57  ;;  %5025 = vmatpush1.bf16.msra.mxu1 %v4729_v58  ;;  %v4699_v57 = vunpack.c.l.s8.bf16 %v4453_v36 }
 0x64d   : > { %v3871_v12 = vadd.f32 %v3870_v0, %v3830_v63  ;;  %v3832_v13 = vadd.f32 %v3831_v9, %v2482_v62  ;;  %v3872_v14 = vpop.f32.mrf.mxu1  ;;  %5026 = vmatprep.subr.bf16.mxu1 %v4724_v1  ;;  %v4447_v1 = vld [vmem:[%s8009_s4 + $0x180] sm:$0xff]  ;;  %v4597_v63 = vunpack.c.h.s8.bf16 %v4399_v38  ;;  %v4592_v0 = vunpack.c.l.s8.bf16 %v4400_v53 }
 0x64e   : > { %v3833_v16 = vpop.f32.mrf.mxu0 }
 0x64f   : > { %v4123_v7 = vrot.slane %v3871_v12, 4  ;;  %v3873_v17 = vadd.f32 %v3872_v14, %v3832_v13  ;;  %v3874_v18 = vpop.f32.mrf.mxu1  ;;  %4986 = vmatpush1.bf16.msra.mxu0 %v4627_v8  ;;  %v4693_v8 = vunpack.c.h.s8.bf16 %v4447_v1  ;;  %v4441_v16 = vld [vmem:[%s8009_s4 + $0x150] sm:$0xff] }
 0x650   : > { %v3834_v20 = vpop.f32.mrf.mxu0  ;;  %4987 = vmatprep.subr.bf16.mxu0 %v4622_v5  ;;  %5027 = vmatpush1.bf16.msra.mxu1 %v4723_v11  ;;  %v4688_v11 = vunpack.c.l.s8.bf16 %v4448_v56  ;;  %v4675_v27 = vunpack.c.l.s8.bf16 %v4441_v16 }
 0x651   : > { %v4124_v41 = vadd.f32 %v4123_v7, %v3871_v12  ;;  %v4129_v42 = vrot.slane %v3873_v17, 4  ;;  %v3875_v44 = vpop.f32.mrf.mxu1  ;;  %5028 = vmatprep.subr.bf16.mxu1 %v4718_v6  ;;  %v4591_v6 = vunpack.c.l.s8.bf16 %v4399_v38  ;;  %v4687_v7 = vunpack.c.l.s8.bf16 %v4447_v1  ;;  %v4489_v20 = vld [vmem:[%s8009_s4 + $0x2d0] sm:$0xff] }
 0x652   : > { %v4777_v44 = vunpack.c.h.s8.bf16 %v4489_v20 }
 0x653   : > { %v4125_v23 = vrot.slane %v4124_v41, 2  ;;  %v4130_v24 = vadd.f32 %v4129_v42, %v3873_v17  ;;  %4988 = vmatpush1.bf16.msra.mxu0 %v4621_v19  ;;  %v4676_v42 = vunpack.c.l.s8.bf16 %v4442_v10  ;;  %v8178_v10 = vld [vmem:[#allocation33] sm:$0xff] }
 0x654   : > { %4989 = vmatprep.subr.bf16.mxu0 %v4616_v21  ;;  %5029 = vmatpush1.bf16.msra.mxu1 %v4717_v40 }
 0x655   : > { %v4126_v29 = vadd.f32 %v4125_v23, %v4124_v41  ;;  %v4131_v34 = vrot.slane %v4130_v24, 2  ;;  %5030 = vmatprep.subr.bf16.mxu1 %v4712_v46  ;;  %v4681_v41 = vunpack.c.h.s8.bf16 %v4441_v16 }
 0x657   : > { %v4127_v37 = vrot.slane %v4126_v29, 1  ;;  %v4132_v43 = vadd.f32 %v4131_v34, %v4130_v24  ;;  %4990 = vmatpush1.bf16.msra.mxu0 %v4615_v25  ;;  %v4484_v24 = vld [vmem:[%s8009_s4 + $0x2a8] sm:$0xff]  ;;  %v4771_v34 = vunpack.c.l.s8.bf16 %v4489_v20 }
 0x658   : > { %4991 = vmatprep.subr.bf16.mxu0 %v4610_v26  ;;  %5031 = vmatpush1.bf16.msra.mxu1 %v4711_v28  ;;  %v4670_v28 = vunpack.c.h.s8.bf16 %v4436_v22  ;;  %v4760_v56 = vunpack.c.l.s8.bf16 %v4484_v24 }
 0x659   : > { %v4128_v52 = vadd.f32 %v4127_v37, %v4126_v29  ;;  %v4133_v31 = vrot.slane %v4132_v43, 1  ;;  %5032 = vmatprep.subr.bf16.mxu1 %v4706_v35  ;;  %v4435_v29 = vld [vmem:[%s8009_s4 + $0x120] sm:$0xff]  ;;  %v4766_v37 = vunpack.c.h.s8.bf16 %v4484_v24 }
 0x65b   : > { %v4171_v33 = vmul.f32 0.125, %v4128_v52  ;;  %v4134_v59 = vadd.f32 %v4133_v31, %v4132_v43  ;;  %4992 = vmatpush1.bf16.msra.mxu0 %v4609_v47  ;;  %v4483_v43 = vld [vmem:[%s8009_s4 + $0x2a0] sm:$0xff]  ;;  %v4664_v52 = vunpack.c.l.s8.bf16 %v4436_v22 }
 0x65c   : > { %4993 = vmatprep.subr.bf16.mxu0 %v4604_v49  ;;  %5033 = vmatpush1.bf16.msra.mxu1 %v4705_v51  ;;  %v4669_v51 = vunpack.c.h.s8.bf16 %v4435_v29  ;;  %v4765_v31 = vunpack.c.h.s8.bf16 %v4483_v43  ;;  %v4759_v38 = vunpack.c.l.s8.bf16 %v4483_v43 }
 0x65d   : > { %v8153_v58 = vsub.f32 %v3871_v12, %v4171_v33  ;;  %v4172_v62 = vmul.f32 0.125, %v4134_v59  ;;  %5034 = vmatprep.subr.bf16.mxu1 %v4700_v54  ;;  %v4490_v12 = vld [vmem:[%s8009_s4 + $0x2d8] sm:$0xff]  ;;  %v4663_v59 = vunpack.c.l.s8.bf16 %v4435_v29  ;;  %v4513_v29 = vld [vmem:[%s8009_s4 + $0x390] sm:$0xff] }
 0x65e   : > { %v4778_v19 = vunpack.c.h.s8.bf16 %v4490_v12  ;;  %v4772_v23 = vunpack.c.l.s8.bf16 %v4490_v12  ;;  %v4430_v54 = vld [vmem:[%s8009_s4 + $0xf8] sm:$0xff]  ;;  %v4423_v12 = vld [vmem:[%s8009_s4 + $0xc0] sm:$0xff] }
 0x65f   : > { %v4187_v4 = vmul.f32 %v8153_v58, %v8153_v58  ;;  %v8158_v3 = vsub.f32 %v3873_v17, %v4172_v62  ;;  %4994 = vmatpush1.bf16.msra.mxu0 %v4603_v60  ;;  %v4478_v33 = vld [vmem:[%s8009_s4 + $0x278] sm:$0xff]  ;;  %v4658_v60 = vunpack.c.h.s8.bf16 %v4430_v54  ;;  %v4477_v62 = vld [vmem:[%s8009_s4 + $0x270] sm:$0xff]  ;;  %v4652_v1 = vunpack.c.l.s8.bf16 %v4430_v54 }
 0x660   : > { %4995 = vmatprep.subr.bf16.mxu0 %v4598_v61  ;;  %5035 = vmatpush1.bf16.msra.mxu1 %v4699_v57  ;;  %v4429_v61 = vld [vmem:[%s8009_s4 + $0xf0] sm:$0xff]  ;;  %v4754_v57 = vunpack.c.h.s8.bf16 %v4478_v33 }
 0x661   : > { %v4195_v9 = vrot.slane %v4187_v4, 4  ;;  %v4188_v5 = vmul.f32 %v8158_v3, %v8158_v3  ;;  %5036 = vmatprep.subr.bf16.mxu1 %v4694_v39  ;;  %v4657_v39 = vunpack.c.h.s8.bf16 %v4429_v61 }
 0x663   : > { %v4196_v13 = vadd.f32 %v4195_v9, %v4187_v4  ;;  %v4201_v14 = vrot.slane %v4188_v5, 4  ;;  %4996 = vmatpush1.bf16.msra.mxu0 %v4597_v63  ;;  %v4753_v4 = vunpack.c.h.s8.bf16 %v4477_v62  ;;  %v4424_v63 = vld [vmem:[%s8009_s4 + $0xc8] sm:$0xff] }
 0x664   : > { %4997 = vmatprep.subr.bf16.mxu0 %v4592_v0  ;;  %5037 = vmatpush1.bf16.msra.mxu1 %v4693_v8  ;;  %v4748_v0 = vunpack.c.l.s8.bf16 %v4478_v33  ;;  %v8175_v8 = vld [vmem:[#allocation31] sm:$0xff]  ;;  %v4472_v9 = vld [vmem:[%s8009_s4 + $0x248] sm:$0xff] }
 0x665   : > { %v4197_v17 = vrot.slane %v4196_v13, 2  ;;  %v4202_v18 = vadd.f32 %v4201_v14, %v4188_v5  ;;  %5038 = vmatprep.subr.bf16.mxu1 %v4688_v11  ;;  %v4651_v5 = vunpack.c.l.s8.bf16 %v4429_v61  ;;  %v4646_v11 = vunpack.c.h.s8.bf16 %v4424_v63 }
 0x666   : > { %v4280_v14 = vrot.slane %v8175_v8, %v8057_v30 }
 0x667   : > { %v4198_v21 = vadd.f32 %v4197_v17, %v4196_v13  ;;  %v4203_v40 = vrot.slane %v4202_v18, 2  ;;  %4998 = vmatpush1.bf16.msra.mxu0 %v4591_v6  ;;  %v4747_v13 = vunpack.c.l.s8.bf16 %v4477_v62  ;;  %v4742_v6 = vunpack.c.h.s8.bf16 %v4472_v9 }
 0x668   : > { %4999 = vmatprep.subr.bf16.mxu0 %v4682_v15  ;;  %5039 = vmatpush1.bf16.msra.mxu1 %v4687_v7  ;;  %v4471_v15 = vld [vmem:[%s8009_s4 + $0x240] sm:$0xff]  ;;  %v4330_v17 = vrot.slane %v8178_v10, %v8057_v30 }
 0x669   : > { %v4199_v45 = vrot.slane %v4198_v21, 1  ;;  %v4204_v46 = vadd.f32 %v4203_v40, %v4202_v18  ;;  %5040 = vmatprep.subr.bf16.mxu1 %v4778_v19  ;;  %v4284_v18 = vrot.slane %v8175_v8, %v8060_v32  ;;  %v4645_v19 = vunpack.c.h.s8.bf16 %v4423_v12 }
 0x66a   : > { %v4741_v40 = vunpack.c.h.s8.bf16 %v4471_v15  ;;  %v4735_v24 = vunpack.c.l.s8.bf16 %v4471_v15  ;;  %v4502_v15 = vld [vmem:[%s8009_s4 + $0x338] sm:$0xff] }
 0x66b   : > { %v4200_v25 = vadd.f32 %v4199_v45, %v4198_v21  ;;  %v4205_v26 = vrot.slane %v4204_v46, 1  ;;  %5000 = vmatpush2.bf16.msra.mxu0 %v4681_v41  ;;  %v4640_v21 = vunpack.c.l.s8.bf16 %v4424_v63  ;;  %v4514_v45 = vld [vmem:[%s8009_s4 + $0x398] sm:$0xff]  ;;  %v4507_v63 = vld [vmem:[%s8009_s4 + $0x360] sm:$0xff] }
 0x66c   : > { %5001 = vmatprep.subr.bf16.mxu0 %v4676_v42  ;;  %5041 = vmatpush2.bf16.msra.mxu1 %v4777_v44  ;;  %v4334_v44 = vrot.slane %v8178_v10, %v8060_v32 }
 0x66d   : > { %v4243_v35 = vmul.f32 0.125, %v4200_v25  ;;  %v4206_v36 = vadd.f32 %v4205_v26, %v4204_v46  ;;  %5042 = vmatprep.subr.bf16.mxu1 %v4772_v23  ;;  %v4639_v23 = vunpack.c.l.s8.bf16 %v4423_v12  ;;  %v4826_v25 = vunpack.c.h.s8.bf16 %v4514_v45 }
 0x66e   : > { %v4813_v12 = vunpack.c.h.s8.bf16 %v4507_v63 }
 0x66f   : > { %v4251_v47 = vadd.f32 0.8, %v4243_v35  ;;  %v4244_v49 = vmul.f32 0.125, %v4206_v36  ;;  %5002 = vmatpush2.bf16.msra.mxu0 %v4675_v27  ;;  %v2490_v35 = vrot.slane %v8132_v55, %v8088_v50 }
 0x670   : > { %5003 = vmatprep.subr.bf16.mxu0 %v4670_v28  ;;  %5043 = vmatpush2.bf16.msra.mxu1 %v4771_v34 }
 0x671   : > { %6746 = vrsqrt.f32 %v4251_v47  ;;  %v4252_v53 = vadd.f32 0.8, %v4244_v49  ;;  %5044 = vmatprep.subr.bf16.mxu1 %v4766_v37  ;;  %v4825_v47 = vunpack.c.h.s8.bf16 %v4513_v29 }
 0x673   : > { %6748 = vrsqrt.f32 %v4252_v53  ;;  %5004 = vmatpush2.bf16.msra.mxu0 %v4669_v51  ;;  %v8203_v53 = vld [vmem:[%s8009_s4 + $0x518] sm:$0xff] }
 0x674   : > { %5005 = vmatprep.subr.bf16.mxu0 %v4664_v52  ;;  %5045 = vmatpush2.bf16.msra.mxu1 %v4765_v31  ;;  %v4820_v31 = vunpack.c.l.s8.bf16 %v4514_v45  ;;  %v4922_v33 = vunpack.c.h.s8.bf16 %v8203_v53  ;;  %v4796_v45 = vunpack.c.l.s8.bf16 %v4502_v15 }
 0x675   : > { %5046 = vmatprep.subr.bf16.mxu1 %v4760_v56  ;;  %v4508_v56 = vld [vmem:[%s8009_s4 + $0x368] sm:$0xff] }
 0x677   : > { %5006 = vmatpush2.bf16.msra.mxu0 %v4663_v59 }
 0x678   : > { %5007 = vmatprep.subr.bf16.mxu0 %v4658_v60  ;;  %5047 = vmatpush2.bf16.msra.mxu1 %v4759_v38 }
 0x679   : > { %5048 = vmatprep.subr.bf16.mxu1 %v4754_v57  ;;  %v4819_v57 = vunpack.c.l.s8.bf16 %v4513_v29 }
 0x67b   : > { %5008 = vmatpush2.bf16.msra.mxu0 %v4657_v39 }
 0x67c   : > { %5009 = vmatprep.subr.bf16.mxu0 %v4652_v1  ;;  %5049 = vmatpush2.bf16.msra.mxu1 %v4753_v4  ;;  %v4814_v4 = vunpack.c.h.s8.bf16 %v4508_v56 }
 0x67d   : > { %5050 = vmatprep.subr.bf16.mxu1 %v4748_v0 }
 0x67e   : > { %v6747_v16 = vpop.eup %6746 }
 0x67f   : > { %v4267_v7 = vmul.f32 %v6747_v16, %v8153_v58  ;;  %5010 = vmatpush2.bf16.msra.mxu0 %v4651_v5  ;;  %v4736_v58 = vunpack.c.l.s8.bf16 %v4472_v9 }
 0x680   : > { %v6749_v20 = vpop.eup %6748  ;;  %5011 = vmatprep.subr.bf16.mxu0 %v4646_v11  ;;  %5051 = vmatpush2.bf16.msra.mxu1 %v4747_v13 }
 0x681   : > { %v4317_v41 = vmul.f32 %v4280_v14, %v4267_v7  ;;  %v4268_v42 = vmul.f32 %v6749_v20, %v8158_v3  ;;  %5052 = vmatprep.subr.bf16.mxu1 %v4742_v6  ;;  %v2486_v3 = vrot.slane %v8132_v55, %v8085_v48  ;;  %v4808_v6 = vunpack.c.l.s8.bf16 %v4508_v56 }
 0x682   : > { %v4802_v20 = vunpack.c.h.s8.bf16 %v4502_v15  ;;  %v4526_v15 = vld [vmem:[%s8009_s4 + $0x3f8] sm:$0xff] }
 0x683   : > { %v4367_v46 = vadd.f32 %v4330_v17, %v4317_v41  ;;  %v4318_v22 = vmul.f32 %v4284_v18, %v4268_v42  ;;  %5012 = vmatpush2.bf16.msra.mxu0 %v4645_v19  ;;  %v4807_v17 = vunpack.c.l.s8.bf16 %v4507_v63 }
 0x684   : > { %5013 = vmatprep.subr.bf16.mxu0 %v4640_v21  ;;  %5053 = vmatpush2.bf16.msra.mxu1 %v4741_v40  ;;  %v4501_v21 = vld [vmem:[%s8009_s4 + $0x330] sm:$0xff] }
 0x685   : > { %v4368_v26 = vadd.f32 %v4334_v44, %v4318_v22  ;;  %vm4375_vm3 = vcmp.ge.f32.partialorder %v4367_v46, 0.0  ;;  %v4383_v27 = vmul.f32 0.2, %v4367_v46  ;;  %5054 = vmatprep.subr.bf16.mxu1 %v4736_v58  ;;  %v4801_v42 = vunpack.c.h.s8.bf16 %v4501_v21 }
 0x687   : > { %5014 = vmatpush2.bf16.msra.mxu0 %v4639_v23  ;;  %vm4376_vm4 = vcmp.ge.f32.partialorder %v4368_v26, 0.0  ;;  %v4384_v28 = vmul.f32 0.2, %v4368_v26  ;;  %v4391_v34 = vsel %vm4375_vm3, %v4367_v46, %v4383_v27  ;;  %v4496_v46 = vld [vmem:[%s8009_s4 + $0x308] sm:$0xff] }
 0x688   : > { %5055 = vmatpush2.bf16.msra.mxu1 %v4735_v24  ;;  %5065 = vmatprep.subr.bf16.mxu0 %v4826_v25  ;;  %v8200_v52 = vpack.c.bf16 %v4391_v34, %v4391_v34  ;;  %v4795_v24 = vunpack.c.l.s8.bf16 %v4501_v21  ;;  %v4790_v27 = vunpack.c.h.s8.bf16 %v4496_v46  ;;  %v4288_v21 = vrot.slane %v8175_v8, %v8085_v48 }
 0x689   : > { %v4392_v36 = vsel %vm4376_vm4, %v4368_v26, %v4384_v28  ;;  %5106 = vmatprep.subr.bf16.mxu1 %v4922_v33 }
 0x68a   : > { %v3911_v37 = vpop.f32.mrf.mxu0  ;;  %v8198_v43 = vpack.c.bf16 %v4392_v36, %v4392_v36 }
 0x68b   : > { %v3912_v49 = vadd.f32 %v3911_v37, %v2486_v3  ;;  %v3952_v51 = vpop.f32.mrf.mxu1  ;;  %v4495_v3 = vld [vmem:[%s8009_s4 + $0x300] sm:$0xff]  ;;  %v4784_v37 = vunpack.c.l.s8.bf16 %v4496_v46 }
 0x68c   : > { %v3913_v54 = vpop.f32.mrf.mxu0  ;;  %5015 = vmatprep.mubr.bf16.mxu0 %v8198_v43  ;;  %v4789_v34 = vunpack.c.h.s8.bf16 %v4495_v3  ;;  %v4519_v46 = vld [vmem:[%s8009_s4 + $0x3c0] sm:$0xff] }
 0x68d   : > { %v3953_v59 = vadd.f32 %v3952_v51, %v3912_v49  ;;  %v3914_v60 = vadd.f32 %v3913_v54, %v2490_v35  ;;  %v3954_v61 = vpop.f32.mrf.mxu1  ;;  %5016 = vmatmul.mubr.bf16.vlgmr.msra.gmra.mxu0 %v8200_v52 }
 0x68e   : > { %v3915_v38 = vpop.f32.mrf.mxu0  ;;  %5066 = vmatpush1.bf16.msra.mxu0 %v4825_v47  ;;  %v4538_v47 = vld [vmem:[%s8009_s4 + $0x458] sm:$0xff] }
 0x68f   : > { %v4135_v62 = vrot.slane %v3953_v59, 4  ;;  %v3955_v39 = vadd.f32 %v3954_v61, %v3914_v60  ;;  %v3956_v1 = vpop.f32.mrf.mxu1  ;;  %5067 = vmatprep.subr.bf16.mxu0 %v4820_v31  ;;  %v4783_v31 = vunpack.c.l.s8.bf16 %v4495_v3  ;;  %v4874_v33 = vunpack.c.h.s8.bf16 %v4538_v47 }
 0x690   : > { %v3916_v0 = vpop.f32.mrf.mxu0  ;;  %v4532_v1 = vld [vmem:[%s8009_s4 + $0x428] sm:$0xff]  ;;  %v4837_v3 = vunpack.c.h.s8.bf16 %v4519_v46 }
 0x691   : > { %v4136_v9 = vadd.f32 %v4135_v62, %v3953_v59  ;;  %v4141_v5 = vrot.slane %v3955_v39, 4  ;;  %v3957_v11 = vpop.f32.mrf.mxu1 }
 0x692   : > { %5068 = vmatpush1.bf16.msra.mxu0 %v4819_v57  ;;  %v4862_v11 = vunpack.c.h.s8.bf16 %v4532_v1 }
 0x693   : > { %v4137_v13 = vrot.slane %v4136_v9, 2  ;;  %v4142_v14 = vadd.f32 %v4141_v5, %v3955_v39  ;;  %5069 = vmatprep.subr.bf16.mxu0 %v4814_v4 }
 0x695   : > { %v4138_v16 = vadd.f32 %v4137_v13, %v4136_v9  ;;  %v4143_v7 = vrot.slane %v4142_v14, 2 }
 0x696   : > { %5070 = vmatpush1.bf16.msra.mxu0 %v4813_v12  ;;  %v4531_v12 = vld [vmem:[%s8009_s4 + $0x420] sm:$0xff] }
 0x697   : > { %v4139_v18 = vrot.slane %v4138_v16, 1  ;;  %v4144_v19 = vadd.f32 %v4143_v7, %v4142_v14  ;;  %5071 = vmatprep.subr.bf16.mxu0 %v4808_v6  ;;  %v4861_v14 = vunpack.c.h.s8.bf16 %v4531_v12  ;;  %v4856_v6 = vunpack.c.l.s8.bf16 %v4532_v1 }
 0x698   : > { %v4850_v7 = vunpack.c.h.s8.bf16 %v4526_v15  ;;  %v4916_v1 = vunpack.c.l.s8.bf16 %v8203_v53  ;;  %v4555_v53 = vld [vmem:[%s8009_s4 + $0x4e0] sm:$0xff] }
 0x699   : > { %v4140_v40 = vadd.f32 %v4139_v18, %v4138_v16  ;;  %v4145_v41 = vrot.slane %v4144_v19, 1  ;;  %v4855_v16 = vunpack.c.l.s8.bf16 %v4531_v12 }
 0x69a   : > { %5072 = vmatpush1.bf16.msra.mxu0 %v4807_v17  ;;  %v4525_v17 = vld [vmem:[%s8009_s4 + $0x3f0] sm:$0xff] }
 0x69b   : > { %v4173_v44 = vmul.f32 0.125, %v4140_v40  ;;  %v4146_v58 = vadd.f32 %v4145_v41, %v4144_v19  ;;  %5073 = vmatprep.subr.bf16.mxu0 %v4802_v20  ;;  %v4849_v18 = vunpack.c.h.s8.bf16 %v4525_v17  ;;  %v4844_v19 = vunpack.c.l.s8.bf16 %v4526_v15  ;;  %v4520_v20 = vld [vmem:[%s8009_s4 + $0x3c8] sm:$0xff] }
 0x69c   : > { %v4843_v41 = vunpack.c.l.s8.bf16 %v4525_v17 }
 0x69d   : > { %v8213_v22 = vsub.f32 %v3953_v59, %v4173_v44  ;;  %v4174_v23 = vmul.f32 0.125, %v4146_v58  ;;  %v4537_v59 = vld [vmem:[%s8009_s4 + $0x450] sm:$0xff]  ;;  %v4338_v44 = vrot.slane %v8178_v10, %v8085_v48  ;;  %v4292_v58 = vrot.slane %v8175_v8, %v8088_v50 }
 0x69e   : > { %5074 = vmatpush1.bf16.msra.mxu0 %v4801_v42  ;;  %v4873_v38 = vunpack.c.h.s8.bf16 %v4537_v59  ;;  %v4867_v0 = vunpack.c.l.s8.bf16 %v4537_v59 }
 0x69f   : > { %v4189_v25 = vmul.f32 %v8213_v22, %v8213_v22  ;;  %v8217_v26 = vsub.f32 %v3955_v39, %v4174_v23  ;;  %5075 = vmatprep.subr.bf16.mxu0 %v4796_v45  ;;  %v4868_v39 = vunpack.c.l.s8.bf16 %v4538_v47  ;;  %v4838_v45 = vunpack.c.h.s8.bf16 %v4520_v20 }
 0x6a0   : > { %v4831_v47 = vunpack.c.l.s8.bf16 %v4519_v46 }
 0x6a1   : > { %v4207_v28 = vrot.slane %v4189_v25, 4  ;;  %v4190_v29 = vmul.f32 %v8217_v26, %v8217_v26 }
 0x6a2   : > { %5076 = vmatpush1.bf16.msra.mxu0 %v4795_v24 }
 0x6a3   : > { %v4208_v35 = vadd.f32 %v4207_v28, %v4189_v25  ;;  %v4213_v36 = vrot.slane %v4190_v29, 4  ;;  %5077 = vmatprep.subr.bf16.mxu0 %v4790_v27  ;;  %v4342_v27 = vrot.slane %v8178_v10, %v8088_v50 }
 0x6a5   : > { %v4209_v49 = vrot.slane %v4208_v35, 2  ;;  %v4214_v51 = vadd.f32 %v4213_v36, %v4190_v29  ;;  %v8241_v29 = vsub.s32 4, %v8028_v2  ;;  %v8247_v36 = vsub.s32 5, %v8028_v2 }
 0x6a6   : > { %5078 = vmatpush1.bf16.msra.mxu0 %v4789_v34  ;;  %v4832_v34 = vunpack.c.l.s8.bf16 %v4520_v20 }
 0x6a7   : > { %v4210_v54 = vadd.f32 %v4209_v49, %v4208_v35  ;;  %v4215_v56 = vrot.slane %v4214_v51, 2  ;;  %5079 = vmatprep.subr.bf16.mxu0 %v4784_v37  ;;  %v8244_v35 = vld [vmem:[%s8009_s4 + $0xa8] sm:$0xff]  ;;  %v2494_v49 = vrot.slane %v8132_v55, %v8241_v29 }
 0x6a9   : > { %v4211_v60 = vrot.slane %v4210_v54, 1  ;;  %v4216_v61 = vadd.f32 %v4215_v56, %v4214_v51 }
 0x6aa   : > { %5080 = vmatpush1.bf16.msra.mxu0 %v4783_v31  ;;  %v4636_v31 = vunpack.c.h.s8.bf16 %v8244_v35 }
 0x6ab   : > { %v4212_v57 = vadd.f32 %v4211_v60, %v4210_v54  ;;  %v4217_v62 = vrot.slane %v4216_v61, 1  ;;  %5081 = vmatprep.subr.bf16.mxu0 %v4874_v33  ;;  %v4561_v54 = vld [vmem:[%s8009_s4 + $0x510] sm:$0xff]  ;;  %v2498_v33 = vrot.slane %v8132_v55, %v8247_v36 }
 0x6ad   : > { %v4245_v4 = vmul.f32 0.125, %v4212_v57  ;;  %v4218_v63 = vadd.f32 %v4217_v62, %v4216_v61 }
 0x6ae   : > { %5082 = vmatpush2.bf16.msra.mxu0 %v4873_v38  ;;  %v4921_v38 = vunpack.c.h.s8.bf16 %v4561_v54 }
 0x6af   : > { %v4253_v9 = vadd.f32 0.8, %v4245_v4  ;;  %v4246_v5 = vmul.f32 0.125, %v4218_v63  ;;  %5083 = vmatprep.subr.bf16.mxu0 %v4868_v39  ;;  %v4556_v63 = vld [vmem:[%s8009_s4 + $0x4e8] sm:$0xff] }
 0x6b1   : > { %6750 = vrsqrt.f32 %v4253_v9  ;;  %v4254_v13 = vadd.f32 0.8, %v4246_v5 }
 0x6b2   : > { %5084 = vmatpush2.bf16.msra.mxu0 %v4867_v0 }
 0x6b3   : > { %6752 = vrsqrt.f32 %v4254_v13  ;;  %5085 = vmatprep.subr.bf16.mxu0 %v4862_v11  ;;  %v4915_v11 = vunpack.c.l.s8.bf16 %v4561_v54  ;;  %v4543_v54 = vld [vmem:[%s8009_s4 + $0x480] sm:$0xff] }
 0x6b6   : > { %5086 = vmatpush2.bf16.msra.mxu0 %v4861_v14 }
 0x6b7   : > { %5087 = vmatprep.subr.bf16.mxu0 %v4856_v6  ;;  %v4910_v6 = vunpack.c.h.s8.bf16 %v4556_v63 }
 0x6ba   : > { %5088 = vmatpush2.bf16.msra.mxu0 %v4855_v16 }
 0x6bb   : > { %5089 = vmatprep.subr.bf16.mxu0 %v4850_v7 }
 0x6be   : > { %v6751_v40 = vpop.eup %6750  ;;  %5090 = vmatpush2.bf16.msra.mxu0 %v4849_v18  ;;  %v4909_v18 = vunpack.c.h.s8.bf16 %v4555_v53 }
 0x6bf   : > { %v4269_v42 = vmul.f32 %v6751_v40, %v8213_v22  ;;  %5091 = vmatprep.subr.bf16.mxu0 %v4844_v19  ;;  %v4550_v40 = vld [vmem:[%s8009_s4 + $0x4b8] sm:$0xff] }
 0x6c0   : > { %v6753_v23 = vpop.eup %6752  ;;  %v4898_v46 = vunpack.c.h.s8.bf16 %v4550_v40 }
 0x6c1   : > { %v4319_v24 = vmul.f32 %v4288_v21, %v4269_v42  ;;  %v4270_v25 = vmul.f32 %v6753_v23, %v8217_v26  ;;  %v4904_v21 = vunpack.c.l.s8.bf16 %v4556_v63  ;;  %v4549_v23 = vld [vmem:[%s8009_s4 + $0x4b0] sm:$0xff]  ;;  %v4879_v63 = vunpack.c.l.s8.bf16 %v4543_v54 }
 0x6c2   : > { %5092 = vmatpush2.bf16.msra.mxu0 %v4843_v41 }
 0x6c3   : > { %v4369_v22 = vadd.f32 %v4338_v44, %v4319_v24  ;;  %v4320_v28 = vmul.f32 %v4292_v58, %v4270_v25  ;;  %5093 = vmatprep.subr.bf16.mxu0 %v4838_v45  ;;  %v4903_v44 = vunpack.c.l.s8.bf16 %v4555_v53 }
 0x6c5   : > { %v4370_v37 = vadd.f32 %v4342_v27, %v4320_v28  ;;  %vm4377_vm5 = vcmp.ge.f32.partialorder %v4369_v22, 0.0  ;;  %v4385_v26 = vmul.f32 0.2, %v4369_v22  ;;  %v4897_v27 = vunpack.c.h.s8.bf16 %v4549_v23 }
 0x6c6   : > { %5094 = vmatpush2.bf16.msra.mxu0 %v4837_v3  ;;  %v4892_v28 = vunpack.c.l.s8.bf16 %v4550_v40 }
 0x6c7   : > { %vm4378_vm6 = vcmp.ge.f32.partialorder %v4370_v37, 0.0  ;;  %v4386_v51 = vmul.f32 0.2, %v4370_v37  ;;  %5095 = vmatprep.subr.bf16.mxu0 %v4832_v34  ;;  %v4393_v56 = vsel %vm4377_vm5, %v4369_v22, %v4385_v26  ;;  %v4544_v34 = vld [vmem:[%s8009_s4 + $0x488] sm:$0xff] }
 0x6c8   : > { %v8257_v39 = vpack.c.bf16 %v4393_v56, %v4393_v56 }
 0x6c9   : > { %v4394_v59 = vsel %vm4378_vm6, %v4370_v37, %v4386_v51 }
 0x6ca   : > { %v3993_v60 = vpop.f32.mrf.mxu0  ;;  %v8255_v61 = vpack.c.bf16 %v4394_v59, %v4394_v59  ;;  %5096 = vmatpush2.bf16.msra.mxu0 %v4831_v47  ;;  %v4891_v47 = vunpack.c.l.s8.bf16 %v4549_v23  ;;  %v4885_v59 = vunpack.c.h.s8.bf16 %v4543_v54 }
 0x6cb   : > { %v3994_v57 = vadd.f32 %v3993_v60, %v2494_v49  ;;  %v4034_v62 = vpop.f32.mrf.mxu1  ;;  %5147 = vmatprep.subr.bf16.mxu0 %v4636_v31  ;;  %v4886_v31 = vunpack.c.h.s8.bf16 %v4544_v34 }
 0x6cc   : > { %v3995_v4 = vpop.f32.mrf.mxu0  ;;  %5056 = vmatprep.mubr.bf16.mxu1 %v8255_v61 }
 0x6cd   : > { %v4035_v0 = vadd.f32 %v4034_v62, %v3994_v57  ;;  %v3996_v55 = vadd.f32 %v3995_v4, %v2498_v33  ;;  %v4036_v9 = vpop.f32.mrf.mxu1  ;;  %5057 = vmatmul.mubr.bf16.vlgmr.msra.gmra.mxu1 %v8257_v39  ;;  %v4880_v57 = vunpack.c.l.s8.bf16 %v4544_v34  ;;  %v4586_v62 = vld [vmem:[%s8009_s4 + $0x5d8] sm:$0xff]  ;;  %v4346_v34 = vrot.slane %v8178_v10, %v8241_v29 }
 0x6ce   : > { %v3997_v5 = vpop.f32.mrf.mxu0  ;;  %5107 = vmatpush1.bf16.msra.mxu1 %v4921_v38  ;;  %v4964_v53 = vunpack.c.l.s8.bf16 %v4586_v62 }
 0x6cf   : > { %v4147_v12 = vrot.slane %v4035_v0, 4  ;;  %v4037_v13 = vadd.f32 %v4036_v9, %v3996_v55  ;;  %v4038_v14 = vpop.f32.mrf.mxu1  ;;  %5108 = vmatprep.subr.bf16.mxu1 %v4916_v1  ;;  %v4970_v9 = vunpack.c.h.s8.bf16 %v4586_v62  ;;  %v4585_v5 = vld [vmem:[%s8009_s4 + $0x5d0] sm:$0xff]  ;;  %v8298_v62 = vld [vmem:[%s8009_s4 + $0x228] sm:$0xff] }
 0x6d0   : > { %v3998_v15 = vpop.f32.mrf.mxu0 }
 0x6d1   : > { %v4148_v16 = vadd.f32 %v4147_v12, %v4035_v0  ;;  %v4153_v7 = vrot.slane %v4037_v13, 4  ;;  %v4039_v17 = vpop.f32.mrf.mxu1  ;;  %v4580_v15 = vld [vmem:[%s8009_s4 + $0x5a8] sm:$0xff] }
 0x6d2   : > { %5109 = vmatpush1.bf16.msra.mxu1 %v4915_v11  ;;  %v4963_v17 = vunpack.c.l.s8.bf16 %v4585_v5 }
 0x6d3   : > { %v4149_v19 = vrot.slane %v4148_v16, 2  ;;  %v4154_v20 = vadd.f32 %v4153_v7, %v4037_v13  ;;  %5110 = vmatprep.subr.bf16.mxu1 %v4910_v6 }
 0x6d5   : > { %v4150_v41 = vadd.f32 %v4149_v19, %v4148_v16  ;;  %v4155_v42 = vrot.slane %v4154_v20, 2 }
 0x6d6   : > { %5111 = vmatpush1.bf16.msra.mxu1 %v4909_v18 }
 0x6d7   : > { %v4151_v58 = vrot.slane %v4150_v41, 1  ;;  %v4156_v45 = vadd.f32 %v4155_v42, %v4154_v20  ;;  %5112 = vmatprep.subr.bf16.mxu1 %v4904_v21  ;;  %v4958_v20 = vunpack.c.h.s8.bf16 %v4580_v15  ;;  %v4579_v21 = vld [vmem:[%s8009_s4 + $0x5a0] sm:$0xff]  ;;  %v4952_v42 = vunpack.c.l.s8.bf16 %v4580_v15 }
 0x6d9   : > { %v4152_v24 = vadd.f32 %v4151_v58, %v4150_v41  ;;  %v4157_v25 = vrot.slane %v4156_v45, 1  ;;  %v4957_v41 = vunpack.c.h.s8.bf16 %v4579_v21  ;;  %v4951_v58 = vunpack.c.l.s8.bf16 %v4579_v21 }
 0x6da   : > { %5113 = vmatpush1.bf16.msra.mxu1 %v4903_v44  ;;  %v4574_v44 = vld [vmem:[%s8009_s4 + $0x578] sm:$0xff] }
 0x6db   : > { %v4175_v3 = vmul.f32 0.125, %v4152_v24  ;;  %v4158_v22 = vadd.f32 %v4157_v25, %v4156_v45  ;;  %5114 = vmatprep.subr.bf16.mxu1 %v4898_v46  ;;  %v4946_v45 = vunpack.c.h.s8.bf16 %v4574_v44  ;;  %v4573_v46 = vld [vmem:[%s8009_s4 + $0x570] sm:$0xff]  ;;  %v4940_v24 = vunpack.c.l.s8.bf16 %v4574_v44  ;;  %v4568_v25 = vld [vmem:[%s8009_s4 + $0x548] sm:$0xff] }
 0x6dc   : > { %v4945_v23 = vunpack.c.h.s8.bf16 %v4573_v46 }
 0x6dd   : > { %v8267_v37 = vsub.f32 %v4035_v0, %v4175_v3  ;;  %v4176_v26 = vmul.f32 0.125, %v4158_v22  ;;  %v4939_v22 = vunpack.c.l.s8.bf16 %v4573_v46  ;;  %v4413_v46 = vld [vmem:[%s8009_s4 + $0x70] sm:$0xff] }
 0x6de   : > { %5115 = vmatpush1.bf16.msra.mxu1 %v4897_v27  ;;  %v4296_v27 = vrot.slane %v8175_v8, %v8241_v29 }
 0x6df   : > { %v4191_v49 = vmul.f32 %v8267_v37, %v8267_v37  ;;  %v8271_v51 = vsub.f32 %v4037_v13, %v4176_v26  ;;  %5116 = vmatprep.subr.bf16.mxu1 %v4892_v28  ;;  %v4969_v13 = vunpack.c.h.s8.bf16 %v4585_v5  ;;  %v4300_v26 = vrot.slane %v8175_v8, %v8247_v36  ;;  %v4419_v5 = vld [vmem:[%s8009_s4 + $0xa0] sm:$0xff] }
 0x6e1   : > { %v4219_v56 = vrot.slane %v4191_v49, 4  ;;  %v4192_v33 = vmul.f32 %v8271_v51, %v8271_v51 }
 0x6e2   : > { %5117 = vmatpush1.bf16.msra.mxu1 %v4891_v47  ;;  %v4934_v47 = vunpack.c.h.s8.bf16 %v4568_v25 }
 0x6e3   : > { %v4220_v60 = vadd.f32 %v4219_v56, %v4191_v49  ;;  %v4225_v38 = vrot.slane %v4192_v33, 4  ;;  %5118 = vmatprep.subr.bf16.mxu1 %v4886_v31  ;;  %v4567_v49 = vld [vmem:[%s8009_s4 + $0x540] sm:$0xff] }
 0x6e5   : > { %v4221_v1 = vrot.slane %v4220_v60, 2  ;;  %v4226_v4 = vadd.f32 %v4225_v38, %v4192_v33  ;;  %v4350_v33 = vrot.slane %v8178_v10, %v8247_v36  ;;  %v8295_v38 = vsub.s32 6, %v8028_v2 }
 0x6e6   : > { %5119 = vmatpush1.bf16.msra.mxu1 %v4885_v59  ;;  %v4933_v59 = vunpack.c.h.s8.bf16 %v4567_v49 }
 0x6e7   : > { %v4222_v0 = vadd.f32 %v4221_v1, %v4220_v60  ;;  %v4227_v55 = vrot.slane %v4226_v4, 2  ;;  %5120 = vmatprep.subr.bf16.mxu1 %v4880_v57  ;;  %v4928_v57 = vunpack.c.l.s8.bf16 %v4568_v25  ;;  %v8301_v1 = vsub.s32 7, %v8028_v2 }
 0x6e9   : > { %v4223_v11 = vrot.slane %v4222_v0, 1  ;;  %v4228_v12 = vadd.f32 %v4227_v55, %v4226_v4 }
 0x6ea   : > { %5121 = vmatpush1.bf16.msra.mxu1 %v4879_v63  ;;  %v4927_v63 = vunpack.c.l.s8.bf16 %v4567_v49 }
 0x6eb   : > { %v4224_v14 = vadd.f32 %v4223_v11, %v4222_v0  ;;  %v4229_v6 = vrot.slane %v4228_v12, 1  ;;  %5122 = vmatprep.subr.bf16.mxu1 %v4970_v9  ;;  %v6774_v0 = vld [vmem:[#allocation30] sm:$0xff]  ;;  %v4732_v11 = vunpack.c.h.s8.bf16 %v8298_v62 }
 0x6ec   : > { %v2502_v55 = vrot.slane %v6774_v0, %v8295_v38 }
 0x6ed   : > { %v4247_v16 = vmul.f32 0.125, %v4224_v14  ;;  %v4230_v7 = vadd.f32 %v4229_v6, %v4228_v12 }
 0x6ee   : > { %5123 = vmatpush2.bf16.msra.mxu1 %v4969_v13  ;;  %v2506_v13 = vrot.slane %v6774_v0, %v8301_v1  ;;  %v4402_v0 = vld [vmem:[%s8009_s4 + $0x18] sm:$0xff] }
 0x6ef   : > { %v4255_v18 = vadd.f32 0.8, %v4247_v16  ;;  %v4248_v19 = vmul.f32 0.125, %v4230_v7  ;;  %5124 = vmatprep.subr.bf16.mxu1 %v4964_v53  ;;  %v4635_v53 = vunpack.c.h.s8.bf16 %v4419_v5 }
 0x6f1   : > { %6754 = vrsqrt.f32 %v4255_v18  ;;  %v4256_v40 = vadd.f32 0.8, %v4248_v19  ;;  %v4414_v19 = vld [vmem:[%s8009_s4 + $0x78] sm:$0xff] }
 0x6f2   : > { %5125 = vmatpush2.bf16.msra.mxu1 %v4963_v17  ;;  %v4630_v17 = vunpack.c.l.s8.bf16 %v8244_v35 }
 0x6f3   : > { %6756 = vrsqrt.f32 %v4256_v40  ;;  %5126 = vmatprep.subr.bf16.mxu1 %v4958_v20 }
 0x6f6   : > { %5127 = vmatpush2.bf16.msra.mxu1 %v4957_v41 }
 0x6f7   : > { %5128 = vmatprep.subr.bf16.mxu1 %v4952_v42  ;;  %v4629_v42 = vunpack.c.l.s8.bf16 %v4419_v5 }
 0x6fa   : > { %5129 = vmatpush2.bf16.msra.mxu1 %v4951_v58 }
 0x6fb   : > { %5130 = vmatprep.subr.bf16.mxu1 %v4946_v45  ;;  %v4624_v45 = vunpack.c.h.s8.bf16 %v4414_v19 }
 0x6fe   : > { %v6755_v3 = vpop.eup %6754  ;;  %5131 = vmatpush2.bf16.msra.mxu1 %v4945_v23 }
 0x6ff   : > { %v4271_v28 = vmul.f32 %v6755_v3, %v8267_v37  ;;  %5132 = vmatprep.subr.bf16.mxu1 %v4940_v24  ;;  %v4623_v3 = vunpack.c.h.s8.bf16 %v4413_v46 }
 0x700   : > { %v6757_v31 = vpop.eup %6756 }
 0x701   : > { %v4321_v54 = vmul.f32 %v4296_v27, %v4271_v28  ;;  %v4272_v56 = vmul.f32 %v6757_v31, %v8271_v51  ;;  %v4617_v31 = vunpack.c.l.s8.bf16 %v4413_v46 }
 0x702   : > { %5133 = vmatpush2.bf16.msra.mxu1 %v4939_v22 }
 0x703   : > { %v4371_v37 = vadd.f32 %v4346_v34, %v4321_v54  ;;  %v4322_v60 = vmul.f32 %v4300_v26, %v4272_v56  ;;  %5134 = vmatprep.subr.bf16.mxu1 %v4934_v47  ;;  %v4618_v34 = vunpack.c.l.s8.bf16 %v4414_v19  ;;  %v4408_v26 = vld [vmem:[%s8009_s4 + $0x48] sm:$0xff] }
 0x704   : > { %v4444_v19 = vld [vmem:[%s8009_s4 + $0x168] sm:$0xff] }
 0x705   : > { %v4372_v4 = vadd.f32 %v4350_v33, %v4322_v60  ;;  %vm4379_vm7 = vcmp.ge.f32.partialorder %v4371_v37, 0.0  ;;  %v4387_v51 = vmul.f32 0.2, %v4371_v37  ;;  %v4612_v33 = vunpack.c.h.s8.bf16 %v4408_v26 }
 0x706   : > { %5135 = vmatpush2.bf16.msra.mxu1 %v4933_v59  ;;  %v4407_v59 = vld [vmem:[%s8009_s4 + $0x40] sm:$0xff] }
 0x707   : > { %vm4380_vm8 = vcmp.ge.f32.partialorder %v4372_v4, 0.0  ;;  %v4388_v9 = vmul.f32 0.2, %v4372_v4  ;;  %5136 = vmatprep.subr.bf16.mxu1 %v4928_v57  ;;  %v4395_v12 = vsel %vm4379_vm7, %v4371_v37, %v4387_v51  ;;  %v4611_v57 = vunpack.c.h.s8.bf16 %v4407_v59 }
 0x708   : > { %v8309_v7 = vpack.c.bf16 %v4395_v12, %v4395_v12  ;;  %v4605_v5 = vunpack.c.l.s8.bf16 %v4407_v59 }
 0x709   : > { %v4396_v2 = vsel %vm4380_vm8, %v4372_v4, %v4388_v9 }
 0x70a   : > { %v4075_v14 = vpop.f32.mrf.mxu0  ;;  %v8307_v6 = vpack.c.bf16 %v4396_v2, %v4396_v2  ;;  %5137 = vmatpush2.bf16.msra.mxu1 %v4927_v63  ;;  %v4606_v63 = vunpack.c.l.s8.bf16 %v4408_v26  ;;  %v4401_v2 = vld [vmem:[%s8009_s4 + $0x10] sm:$0xff] }
 0x70b   : > { %v4076_v15 = vadd.f32 %v4075_v14, %v2502_v55  ;;  %v4116_v16 = vpop.f32.mrf.mxu1  ;;  %5188 = vmatprep.subr.bf16.mxu1 %v4732_v11 }
 0x70c   : > { %v4077_v18 = vpop.f32.mrf.mxu0  ;;  %5097 = vmatprep.mubr.bf16.mxu0 %v8307_v6 }
 0x70d   : > { %v4117_v20 = vadd.f32 %v4116_v16, %v4076_v15  ;;  %v4078_v21 = vadd.f32 %v4077_v18, %v2506_v13  ;;  %v4118_v40 = vpop.f32.mrf.mxu1  ;;  %5098 = vmatmul.mubr.bf16.vlgmr.msra.gmra.mxu0 %v8309_v7  ;;  %v4600_v13 = vunpack.c.h.s8.bf16 %v4402_v0  ;;  %v4599_v15 = vunpack.c.h.s8.bf16 %v4401_v2 }
 0x70e   : > { %5148 = vmatpush1.bf16.msra.mxu0 %v4635_v53  ;;  %v4079_v41 = vpop.f32.mrf.mxu0  ;;  %5179 = vmatprep.mubr.bf16.mxu0 %v8198_v43  ;;  %v4594_v18 = vunpack.c.l.s8.bf16 %v4402_v0 }
 0x70f   : > { %v4159_v44 = vrot.slane %v4117_v20, 4  ;;  %v4119_v58 = vadd.f32 %v4118_v40, %v4078_v21  ;;  %v4120_v35 = vpop.f32.mrf.mxu1  ;;  %5149 = vmatprep.subr.bf16.mxu0 %v4630_v17  ;;  %v4593_v40 = vunpack.c.l.s8.bf16 %v4401_v2 }
 0x710   : > { %v4080_v23 = vpop.f32.mrf.mxu0 }
 0x711   : > { %v4160_v24 = vadd.f32 %v4159_v44, %v4117_v20  ;;  %v4165_v25 = vrot.slane %v4119_v58, 4  ;;  %v4121_v27 = vpop.f32.mrf.mxu1  ;;  %v4684_v44 = vunpack.c.h.s8.bf16 %v4444_v19 }
 0x712   : > { %5150 = vmatpush1.bf16.msra.mxu0 %v4629_v42  ;;  %v4438_v27 = vld [vmem:[%s8009_s4 + $0x138] sm:$0xff] }
 0x713   : > { %v4161_v22 = vrot.slane %v4160_v24, 2  ;;  %v4166_v28 = vadd.f32 %v4165_v25, %v4119_v58  ;;  %5151 = vmatprep.subr.bf16.mxu0 %v4624_v45  ;;  %v4678_v25 = vunpack.c.l.s8.bf16 %v4444_v19 }
 0x715   : > { %v4162_v47 = vadd.f32 %v4161_v22, %v4160_v24  ;;  %v4167_v49 = vrot.slane %v4166_v28, 2 }
 0x716   : > { %5152 = vmatpush1.bf16.msra.mxu0 %v4623_v3 }
 0x717   : > { %v4163_v54 = vrot.slane %v4162_v47, 1  ;;  %v4168_v56 = vadd.f32 %v4167_v49, %v4166_v28  ;;  %5153 = vmatprep.subr.bf16.mxu0 %v4618_v34  ;;  %v4437_v49 = vld [vmem:[%s8009_s4 + $0x130] sm:$0xff] }
 0x718   : > { %v4665_v59 = vunpack.c.l.s8.bf16 %v4437_v49 }
 0x719   : > { %v4164_v37 = vadd.f32 %v4163_v54, %v4162_v47  ;;  %v4169_v60 = vrot.slane %v4168_v56, 1  ;;  %v4672_v47 = vunpack.c.h.s8.bf16 %v4438_v27  ;;  %v4671_v54 = vunpack.c.h.s8.bf16 %v4437_v49  ;;  %v4509_v49 = vld [vmem:[%s8009_s4 + $0x370] sm:$0xff] }
 0x71a   : > { %5154 = vmatpush1.bf16.msra.mxu0 %v4617_v31 }
 0x71b   : > { %v4177_v4 = vmul.f32 0.125, %v4164_v37  ;;  %v4170_v51 = vadd.f32 %v4169_v60, %v4168_v56  ;;  %5155 = vmatprep.subr.bf16.mxu0 %v4612_v33  ;;  %v4666_v56 = vunpack.c.l.s8.bf16 %v4438_v27  ;;  %v4432_v33 = vld [vmem:[%s8009_s4 + $0x108] sm:$0xff]  ;;  %v4431_v60 = vld [vmem:[%s8009_s4 + $0x100] sm:$0xff]  ;;  %v4510_v27 = vld [vmem:[%s8009_s4 + $0x378] sm:$0xff] }
 0x71c   : > { %v4660_v37 = vunpack.c.h.s8.bf16 %v4432_v33 }
 0x71d   : > { %v8320_v55 = vsub.f32 %v4117_v20, %v4177_v4  ;;  %v4178_v9 = vmul.f32 0.125, %v4170_v51  ;;  %v4654_v4 = vunpack.c.l.s8.bf16 %v4432_v33  ;;  %v4426_v51 = vld [vmem:[%s8009_s4 + $0xd8] sm:$0xff] }
 0x71e   : > { %5156 = vmatpush1.bf16.msra.mxu0 %v4611_v57  ;;  %v4659_v57 = vunpack.c.h.s8.bf16 %v4431_v60  ;;  %v4648_v2 = vunpack.c.h.s8.bf16 %v4426_v51 }
 0x71f   : > { %v4193_v11 = vmul.f32 %v8320_v55, %v8320_v55  ;;  %v8324_v12 = vsub.f32 %v4119_v58, %v4178_v9  ;;  %5157 = vmatprep.subr.bf16.mxu0 %v4606_v63  ;;  %v4443_v58 = vld [vmem:[%s8009_s4 + $0x160] sm:$0xff]  ;;  %v4304_v63 = vrot.slane %v8175_v8, %v8295_v38  ;;  %v4653_v9 = vunpack.c.l.s8.bf16 %v4431_v60  ;;  %v4456_v60 = vld [vmem:[%s8009_s4 + $0x1c8] sm:$0xff] }
 0x720   : > { %v4683_v46 = vunpack.c.h.s8.bf16 %v4443_v58  ;;  %v4677_v28 = vunpack.c.l.s8.bf16 %v4443_v58 }
 0x721   : > { %v4231_v14 = vrot.slane %v4193_v11, 4  ;;  %v4194_v53 = vmul.f32 %v8324_v12, %v8324_v12 }
 0x722   : > { %5158 = vmatpush1.bf16.msra.mxu0 %v4605_v5  ;;  %v4354_v5 = vrot.slane %v8178_v10, %v8295_v38 }
 0x723   : > { %v4232_v16 = vadd.f32 %v4231_v14, %v4193_v11  ;;  %v4237_v17 = vrot.slane %v4194_v53, 4  ;;  %5159 = vmatprep.subr.bf16.mxu0 %v4600_v13  ;;  %v4308_v13 = vrot.slane %v8175_v8, %v8301_v1  ;;  %v4425_v14 = vld [vmem:[%s8009_s4 + $0xd0] sm:$0xff] }
 0x725   : > { %v4233_v20 = vrot.slane %v4232_v16, 2  ;;  %v4238_v21 = vadd.f32 %v4237_v17, %v4194_v53  ;;  %v4358_v17 = vrot.slane %v8178_v10, %v8301_v1  ;;  %v4467_v1 = vld [vmem:[%s8009_s4 + $0x220] sm:$0xff] }
 0x726   : > { %5160 = vmatpush1.bf16.msra.mxu0 %v4599_v15 }
 0x727   : > { %v4234_v41 = vadd.f32 %v4233_v20, %v4232_v16  ;;  %v4239_v42 = vrot.slane %v4238_v21, 2  ;;  %5161 = vmatprep.subr.bf16.mxu0 %v4594_v18  ;;  %v4647_v18 = vunpack.c.h.s8.bf16 %v4425_v14  ;;  %v4516_v20 = vld [vmem:[%s8009_s4 + $0x3a8] sm:$0xff] }
 0x728   : > { %v4828_v10 = vunpack.c.h.s8.bf16 %v4516_v20 }
 0x729   : > { %v4235_v35 = vrot.slane %v4234_v41, 1  ;;  %v4240_v45 = vadd.f32 %v4239_v42, %v4238_v21 }
 0x72a   : > { %5162 = vmatpush1.bf16.msra.mxu0 %v4593_v40  ;;  %v4641_v40 = vunpack.c.l.s8.bf16 %v4425_v14 }
 0x72b   : > { %v4236_v23 = vadd.f32 %v4235_v35, %v4234_v41  ;;  %v4241_v24 = vrot.slane %v4240_v45, 1  ;;  %5163 = vmatprep.subr.bf16.mxu0 %v4684_v44  ;;  %v4515_v41 = vld [vmem:[%s8009_s4 + $0x3a0] sm:$0xff]  ;;  %v4731_v35 = vunpack.c.h.s8.bf16 %v4467_v1 }
 0x72d   : > { %v4249_v3 = vmul.f32 0.125, %v4236_v23  ;;  %v4242_v22 = vadd.f32 %v4241_v24, %v4240_v45  ;;  %v4827_v45 = vunpack.c.h.s8.bf16 %v4515_v41  ;;  %v4726_v23 = vunpack.c.l.s8.bf16 %v8298_v62 }
 0x72e   : > { %5164 = vmatpush2.bf16.msra.mxu0 %v4683_v46  ;;  %v4822_v24 = vunpack.c.l.s8.bf16 %v4516_v20 }
 0x72f   : > { %v4257_v34 = vadd.f32 0.8, %v4249_v3  ;;  %v4250_v26 = vmul.f32 0.125, %v4242_v22  ;;  %5165 = vmatprep.subr.bf16.mxu0 %v4678_v25  ;;  %v4462_v25 = vld [vmem:[%s8009_s4 + $0x1f8] sm:$0xff]  ;;  %v4725_v22 = vunpack.c.l.s8.bf16 %v4467_v1 }
 0x731   : > { %6758 = vrsqrt.f32 %v4257_v34  ;;  %v4258_v31 = vadd.f32 0.8, %v4250_v26  ;;  %v4720_v34 = vunpack.c.h.s8.bf16 %v4462_v25  ;;  %v4816_v26 = vunpack.c.h.s8.bf16 %v4510_v27 }
 0x732   : > { %5166 = vmatpush2.bf16.msra.mxu0 %v4677_v28  ;;  %v4821_v28 = vunpack.c.l.s8.bf16 %v4515_v41 }
 0x733   : > { %6760 = vrsqrt.f32 %v4258_v31  ;;  %5167 = vmatprep.subr.bf16.mxu0 %v4672_v47  ;;  %v4461_v47 = vld [vmem:[%s8009_s4 + $0x1f0] sm:$0xff] }
 0x736   : > { %5168 = vmatpush2.bf16.msra.mxu0 %v4671_v54  ;;  %v4719_v54 = vunpack.c.h.s8.bf16 %v4461_v47 }
 0x737   : > { %5169 = vmatprep.subr.bf16.mxu0 %v4666_v56  ;;  %v4815_v56 = vunpack.c.h.s8.bf16 %v4509_v49 }
 0x73a   : > { %5170 = vmatpush2.bf16.msra.mxu0 %v4665_v59  ;;  %v4714_v59 = vunpack.c.l.s8.bf16 %v4462_v25 }
 0x73b   : > { %5171 = vmatprep.subr.bf16.mxu0 %v4660_v37  ;;  %v4810_v37 = vunpack.c.l.s8.bf16 %v4510_v27 }
 0x73e   : > { %v6759_v0 = vpop.eup %6758  ;;  %5172 = vmatpush2.bf16.msra.mxu0 %v4659_v57  ;;  %v4504_v57 = vld [vmem:[%s8009_s4 + $0x348] sm:$0xff] }
 0x73f   : > { %v4273_v11 = vmul.f32 %v6759_v0, %v8320_v55  ;;  %5173 = vmatprep.subr.bf16.mxu0 %v4654_v4  ;;  %v4642_v55 = vunpack.c.l.s8.bf16 %v4426_v51  ;;  %v4713_v4 = vunpack.c.l.s8.bf16 %v4461_v47  ;;  %v4809_v51 = vunpack.c.l.s8.bf16 %v4509_v49 }
 0x740   : > { %v6761_v53 = vpop.eup %6760  ;;  %v4804_v0 = vunpack.c.h.s8.bf16 %v4504_v57  ;;  %v4798_v14 = vunpack.c.l.s8.bf16 %v4504_v57  ;;  %v4528_v57 = vld [vmem:[%s8009_s4 + $0x408] sm:$0xff] }
 0x741   : > { %v4323_v15 = vmul.f32 %v4304_v63, %v4273_v11  ;;  %v4274_v16 = vmul.f32 %v6761_v53, %v8324_v12  ;;  %v4708_v63 = vunpack.c.h.s8.bf16 %v4456_v60  ;;  %v4450_v53 = vld [vmem:[%s8009_s4 + $0x198] sm:$0xff] }
 0x742   : > { %5174 = vmatpush2.bf16.msra.mxu0 %v4653_v9  ;;  %v4455_v9 = vld [vmem:[%s8009_s4 + $0x1c0] sm:$0xff] }
 0x743   : > { %v4373_v38 = vadd.f32 %v4354_v5, %v4323_v15  ;;  %v4324_v19 = vmul.f32 %v4308_v13, %v4274_v16  ;;  %5175 = vmatprep.subr.bf16.mxu0 %v4648_v2  ;;  %v4503_v5 = vld [vmem:[%s8009_s4 + $0x340] sm:$0xff]  ;;  %v4707_v11 = vunpack.c.h.s8.bf16 %v4455_v9  ;;  %v4702_v2 = vunpack.c.l.s8.bf16 %v4456_v60  ;;  %v4498_v15 = vld [vmem:[%s8009_s4 + $0x318] sm:$0xff]  ;;  %v4480_v60 = vld [vmem:[%s8009_s4 + $0x288] sm:$0xff] }
 0x744   : > { %v4803_v13 = vunpack.c.h.s8.bf16 %v4503_v5  ;;  %v4701_v16 = vunpack.c.l.s8.bf16 %v4455_v9  ;;  %v4479_v9 = vld [vmem:[%s8009_s4 + $0x280] sm:$0xff] }
 0x745   : > { %v4374_v8 = vadd.f32 %v4358_v17, %v4324_v19  ;;  %vm4381_vm9 = vcmp.ge.f32.partialorder %v4373_v38, 0.0  ;;  %v4389_v21 = vmul.f32 0.2, %v4373_v38  ;;  %v4797_v17 = vunpack.c.l.s8.bf16 %v4503_v5  ;;  %v4449_v19 = vld [vmem:[%s8009_s4 + $0x190] sm:$0xff]  ;;  %v4527_v5 = vld [vmem:[%s8009_s4 + $0x400] sm:$0xff] }
 0x746   : > { %5176 = vmatpush2.bf16.msra.mxu0 %v4647_v18  ;;  %v4696_v18 = vunpack.c.h.s8.bf16 %v4450_v53  ;;  %v4695_v20 = vunpack.c.h.s8.bf16 %v4449_v19  ;;  %v4689_v1 = vunpack.c.l.s8.bf16 %v4449_v19  ;;  %v4473_v19 = vld [vmem:[%s8009_s4 + $0x250] sm:$0xff] }
 0x747   : > { %5177 = vmatprep.subr.bf16.mxu0 %v4642_v55  ;;  %vm4382_vm10 = vcmp.ge.f32.partialorder %v4374_v8, 0.0  ;;  %v4390_v12 = vmul.f32 0.2, %v4374_v8  ;;  %v4397_v42 = vsel %vm4381_vm9, %v4373_v38, %v4389_v21  ;;  %v4792_v38 = vunpack.c.h.s8.bf16 %v4498_v15  ;;  %v4497_v55 = vld [vmem:[%s8009_s4 + $0x310] sm:$0xff] }
 0x748   : > { %v8352_v46 = vpack.c.bf16 %v4397_v42, %v4397_v42  ;;  %v4690_v21 = vunpack.c.l.s8.bf16 %v4450_v53  ;;  %v4785_v41 = vunpack.c.l.s8.bf16 %v4497_v55  ;;  %v4474_v53 = vld [vmem:[%s8009_s4 + $0x258] sm:$0xff] }
 0x749   : > { %v4398_v44 = vsel %vm4382_vm10, %v4374_v8, %v4390_v12  ;;  %v4791_v8 = vunpack.c.h.s8.bf16 %v4497_v55  ;;  %v4492_v12 = vld [vmem:[%s8009_s4 + $0x2e8] sm:$0xff]  ;;  %v4521_v55 = vld [vmem:[%s8009_s4 + $0x3d0] sm:$0xff] }
 0x74a   : > { %5178 = vmatpush2.bf16.msra.mxu0 %v4641_v40  ;;  %v8350_v58 = vpack.c.bf16 %v4398_v44, %v4398_v44  ;;  %v4786_v40 = vunpack.c.l.s8.bf16 %v4498_v15  ;;  %v4780_v42 = vunpack.c.h.s8.bf16 %v4492_v12  ;;  %v4774_v25 = vunpack.c.l.s8.bf16 %v4492_v12  ;;  %v4522_v15 = vld [vmem:[%s8009_s4 + $0x3d8] sm:$0xff]  ;;  %v4564_v12 = vld [vmem:[%s8009_s4 + $0x528] sm:$0xff] }
 0x74b   : > { %5229 = vmatprep.subr.bf16.mxu0 %v4828_v10  ;;  %v4540_v10 = vld [vmem:[%s8009_s4 + $0x468] sm:$0xff] }
 0x74c   : > { %5138 = vmatprep.mubr.bf16.mxu1 %v8350_v58  ;;  %v4876_v44 = vunpack.c.h.s8.bf16 %v4540_v10  ;;  %v4870_v27 = vunpack.c.l.s8.bf16 %v4540_v10  ;;  %v4422_v10 = vld [vmem:[%s8009_s4 + $0xb8] sm:$0xff] }
 0x74d   : > { %5180 = vmatmul.mubr.bf16.vlgmr.msra.gmra.mxu0 %v8200_v52  ;;  %5139 = vmatmul.mubr.bf16.vlgmr.msra.gmra.mxu1 %v8352_v46  ;;  %v8360_v3 = vpop.f32.mrf.mxu0 }
 0x74e   : > { %5189 = vmatpush1.bf16.msra.mxu1 %v4731_v35  ;;  %5230 = vmatpush1.bf16.msra.mxu0 %v4827_v45  ;;  %v4491_v35 = vld [vmem:[%s8009_s4 + $0x2e0] sm:$0xff] }
 0x74f   : > { %5261 = vmatprep.mubr.bf16.mxu0 %v8307_v6  ;;  %5220 = vmatprep.mubr.bf16.mxu1 %v8255_v61  ;;  %v8364_v62 = vpop.f32.mrf.mxu0  ;;  %v4539_v45 = vld [vmem:[%s8009_s4 + $0x460] sm:$0xff] }
 0x750   : > { %5190 = vmatprep.subr.bf16.mxu1 %v4726_v23  ;;  %5231 = vmatprep.subr.bf16.mxu0 %v4822_v24  ;;  %v4779_v23 = vunpack.c.h.s8.bf16 %v4491_v35  ;;  %v4875_v24 = vunpack.c.h.s8.bf16 %v4539_v45 }
 0x751   : > { %v5021_v31 = vpop.f32.mrf.mxu0 }
 0x752   : > { %5191 = vmatpush1.bf16.msra.mxu1 %v4725_v22  ;;  %5232 = vmatpush1.bf16.msra.mxu0 %v4821_v28  ;;  %v4486_v22 = vld [vmem:[%s8009_s4 + $0x2b8] sm:$0xff]  ;;  %v4485_v31 = vld [vmem:[%s8009_s4 + $0x2b0] sm:$0xff] }
 0x753   : > { %v5022_v33 = vpop.f32.mrf.mxu0  ;;  %5192 = vmatprep.subr.bf16.mxu1 %v4720_v34  ;;  %5233 = vmatprep.subr.bf16.mxu0 %v4816_v26  ;;  %v4534_v28 = vld [vmem:[%s8009_s4 + $0x438] sm:$0xff]  ;;  %v4773_v34 = vunpack.c.l.s8.bf16 %v4491_v35  ;;  %v4869_v26 = vunpack.c.l.s8.bf16 %v4539_v45  ;;  %v4768_v47 = vunpack.c.h.s8.bf16 %v4486_v22  ;;  %v4563_v35 = vld [vmem:[%s8009_s4 + $0x520] sm:$0xff]  ;;  %v4421_v45 = vld [vmem:[%s8009_s4 + $0xb0] sm:$0xff] }
 0x754   : > { %v4864_v49 = vunpack.c.h.s8.bf16 %v4534_v28 }
 0x756   : > { %5193 = vmatpush1.bf16.msra.mxu1 %v4719_v54  ;;  %5234 = vmatpush1.bf16.msra.mxu0 %v4815_v56  ;;  %v4533_v54 = vld [vmem:[%s8009_s4 + $0x430] sm:$0xff]  ;;  %v4767_v56 = vunpack.c.h.s8.bf16 %v4485_v31 }
 0x757   : > { %5194 = vmatprep.subr.bf16.mxu1 %v4714_v59  ;;  %5235 = vmatprep.subr.bf16.mxu0 %v4810_v37  ;;  %v4863_v33 = vunpack.c.h.s8.bf16 %v4533_v54  ;;  %v4762_v59 = vunpack.c.l.s8.bf16 %v4486_v22  ;;  %v4858_v37 = vunpack.c.l.s8.bf16 %v4534_v28  ;;  %v4558_v22 = vld [vmem:[%s8009_s4 + $0x4f8] sm:$0xff] }
 0x75a   : > { %5195 = vmatpush1.bf16.msra.mxu1 %v4713_v4  ;;  %5236 = vmatpush1.bf16.msra.mxu0 %v4809_v51  ;;  %v4761_v4 = vunpack.c.l.s8.bf16 %v4485_v31  ;;  %v4857_v51 = vunpack.c.l.s8.bf16 %v4533_v54  ;;  %v4631_v31 = vunpack.c.l.s8.bf16 %v4421_v45  ;;  %v4912_v54 = vunpack.c.h.s8.bf16 %v4558_v22 }
 0x75b   : > { %5196 = vmatprep.subr.bf16.mxu1 %v4708_v63  ;;  %5237 = vmatprep.subr.bf16.mxu0 %v4804_v0  ;;  %v4756_v63 = vunpack.c.h.s8.bf16 %v4480_v60  ;;  %v4852_v0 = vunpack.c.h.s8.bf16 %v4528_v57 }
 0x75e   : > { %5197 = vmatpush1.bf16.msra.mxu1 %v4707_v11  ;;  %5238 = vmatpush1.bf16.msra.mxu0 %v4803_v13  ;;  %v4755_v11 = vunpack.c.h.s8.bf16 %v4479_v9  ;;  %v4851_v13 = vunpack.c.h.s8.bf16 %v4527_v5 }
 0x75f   : > { %5198 = vmatprep.subr.bf16.mxu1 %v4702_v2  ;;  %5239 = vmatprep.subr.bf16.mxu0 %v4798_v14  ;;  %v4750_v2 = vunpack.c.l.s8.bf16 %v4480_v60  ;;  %v4846_v14 = vunpack.c.l.s8.bf16 %v4528_v57 }
 0x762   : > { %5199 = vmatpush1.bf16.msra.mxu1 %v4701_v16  ;;  %5240 = vmatpush1.bf16.msra.mxu0 %v4797_v17  ;;  %v4749_v16 = vunpack.c.l.s8.bf16 %v4479_v9  ;;  %v4845_v17 = vunpack.c.l.s8.bf16 %v4527_v5 }
 0x763   : > { %5200 = vmatprep.subr.bf16.mxu1 %v4696_v18  ;;  %5241 = vmatprep.subr.bf16.mxu0 %v4792_v38  ;;  %v4744_v18 = vunpack.c.h.s8.bf16 %v4474_v53  ;;  %v4840_v38 = vunpack.c.h.s8.bf16 %v4522_v15 }
 0x766   : > { %5201 = vmatpush1.bf16.msra.mxu1 %v4695_v20  ;;  %5242 = vmatpush1.bf16.msra.mxu0 %v4791_v8  ;;  %v4743_v20 = vunpack.c.h.s8.bf16 %v4473_v19  ;;  %v4839_v8 = vunpack.c.h.s8.bf16 %v4521_v55 }
 0x767   : > { %5202 = vmatprep.subr.bf16.mxu1 %v4690_v21  ;;  %5243 = vmatprep.subr.bf16.mxu0 %v4786_v40  ;;  %v4738_v21 = vunpack.c.l.s8.bf16 %v4474_v53  ;;  %v4834_v40 = vunpack.c.l.s8.bf16 %v4522_v15 }
 0x76a   : > { %5203 = vmatpush1.bf16.msra.mxu1 %v4689_v1  ;;  %5244 = vmatpush1.bf16.msra.mxu0 %v4785_v41  ;;  %v4737_v1 = vunpack.c.l.s8.bf16 %v4473_v19  ;;  %v4833_v41 = vunpack.c.l.s8.bf16 %v4521_v55 }
 0x76b   : > { %5204 = vmatprep.subr.bf16.mxu1 %v4780_v42  ;;  %5245 = vmatprep.subr.bf16.mxu0 %v4876_v44  ;;  %v4924_v42 = vunpack.c.h.s8.bf16 %v4564_v12  ;;  %v4638_v44 = vunpack.c.h.s8.bf16 %v4422_v10 }
 0x76e   : > { %5205 = vmatpush2.bf16.msra.mxu1 %v4779_v23  ;;  %5246 = vmatpush2.bf16.msra.mxu0 %v4875_v24  ;;  %v4923_v23 = vunpack.c.h.s8.bf16 %v4563_v35  ;;  %v4637_v24 = vunpack.c.h.s8.bf16 %v4421_v45 }
 0x76f   : > { %5206 = vmatprep.subr.bf16.mxu1 %v4774_v25  ;;  %5247 = vmatprep.subr.bf16.mxu0 %v4870_v27  ;;  %v4918_v25 = vunpack.c.l.s8.bf16 %v4564_v12  ;;  %v4632_v27 = vunpack.c.l.s8.bf16 %v4422_v10 }
 0x772   : > { %5207 = vmatpush2.bf16.msra.mxu1 %v4773_v34  ;;  %5248 = vmatpush2.bf16.msra.mxu0 %v4869_v26  ;;  %v4416_v34 = vld [vmem:[%s8009_s4 + $0x88] sm:$0xff] }
 0x773   : > { %5208 = vmatprep.subr.bf16.mxu1 %v4768_v47  ;;  %5249 = vmatprep.subr.bf16.mxu0 %v4864_v49  ;;  %v4917_v47 = vunpack.c.l.s8.bf16 %v4563_v35 }
 0x776   : > { %5209 = vmatpush2.bf16.msra.mxu1 %v4767_v56  ;;  %5250 = vmatpush2.bf16.msra.mxu0 %v4863_v33  ;;  %v4557_v56 = vld [vmem:[%s8009_s4 + $0x4f0] sm:$0xff] }
 0x777   : > { %5210 = vmatprep.subr.bf16.mxu1 %v4762_v59  ;;  %5251 = vmatprep.subr.bf16.mxu0 %v4858_v37  ;;  %v4415_v59 = vld [vmem:[%s8009_s4 + $0x80] sm:$0xff]  ;;  %v4911_v60 = vunpack.c.h.s8.bf16 %v4557_v56 }
 0x778   : > { %v4619_v9 = vunpack.c.l.s8.bf16 %v4415_v59 }
 0x77a   : > { %5211 = vmatpush2.bf16.msra.mxu1 %v4761_v4  ;;  %5252 = vmatpush2.bf16.msra.mxu0 %v4857_v51  ;;  %v4906_v4 = vunpack.c.l.s8.bf16 %v4558_v22  ;;  %v4620_v51 = vunpack.c.l.s8.bf16 %v4416_v34 }
 0x77b   : > { %5212 = vmatprep.subr.bf16.mxu1 %v4756_v63  ;;  %5253 = vmatprep.subr.bf16.mxu0 %v4852_v0  ;;  %v4552_v63 = vld [vmem:[%s8009_s4 + $0x4c8] sm:$0xff]  ;;  %v4905_v0 = vunpack.c.l.s8.bf16 %v4557_v56 }
 0x77c   : > { %v4900_v5 = vunpack.c.h.s8.bf16 %v4552_v63  ;;  %v4894_v15 = vunpack.c.l.s8.bf16 %v4552_v63  ;;  %v4434_v63 = vld [vmem:[%s8009_s4 + $0x118] sm:$0xff] }
 0x77e   : > { %5213 = vmatpush2.bf16.msra.mxu1 %v4755_v11  ;;  %5254 = vmatpush2.bf16.msra.mxu0 %v4851_v13  ;;  %v4551_v11 = vld [vmem:[%s8009_s4 + $0x4c0] sm:$0xff] }
 0x77f   : > { %5214 = vmatprep.subr.bf16.mxu1 %v4750_v2  ;;  %5255 = vmatprep.subr.bf16.mxu0 %v4846_v14  ;;  %v4409_v2 = vld [vmem:[%s8009_s4 + $0x50] sm:$0xff]  ;;  %v4899_v14 = vunpack.c.h.s8.bf16 %v4551_v11 }
 0x780   : > { %v4613_v53 = vunpack.c.h.s8.bf16 %v4409_v2  ;;  %v4607_v19 = vunpack.c.l.s8.bf16 %v4409_v2 }
 0x782   : > { %5215 = vmatpush2.bf16.msra.mxu1 %v4749_v16  ;;  %5256 = vmatpush2.bf16.msra.mxu0 %v4845_v17  ;;  %v4546_v17 = vld [vmem:[%s8009_s4 + $0x498] sm:$0xff] }
 0x783   : > { %5216 = vmatprep.subr.bf16.mxu1 %v4744_v18  ;;  %5257 = vmatprep.subr.bf16.mxu0 %v4840_v38  ;;  %v4404_v18 = vld [vmem:[%s8009_s4 + $0x28] sm:$0xff]  ;;  %v4893_v38 = vunpack.c.l.s8.bf16 %v4551_v11  ;;  %v4888_v55 = vunpack.c.h.s8.bf16 %v4546_v17  ;;  %v4882_v10 = vunpack.c.l.s8.bf16 %v4546_v17  ;;  %v4662_v11 = vunpack.c.h.s8.bf16 %v4434_v63 }
 0x784   : > { %v4428_v17 = vld [vmem:[%s8009_s4 + $0xe8] sm:$0xff] }
 0x786   : > { %5217 = vmatpush2.bf16.msra.mxu1 %v4743_v20  ;;  %5258 = vmatpush2.bf16.msra.mxu0 %v4839_v8  ;;  %v4545_v20 = vld [vmem:[%s8009_s4 + $0x490] sm:$0xff]  ;;  %v4602_v8 = vunpack.c.h.s8.bf16 %v4404_v18 }
 0x787   : > { %5218 = vmatprep.subr.bf16.mxu1 %v4738_v21  ;;  %5259 = vmatprep.subr.bf16.mxu0 %v4834_v40  ;;  %v4403_v21 = vld [vmem:[%s8009_s4 + $0x20] sm:$0xff]  ;;  %v4887_v40 = vunpack.c.h.s8.bf16 %v4545_v20 }
 0x788   : > { %v4601_v12 = vunpack.c.h.s8.bf16 %v4403_v21  ;;  %v4595_v35 = vunpack.c.l.s8.bf16 %v4403_v21 }
 0x78a   : > { %5219 = vmatpush2.bf16.msra.mxu1 %v4737_v1  ;;  %5260 = vmatpush2.bf16.msra.mxu0 %v4833_v41  ;;  %v4596_v1 = vunpack.c.l.s8.bf16 %v4404_v18  ;;  %v4588_v41 = vld [vmem:[%s8009_s4 + $0x5e8] sm:$0xff] }
 0x78b   : > { %5270 = vmatprep.subr.bf16.mxu1 %v4924_v42  ;;  %5311 = vmatprep.subr.bf16.mxu0 %v4638_v44  ;;  %v4446_v42 = vld [vmem:[%s8009_s4 + $0x178] sm:$0xff]  ;;  %v4881_v44 = vunpack.c.l.s8.bf16 %v4545_v20  ;;  %v4972_v45 = vunpack.c.h.s8.bf16 %v4588_v41  ;;  %v4650_v20 = vunpack.c.h.s8.bf16 %v4428_v17 }
 0x78d   : > { %5221 = vmatmul.mubr.bf16.vlgmr.msra.gmra.mxu1 %v8257_v39  ;;  %5262 = vmatmul.mubr.bf16.vlgmr.msra.gmra.mxu0 %v8309_v7  ;;  %v5058_v28 = vpop.f32.mrf.mxu1 }
 0x78e   : > { %v8401_v26 = vadd.f32 %v5058_v28, %v8360_v3  ;;  %5271 = vmatpush1.bf16.msra.mxu1 %v4923_v23  ;;  %5302 = vmatprep.mubr.bf16.mxu1 %v8350_v58  ;;  %v4626_v3 = vunpack.c.h.s8.bf16 %v4416_v34  ;;  %v4587_v23 = vld [vmem:[%s8009_s4 + $0x5e0] sm:$0xff]  ;;  %v4966_v28 = vunpack.c.l.s8.bf16 %v4588_v41  ;;  %v4680_v34 = vunpack.c.l.s8.bf16 %v4446_v42  ;;  %v4518_v41 = vld [vmem:[%s8009_s4 + $0x3b8] sm:$0xff] }
 0x78f   : > { %5312 = vmatpush1.bf16.msra.mxu0 %v4637_v24  ;;  %5343 = vmatprep.mubr.bf16.mxu0 %v8198_v43  ;;  %v5060_v49 = vpop.f32.mrf.mxu1  ;;  %v4625_v43 = vunpack.c.h.s8.bf16 %v4415_v59  ;;  %v4686_v24 = vunpack.c.h.s8.bf16 %v4446_v42 }
 0x790   : > { %v8407_v33 = vadd.f32 %v5060_v49, %v8364_v62  ;;  %5272 = vmatprep.subr.bf16.mxu1 %v4918_v25  ;;  %5313 = vmatprep.subr.bf16.mxu0 %v4632_v27  ;;  %v4410_v62 = vld [vmem:[%s8009_s4 + $0x58] sm:$0xff]  ;;  %v4445_v25 = vld [vmem:[%s8009_s4 + $0x170] sm:$0xff]  ;;  %v4971_v27 = vunpack.c.h.s8.bf16 %v4587_v23  ;;  %v4440_v49 = vld [vmem:[%s8009_s4 + $0x148] sm:$0xff] }
 0x791   : > { %v5062_v37 = vpop.f32.mrf.mxu1  ;;  %v4614_v13 = vunpack.c.h.s8.bf16 %v4410_v62  ;;  %v4608_v16 = vunpack.c.l.s8.bf16 %v4410_v62  ;;  %v4685_v22 = vunpack.c.h.s8.bf16 %v4445_v25  ;;  %v4674_v59 = vunpack.c.h.s8.bf16 %v4440_v49 }
 0x792   : > { %5273 = vmatpush1.bf16.msra.mxu1 %v4917_v47  ;;  %v4582_v47 = vld [vmem:[%s8009_s4 + $0x5b8] sm:$0xff]  ;;  %v4439_v37 = vld [vmem:[%s8009_s4 + $0x140] sm:$0xff] }
 0x793   : > { %5314 = vmatpush1.bf16.msra.mxu0 %v4631_v31  ;;  %v5063_v57 = vpop.f32.mrf.mxu1  ;;  %5274 = vmatprep.subr.bf16.mxu1 %v4912_v54  ;;  %v4965_v31 = vunpack.c.l.s8.bf16 %v4587_v23  ;;  %v4679_v54 = vunpack.c.l.s8.bf16 %v4445_v25  ;;  %v4960_v56 = vunpack.c.h.s8.bf16 %v4582_v47  ;;  %v4830_v23 = vunpack.c.h.s8.bf16 %v4518_v41 }
 0x794   : > { %5315 = vmatprep.subr.bf16.mxu0 %v4626_v3  ;;  %v4581_v3 = vld [vmem:[%s8009_s4 + $0x5b0] sm:$0xff]  ;;  %v4673_v57 = vunpack.c.h.s8.bf16 %v4439_v37 }
 0x795   : > { %v4953_v62 = vunpack.c.l.s8.bf16 %v4581_v3 }
 0x796   : > { %5275 = vmatpush1.bf16.msra.mxu1 %v4911_v60  ;;  %v4959_v60 = vunpack.c.h.s8.bf16 %v4581_v3 }
 0x797   : > { %5316 = vmatpush1.bf16.msra.mxu0 %v4625_v43  ;;  %5276 = vmatprep.subr.bf16.mxu1 %v4906_v4  ;;  %v4954_v43 = vunpack.c.l.s8.bf16 %v4582_v47  ;;  %v4668_v4 = vunpack.c.l.s8.bf16 %v4440_v49  ;;  %v4824_v47 = vunpack.c.l.s8.bf16 %v4518_v41  ;;  %v4512_v49 = vld [vmem:[%s8009_s4 + $0x388] sm:$0xff]  ;;  %v4542_v41 = vld [vmem:[%s8009_s4 + $0x478] sm:$0xff] }
 0x798   : > { %5317 = vmatprep.subr.bf16.mxu0 %v4620_v51  ;;  %v4576_v51 = vld [vmem:[%s8009_s4 + $0x588] sm:$0xff] }
 0x79a   : > { %5277 = vmatpush1.bf16.msra.mxu1 %v4905_v0  ;;  %v4667_v0 = vunpack.c.l.s8.bf16 %v4439_v37  ;;  %v4818_v37 = vunpack.c.h.s8.bf16 %v4512_v49 }
 0x79b   : > { %5318 = vmatpush1.bf16.msra.mxu0 %v4619_v9  ;;  %5278 = vmatprep.subr.bf16.mxu1 %v4900_v5  ;;  %v4948_v9 = vunpack.c.h.s8.bf16 %v4576_v51  ;;  %v4575_v5 = vld [vmem:[%s8009_s4 + $0x580] sm:$0xff] }
 0x79c   : > { %5319 = vmatprep.subr.bf16.mxu0 %v4614_v13  ;;  %v4433_v13 = vld [vmem:[%s8009_s4 + $0x110] sm:$0xff]  ;;  %v4947_v2 = vunpack.c.h.s8.bf16 %v4575_v5  ;;  %v4941_v18 = vunpack.c.l.s8.bf16 %v4575_v5 }
 0x79d   : > { %v4457_v5 = vld [vmem:[%s8009_s4 + $0x1d0] sm:$0xff] }
 0x79e   : > { %5279 = vmatpush1.bf16.msra.mxu1 %v4899_v14  ;;  %v4661_v14 = vunpack.c.h.s8.bf16 %v4433_v13 }
 0x79f   : > { %5320 = vmatpush1.bf16.msra.mxu0 %v4613_v53  ;;  %5280 = vmatprep.subr.bf16.mxu1 %v4894_v15  ;;  %v4942_v53 = vunpack.c.l.s8.bf16 %v4576_v51  ;;  %v4656_v15 = vunpack.c.l.s8.bf16 %v4434_v63  ;;  %v4812_v51 = vunpack.c.l.s8.bf16 %v4512_v49  ;;  %v4458_v63 = vld [vmem:[%s8009_s4 + $0x1d8] sm:$0xff]  ;;  %v4536_v49 = vld [vmem:[%s8009_s4 + $0x448] sm:$0xff] }
 0x7a0   : > { %5321 = vmatprep.subr.bf16.mxu0 %v4608_v16  ;;  %v4570_v16 = vld [vmem:[%s8009_s4 + $0x558] sm:$0xff] }
 0x7a2   : > { %5281 = vmatpush1.bf16.msra.mxu1 %v4893_v38  ;;  %v4655_v38 = vunpack.c.l.s8.bf16 %v4433_v13  ;;  %v4505_v13 = vld [vmem:[%s8009_s4 + $0x350] sm:$0xff] }
 0x7a3   : > { %5322 = vmatpush1.bf16.msra.mxu0 %v4607_v19  ;;  %5282 = vmatprep.subr.bf16.mxu1 %v4888_v55  ;;  %v4936_v19 = vunpack.c.h.s8.bf16 %v4570_v16  ;;  %v4569_v55 = vld [vmem:[%s8009_s4 + $0x550] sm:$0xff] }
 0x7a4   : > { %5323 = vmatprep.subr.bf16.mxu0 %v4602_v8  ;;  %v4427_v8 = vld [vmem:[%s8009_s4 + $0xe0] sm:$0xff]  ;;  %v4935_v21 = vunpack.c.h.s8.bf16 %v4569_v55  ;;  %v4929_v42 = vunpack.c.l.s8.bf16 %v4569_v55 }
 0x7a5   : > { %v4451_v55 = vld [vmem:[%s8009_s4 + $0x1a0] sm:$0xff] }
 0x7a6   : > { %5283 = vmatpush1.bf16.msra.mxu1 %v4887_v40  ;;  %v4649_v40 = vunpack.c.h.s8.bf16 %v4427_v8 }
 0x7a7   : > { %5324 = vmatpush1.bf16.msra.mxu0 %v4601_v12  ;;  %5284 = vmatprep.subr.bf16.mxu1 %v4882_v10  ;;  %v4930_v12 = vunpack.c.l.s8.bf16 %v4570_v16  ;;  %v4644_v10 = vunpack.c.l.s8.bf16 %v4428_v17  ;;  %v4452_v16 = vld [vmem:[%s8009_s4 + $0x1a8] sm:$0xff] }
 0x7a8   : > { %5325 = vmatprep.subr.bf16.mxu0 %v4596_v1  ;;  %v4470_v1 = vld [vmem:[%s8009_s4 + $0x238] sm:$0xff]  ;;  %v4500_v17 = vld [vmem:[%s8009_s4 + $0x328] sm:$0xff] }
 0x7aa   : > { %5285 = vmatpush1.bf16.msra.mxu1 %v4881_v44  ;;  %v4643_v44 = vunpack.c.l.s8.bf16 %v4427_v8  ;;  %v4499_v8 = vld [vmem:[%s8009_s4 + $0x320] sm:$0xff] }
 0x7ab   : > { %5326 = vmatpush1.bf16.msra.mxu0 %v4595_v35  ;;  %5286 = vmatprep.subr.bf16.mxu1 %v4972_v45  ;;  %v4734_v35 = vunpack.c.h.s8.bf16 %v4470_v1  ;;  %v4469_v45 = vld [vmem:[%s8009_s4 + $0x230] sm:$0xff] }
 0x7ac   : > { %5327 = vmatprep.subr.bf16.mxu0 %v4686_v24  ;;  %v4517_v24 = vld [vmem:[%s8009_s4 + $0x3b0] sm:$0xff]  ;;  %v4733_v25 = vunpack.c.h.s8.bf16 %v4469_v45 }
 0x7ae   : > { %5287 = vmatpush2.bf16.msra.mxu1 %v4971_v27  ;;  %v4829_v27 = vunpack.c.h.s8.bf16 %v4517_v24 }
 0x7af   : > { %5328 = vmatpush2.bf16.msra.mxu0 %v4685_v22  ;;  %5288 = vmatprep.subr.bf16.mxu1 %v4966_v28  ;;  %v4728_v22 = vunpack.c.l.s8.bf16 %v4470_v1  ;;  %v4464_v28 = vld [vmem:[%s8009_s4 + $0x208] sm:$0xff]  ;;  %v4494_v1 = vld [vmem:[%s8009_s4 + $0x2f8] sm:$0xff] }
 0x7b0   : > { %5329 = vmatprep.subr.bf16.mxu0 %v4680_v34  ;;  %v4722_v3 = vunpack.c.h.s8.bf16 %v4464_v28 }
 0x7b2   : > { %5289 = vmatpush2.bf16.msra.mxu1 %v4965_v31  ;;  %v4727_v31 = vunpack.c.l.s8.bf16 %v4469_v45  ;;  %v4493_v45 = vld [vmem:[%s8009_s4 + $0x2f0] sm:$0xff] }
 0x7b3   : > { %5330 = vmatpush2.bf16.msra.mxu0 %v4679_v54  ;;  %5290 = vmatprep.subr.bf16.mxu1 %v4960_v56  ;;  %v4823_v56 = vunpack.c.l.s8.bf16 %v4517_v24  ;;  %v4541_v24 = vld [vmem:[%s8009_s4 + $0x470] sm:$0xff] }
 0x7b4   : > { %5331 = vmatprep.subr.bf16.mxu0 %v4674_v59  ;;  %v4463_v59 = vld [vmem:[%s8009_s4 + $0x200] sm:$0xff] }
 0x7b6   : > { %5291 = vmatpush2.bf16.msra.mxu1 %v4959_v60  ;;  %v4511_v60 = vld [vmem:[%s8009_s4 + $0x380] sm:$0xff] }
 0x7b7   : > { %5332 = vmatpush2.bf16.msra.mxu0 %v4673_v57  ;;  %5292 = vmatprep.subr.bf16.mxu1 %v4954_v43  ;;  %v4817_v43 = vunpack.c.h.s8.bf16 %v4511_v60 }
 0x7b8   : > { %5333 = vmatprep.subr.bf16.mxu0 %v4668_v4  ;;  %v4716_v4 = vunpack.c.l.s8.bf16 %v4464_v28  ;;  %v4872_v28 = vunpack.c.l.s8.bf16 %v4542_v41 }
 0x7ba   : > { %5293 = vmatpush2.bf16.msra.mxu1 %v4953_v62  ;;  %v4506_v62 = vld [vmem:[%s8009_s4 + $0x358] sm:$0xff] }
 0x7bb   : > { %5334 = vmatpush2.bf16.msra.mxu0 %v4667_v0  ;;  %5294 = vmatprep.subr.bf16.mxu1 %v4948_v9  ;;  %v4811_v0 = vunpack.c.l.s8.bf16 %v4511_v60  ;;  %v4710_v9 = vunpack.c.h.s8.bf16 %v4458_v63  ;;  %v4535_v60 = vld [vmem:[%s8009_s4 + $0x440] sm:$0xff] }
 0x7bc   : > { %5335 = vmatprep.subr.bf16.mxu0 %v4662_v11  ;;  %v4806_v11 = vunpack.c.h.s8.bf16 %v4506_v62 }
 0x7be   : > { %5295 = vmatpush2.bf16.msra.mxu1 %v4947_v2  ;;  %v4709_v2 = vunpack.c.h.s8.bf16 %v4457_v5 }
 0x7bf   : > { %5336 = vmatpush2.bf16.msra.mxu0 %v4661_v14  ;;  %5296 = vmatprep.subr.bf16.mxu1 %v4942_v53  ;;  %v4805_v14 = vunpack.c.h.s8.bf16 %v4505_v13  ;;  %v4704_v53 = vunpack.c.l.s8.bf16 %v4458_v63 }
 0x7c0   : > { %5337 = vmatprep.subr.bf16.mxu0 %v4656_v15  ;;  %v4800_v15 = vunpack.c.l.s8.bf16 %v4506_v62  ;;  %v4859_v62 = vunpack.c.l.s8.bf16 %v4535_v60 }
 0x7c2   : > { %5297 = vmatpush2.bf16.msra.mxu1 %v4941_v18  ;;  %v4703_v18 = vunpack.c.l.s8.bf16 %v4457_v5  ;;  %v4529_v5 = vld [vmem:[%s8009_s4 + $0x410] sm:$0xff] }
 0x7c3   : > { %5338 = vmatpush2.bf16.msra.mxu0 %v4655_v38  ;;  %5298 = vmatprep.subr.bf16.mxu1 %v4936_v19  ;;  %v4799_v38 = vunpack.c.l.s8.bf16 %v4505_v13  ;;  %v4698_v19 = vunpack.c.h.s8.bf16 %v4452_v16  ;;  %v4853_v13 = vunpack.c.h.s8.bf16 %v4529_v5 }
 0x7c4   : > { %5339 = vmatprep.subr.bf16.mxu0 %v4650_v20  ;;  %v4794_v20 = vunpack.c.h.s8.bf16 %v4500_v17 }
 0x7c6   : > { %5299 = vmatpush2.bf16.msra.mxu1 %v4935_v21  ;;  %v4697_v21 = vunpack.c.h.s8.bf16 %v4451_v55 }
 0x7c7   : > { %5340 = vmatpush2.bf16.msra.mxu0 %v4649_v40  ;;  %5300 = vmatprep.subr.bf16.mxu1 %v4930_v12  ;;  %v4793_v40 = vunpack.c.h.s8.bf16 %v4499_v8  ;;  %v4692_v12 = vunpack.c.l.s8.bf16 %v4452_v16 }
 0x7c8   : > { %5341 = vmatprep.subr.bf16.mxu0 %v4644_v10  ;;  %v4788_v10 = vunpack.c.l.s8.bf16 %v4500_v17  ;;  %v4847_v17 = vunpack.c.l.s8.bf16 %v4529_v5 }
 0x7ca   : > { %5301 = vmatpush2.bf16.msra.mxu1 %v4929_v42  ;;  %v4691_v42 = vunpack.c.l.s8.bf16 %v4451_v55  ;;  %v4523_v55 = vld [vmem:[%s8009_s4 + $0x3e0] sm:$0xff] }
 0x7cb   : > { %5342 = vmatpush2.bf16.msra.mxu0 %v4643_v44  ;;  %5352 = vmatprep.subr.bf16.mxu1 %v4734_v35  ;;  %v4787_v44 = vunpack.c.l.s8.bf16 %v4499_v8  ;;  %v4782_v35 = vunpack.c.h.s8.bf16 %v4494_v1  ;;  %v4841_v8 = vunpack.c.h.s8.bf16 %v4523_v55 }
 0x7cc   : > { %5393 = vmatprep.subr.bf16.mxu0 %v4830_v23  ;;  %v4878_v23 = vunpack.c.h.s8.bf16 %v4542_v41 }
 0x7cd   : > { %5303 = vmatmul.mubr.bf16.vlgmr.msra.gmra.mxu1 %v8352_v46  ;;  %v8440_v34 = vpop.f32.mrf.mxu0 }
 0x7ce   : > { %5344 = vmatmul.mubr.bf16.vlgmr.msra.gmra.mxu0 %v8200_v52  ;;  %5353 = vmatpush1.bf16.msra.mxu1 %v4733_v25  ;;  %v4721_v52 = vunpack.c.h.s8.bf16 %v4463_v59  ;;  %v4781_v25 = vunpack.c.h.s8.bf16 %v4493_v45 }
 0x7cf   : > { %5384 = vmatprep.mubr.bf16.mxu1 %v8255_v61  ;;  %5394 = vmatpush1.bf16.msra.mxu0 %v4829_v27  ;;  %v8445_v54 = vpop.f32.mrf.mxu0  ;;  %v4877_v27 = vunpack.c.h.s8.bf16 %v4541_v24 }
 0x7d0   : > { %5425 = vmatprep.mubr.bf16.mxu0 %v8307_v6  ;;  %5354 = vmatprep.subr.bf16.mxu1 %v4728_v22  ;;  %v4715_v6 = vunpack.c.l.s8.bf16 %v4463_v59  ;;  %v4776_v22 = vunpack.c.l.s8.bf16 %v4494_v1  ;;  %v4487_v59 = vld [vmem:[%s8009_s4 + $0x2c0] sm:$0xff]  ;;  %v4835_v1 = vunpack.c.l.s8.bf16 %v4523_v55 }
 0x7d1   : > { %5395 = vmatprep.subr.bf16.mxu0 %v4824_v47  ;;  %v5103_v57 = vpop.f32.mrf.mxu0  ;;  %v4488_v47 = vld [vmem:[%s8009_s4 + $0x2c8] sm:$0xff]  ;;  %v4763_v63 = vunpack.c.l.s8.bf16 %v4487_v59 }
 0x7d2   : > { %5355 = vmatpush1.bf16.msra.mxu1 %v4727_v31  ;;  %v4775_v31 = vunpack.c.l.s8.bf16 %v4493_v45  ;;  %v4769_v57 = vunpack.c.h.s8.bf16 %v4487_v59  ;;  %v4559_v59 = vld [vmem:[%s8009_s4 + $0x500] sm:$0xff] }
 0x7d3   : > { %5396 = vmatpush1.bf16.msra.mxu0 %v4823_v56  ;;  %v5104_v61 = vpop.f32.mrf.mxu0  ;;  %5356 = vmatprep.subr.bf16.mxu1 %v4722_v3  ;;  %v4871_v56 = vunpack.c.l.s8.bf16 %v4541_v24  ;;  %v4770_v3 = vunpack.c.h.s8.bf16 %v4488_v47  ;;  %v5100_v24 = vadd.f32 %v8440_v34, %v8401_v26 }
 0x7d4   : > { %5397 = vmatprep.subr.bf16.mxu0 %v4818_v37  ;;  %v4866_v37 = vunpack.c.h.s8.bf16 %v4536_v49  ;;  %v4764_v61 = vunpack.c.l.s8.bf16 %v4488_v47 }
 0x7d6   : > { %5357 = vmatpush1.bf16.msra.mxu1 %v4721_v52  ;;  %v4865_v52 = vunpack.c.h.s8.bf16 %v4535_v60 }
 0x7d7   : > { %5398 = vmatpush1.bf16.msra.mxu0 %v4817_v43  ;;  %5358 = vmatprep.subr.bf16.mxu1 %v4716_v4  ;;  %v4860_v43 = vunpack.c.l.s8.bf16 %v4536_v49  ;;  %v4482_v4 = vld [vmem:[%s8009_s4 + $0x298] sm:$0xff]  ;;  %v5102_v49 = vadd.f32 %v8445_v54, %v8407_v33 }
 0x7d8   : > { %5399 = vmatprep.subr.bf16.mxu0 %v4812_v51  ;;  %v4530_v51 = vld [vmem:[%s8009_s4 + $0x418] sm:$0xff] }
 0x7da   : > { %5359 = vmatpush1.bf16.msra.mxu1 %v4715_v6  ;;  %v4758_v6 = vunpack.c.h.s8.bf16 %v4482_v4 }
 0x7db   : > { %5400 = vmatpush1.bf16.msra.mxu0 %v4811_v0  ;;  %5360 = vmatprep.subr.bf16.mxu1 %v4710_v9  ;;  %v4481_v0 = vld [vmem:[%s8009_s4 + $0x290] sm:$0xff]  ;;  %v4854_v9 = vunpack.c.h.s8.bf16 %v4530_v51 }
 0x7dc   : > { %5401 = vmatprep.subr.bf16.mxu0 %v4806_v11  ;;  %v4757_v11 = vunpack.c.h.s8.bf16 %v4481_v0  ;;  %v4751_v16 = vunpack.c.l.s8.bf16 %v4481_v0 }
 0x7de   : > { %5361 = vmatpush1.bf16.msra.mxu1 %v4709_v2  ;;  %v4752_v2 = vunpack.c.l.s8.bf16 %v4482_v4 }
 0x7df   : > { %5402 = vmatpush1.bf16.msra.mxu0 %v4805_v14  ;;  %5362 = vmatprep.subr.bf16.mxu1 %v4704_v53  ;;  %v4848_v14 = vunpack.c.l.s8.bf16 %v4530_v51  ;;  %v4476_v53 = vld [vmem:[%s8009_s4 + $0x268] sm:$0xff]  ;;  %v4554_v51 = vld [vmem:[%s8009_s4 + $0x4d8] sm:$0xff] }
 0x7e0   : > { %5403 = vmatprep.subr.bf16.mxu0 %v4800_v15  ;;  %v4524_v15 = vld [vmem:[%s8009_s4 + $0x3e8] sm:$0xff]  ;;  %v4896_v0 = vunpack.c.l.s8.bf16 %v4554_v51 }
 0x7e2   : > { %5363 = vmatpush1.bf16.msra.mxu1 %v4703_v18  ;;  %v4746_v18 = vunpack.c.h.s8.bf16 %v4476_v53 }
 0x7e3   : > { %5404 = vmatpush1.bf16.msra.mxu0 %v4799_v38  ;;  %5364 = vmatprep.subr.bf16.mxu1 %v4698_v19  ;;  %v4475_v38 = vld [vmem:[%s8009_s4 + $0x260] sm:$0xff]  ;;  %v4842_v19 = vunpack.c.h.s8.bf16 %v4524_v15 }
 0x7e4   : > { %5405 = vmatprep.subr.bf16.mxu0 %v4794_v20  ;;  %v4745_v20 = vunpack.c.h.s8.bf16 %v4475_v38 }
 0x7e6   : > { %5365 = vmatpush1.bf16.msra.mxu1 %v4697_v21  ;;  %v4740_v21 = vunpack.c.l.s8.bf16 %v4476_v53 }
 0x7e7   : > { %5406 = vmatpush1.bf16.msra.mxu0 %v4793_v40  ;;  %5366 = vmatprep.subr.bf16.mxu1 %v4692_v12  ;;  %v4836_v40 = vunpack.c.l.s8.bf16 %v4524_v15  ;;  %v4566_v12 = vld [vmem:[%s8009_s4 + $0x538] sm:$0xff] }
 0x7e8   : > { %5407 = vmatprep.subr.bf16.mxu0 %v4788_v10  ;;  %v4739_v10 = vunpack.c.l.s8.bf16 %v4475_v38  ;;  %v4926_v41 = vunpack.c.h.s8.bf16 %v4566_v12  ;;  %v4589_v38 = vld [vmem:[%s8009_s4 + $0x5f0] sm:$0xff] }
 0x7ea   : > { %5367 = vmatpush1.bf16.msra.mxu1 %v4691_v42  ;;  %v4565_v42 = vld [vmem:[%s8009_s4 + $0x530] sm:$0xff] }
 0x7eb   : > { %5408 = vmatpush1.bf16.msra.mxu0 %v4787_v44  ;;  %5368 = vmatprep.subr.bf16.mxu1 %v4782_v35  ;;  %v8477_v44 = vld [vmem:[%s8016_s14] sm:$0x3f]  ;;  %v8480_v35 = vld [vmem:[%s8019_s20] sm:$0x3f]  ;;  %v4925_v45 = vunpack.c.h.s8.bf16 %v4565_v42  ;;  %v4919_v34 = vunpack.c.l.s8.bf16 %v4565_v42  ;;  %s8547_s20 = scalar_lea.hbm %s8711_s12, %s6281_s2 }
 0x7ec   : > { %5409 = vmatprep.subr.bf16.mxu0 %v4878_v23  ;;  %v4920_v23 = vunpack.c.l.s8.bf16 %v4566_v12  ;;  %v5518_v47 = vrot.slane %v8480_v35, %v8057_v30  ;;  %v5484_v26 = vrot.slane %v8477_v44, %v8060_v32 }
 0x7ee   : > { %5369 = vmatpush2.bf16.msra.mxu1 %v4781_v25  ;;  %v5480_v25 = vrot.slane %v8477_v44, %v8057_v30 }
 0x7ef   : > { %5410 = vmatpush2.bf16.msra.mxu0 %v4877_v27  ;;  %5370 = vmatprep.subr.bf16.mxu1 %v4776_v22  ;;  %v4560_v27 = vld [vmem:[%s8009_s4 + $0x508] sm:$0xff] }
 0x7f0   : > { %5411 = vmatprep.subr.bf16.mxu0 %v4872_v28 }
 0x7f2   : > { %5371 = vmatpush2.bf16.msra.mxu1 %v4775_v31 }
 0x7f3   : > { %5412 = vmatpush2.bf16.msra.mxu0 %v4871_v56  ;;  %5372 = vmatprep.subr.bf16.mxu1 %v4770_v3  ;;  %v4914_v3 = vunpack.c.h.s8.bf16 %v4560_v27 }
 0x7f4   : > { %5413 = vmatprep.subr.bf16.mxu0 %v4866_v37 }
 0x7f6   : > { %5373 = vmatpush2.bf16.msra.mxu1 %v4769_v57 }
 0x7f7   : > { %5414 = vmatpush2.bf16.msra.mxu0 %v4865_v52  ;;  %5374 = vmatprep.subr.bf16.mxu1 %v4764_v61  ;;  %v4913_v52 = vunpack.c.h.s8.bf16 %v4559_v59 }
 0x7f8   : > { %5415 = vmatprep.subr.bf16.mxu0 %v4860_v43  ;;  %v4908_v43 = vunpack.c.l.s8.bf16 %v4560_v27 }
 0x7fa   : > { %5375 = vmatpush2.bf16.msra.mxu1 %v4763_v63  ;;  %v4902_v63 = vunpack.c.h.s8.bf16 %v4554_v51  ;;  %v5492_v51 = vrot.slane %v8477_v44, %v8088_v50 }
 0x7fb   : > { %5416 = vmatpush2.bf16.msra.mxu0 %v4859_v62  ;;  %5376 = vmatprep.subr.bf16.mxu1 %v4758_v6  ;;  %v4553_v62 = vld [vmem:[%s8009_s4 + $0x4d0] sm:$0xff] }
 0x7fc   : > { %5417 = vmatprep.subr.bf16.mxu0 %v4854_v9  ;;  %v4901_v6 = vunpack.c.h.s8.bf16 %v4553_v62  ;;  %v4548_v9 = vld [vmem:[%s8009_s4 + $0x4a8] sm:$0xff]  ;;  %v4895_v5 = vunpack.c.l.s8.bf16 %v4553_v62 }
 0x7fd   : > { %v4884_v15 = vunpack.c.l.s8.bf16 %v4548_v9 }
 0x7fe   : > { %5377 = vmatpush2.bf16.msra.mxu1 %v4757_v11  ;;  %v4890_v11 = vunpack.c.h.s8.bf16 %v4548_v9 }
 0x7ff   : > { %5418 = vmatpush2.bf16.msra.mxu0 %v4853_v13  ;;  %5378 = vmatprep.subr.bf16.mxu1 %v4752_v2  ;;  %v4547_v13 = vld [vmem:[%s8009_s4 + $0x4a0] sm:$0xff] }
 0x800   : > { %5419 = vmatprep.subr.bf16.mxu0 %v4848_v14  ;;  %v4889_v14 = vunpack.c.h.s8.bf16 %v4547_v13 }
 0x802   : > { %5379 = vmatpush2.bf16.msra.mxu1 %v4751_v16  ;;  %v4590_v16 = vld [vmem:[%s8009_s4 + $0x5f8] sm:$0xff] }
 0x803   : > { %5420 = vmatpush2.bf16.msra.mxu0 %v4847_v17  ;;  %5380 = vmatprep.subr.bf16.mxu1 %v4746_v18  ;;  %v4883_v17 = vunpack.c.l.s8.bf16 %v4547_v13  ;;  %v4974_v18 = vunpack.c.h.s8.bf16 %v4590_v16  ;;  %v4968_v55 = vunpack.c.l.s8.bf16 %v4590_v16 }
 0x804   : > { %5421 = vmatprep.subr.bf16.mxu0 %v4842_v19  ;;  %v4973_v19 = vunpack.c.h.s8.bf16 %v4589_v38 }
 0x806   : > { %5381 = vmatpush2.bf16.msra.mxu1 %v4745_v20  ;;  %v4584_v20 = vld [vmem:[%s8009_s4 + $0x5c8] sm:$0xff] }
 0x807   : > { %5422 = vmatpush2.bf16.msra.mxu0 %v4841_v8  ;;  %5382 = vmatprep.subr.bf16.mxu1 %v4740_v21  ;;  %v4967_v8 = vunpack.c.l.s8.bf16 %v4589_v38  ;;  %v4962_v21 = vunpack.c.h.s8.bf16 %v4584_v20 }
 0x808   : > { %5423 = vmatprep.subr.bf16.mxu0 %v4836_v40  ;;  %v4583_v40 = vld [vmem:[%s8009_s4 + $0x5c0] sm:$0xff] }
 0x809   : > { %v4961_v12 = vunpack.c.h.s8.bf16 %v4583_v40 }
 0x80a   : > { %5383 = vmatpush2.bf16.msra.mxu1 %v4739_v10  ;;  %v4956_v10 = vunpack.c.l.s8.bf16 %v4584_v20 }
 0x80b   : > { %5424 = vmatpush2.bf16.msra.mxu0 %v4835_v1  ;;  %5434 = vmatprep.subr.bf16.mxu1 %v4926_v41  ;;  %v4578_v1 = vld [vmem:[%s8009_s4 + $0x598] sm:$0xff]  ;;  %v4955_v41 = vunpack.c.l.s8.bf16 %v4583_v40 }
 0x80c   : > { %v4950_v42 = vunpack.c.h.s8.bf16 %v4578_v1 }
 0x80d   : > { %v8487_v22 = vpop.f32.mrf.mxu0  ;;  %5385 = vmatmul.mubr.bf16.vlgmr.msra.gmra.mxu1 %v8257_v39  ;;  %v5140_v28 = vpop.f32.mrf.mxu1 }
 0x80e   : > { %5426 = vmatmul.mubr.bf16.vlgmr.msra.gmra.mxu0 %v8309_v7  ;;  %v5141_v31 = vadd.f32 %v5140_v28, %v5100_v24  ;;  %5435 = vmatpush1.bf16.msra.mxu1 %v4925_v45  ;;  %v5522_v7 = vrot.slane %v8480_v35, %v8060_v32  ;;  %v4907_v32 = vunpack.c.l.s8.bf16 %v4559_v59  ;;  %v4577_v45 = vld [vmem:[%s8009_s4 + $0x590] sm:$0xff]  ;;  %v4944_v24 = vunpack.c.l.s8.bf16 %v4578_v1 }
 0x80f   : > { %5466 = vmatprep.mubr.bf16.mxu1 %v8350_v58  ;;  %v8498_v56 = vpop.f32.mrf.mxu0  ;;  %v5142_v39 = vpop.f32.mrf.mxu1  ;;  %5436 = vmatprep.subr.bf16.mxu1 %v4920_v23  ;;  %v4949_v23 = vunpack.c.h.s8.bf16 %v4577_v45  ;;  %v4943_v27 = vunpack.c.l.s8.bf16 %v4577_v45  ;;  %v5534_v1 = vrot.slane %v8480_v35, %v8241_v29 }
 0x810   : > { %v5507_v30 = vmul.f32 %v5480_v25, %v5141_v31  ;;  %v5143_v37 = vadd.f32 %v5142_v39, %v5102_v49  ;;  %v4572_v25 = vld [vmem:[%s8009_s4 + $0x568] sm:$0xff] }
 0x811   : > { %v5185_v33 = vpop.f32.mrf.mxu0  ;;  %v5144_v54 = vpop.f32.mrf.mxu1  ;;  %v4938_v28 = vunpack.c.h.s8.bf16 %v4572_v25  ;;  %v4932_v31 = vunpack.c.l.s8.bf16 %v4572_v25 }
 0x812   : > { %v5545_v60 = vadd.f32 %v5518_v47, %v5507_v30  ;;  %v5508_v57 = vmul.f32 %v5484_v26, %v5143_v37  ;;  %5437 = vmatpush1.bf16.msra.mxu1 %v4919_v34  ;;  %v4571_v47 = vld [vmem:[%s8009_s4 + $0x560] sm:$0xff]  ;;  %s5578_s4 = sshll.u32 %s8508_s24, 4  ;;  %s5579_s4 = int_to_ptr.vmem [resolvable:$true] %s5578_s4 }
 0x813   : > { %v5186_v58 = vpop.f32.mrf.mxu0  ;;  %v5145_v61 = vpop.f32.mrf.mxu1  ;;  %5438 = vmatprep.subr.bf16.mxu1 %v4914_v3  ;;  %v4937_v49 = vunpack.c.h.s8.bf16 %v4571_v47  ;;  %v4931_v26 = vunpack.c.l.s8.bf16 %v4571_v47  ;;  %s7361_s0 = scalar_lea.vmem %s5579_s4, 768  ;;  %p7368_p6 = scmp.lt.s32.totalorder %s5579_s4, %s7366_s7 }
 0x814   : > { %6762 = vtanh.f32 %v5545_v60  ;;  %v5546_v4 = vadd.f32 %v5522_v7, %v5508_v57  ;;  %p7362_p2 = scmp.ne.s32.totalorder %s5579_s4, %s7361_s0  ;;  %p7369_p0 = scmp.lt.s32.totalorder %s7367_s6, %s7361_s0 }
 0x816   : > { %6764 = vtanh.f32 %v5546_v4  ;;  %5439 = vmatpush1.bf16.msra.mxu1 %v4913_v52  ;;  %v5488_v52 = vrot.slane %v8477_v44, %v8085_v48  ;;  %p7363_p13 = pnand %p7362_p2, %p8712_p8  ;;  %p7370_p1 = por %p7369_p0, %p7368_p6 }
 0x817   : > { %5440 = vmatprep.subr.bf16.mxu1 %v4908_v43 }
 0x818   : > { %p7364_p10 = pneg %p7363_p13 }
 0x81a   : > { %5441 = vmatpush1.bf16.msra.mxu1 %v4907_v32  ;;  %p7371_p11 = pnand %p7370_p1, %p7364_p10 }
 0x81b   : > { %5442 = vmatprep.subr.bf16.mxu1 %v4902_v63 }
 0x81e   : > { %5443 = vmatpush1.bf16.msra.mxu1 %v4901_v6 }
 0x81f   : > { %5444 = vmatprep.subr.bf16.mxu1 %v4896_v0 }
 0x821   : > { %v6763_v2 = vpop.eup %6762 }
 0x822   : > { %5445 = vmatpush1.bf16.msra.mxu1 %v4895_v5  ;;  %5557 = vst [vmem:[%s8508_s24] sm:$0xff] %v6763_v2 }
 0x823   : > { %v6765_v53 = vpop.eup %6764  ;;  %5446 = vmatprep.subr.bf16.mxu1 %v4890_v11 }
 0x824   : > { %5558 = vst [vmem:[%s8508_s24 + $0x8] sm:$0xff] %v6765_v53 }
 0x826   : > { %5447 = vmatpush1.bf16.msra.mxu1 %v4889_v14 }
 0x827   : > { %5448 = vmatprep.subr.bf16.mxu1 %v4884_v15 }
 0x82a   : > { %5449 = vmatpush1.bf16.msra.mxu1 %v4883_v17 }
 0x82b   : > { %5450 = vmatprep.subr.bf16.mxu1 %v4974_v18 }
 0x82e   : > { %5451 = vmatpush2.bf16.msra.mxu1 %v4973_v19 }
 0x82f   : > { %5452 = vmatprep.subr.bf16.mxu1 %v4968_v55 }
 0x832   : > { %5453 = vmatpush2.bf16.msra.mxu1 %v4967_v8 }
 0x833   : > { %5454 = vmatprep.subr.bf16.mxu1 %v4962_v21  ;;  %v5496_v21 = vrot.slane %v8477_v44, %v8241_v29 }
 0x836   : > { %5455 = vmatpush2.bf16.msra.mxu1 %v4961_v12 }
 0x837   : > { %5456 = vmatprep.subr.bf16.mxu1 %v4956_v10 }
 0x83a   : > { %5457 = vmatpush2.bf16.msra.mxu1 %v4955_v41  ;;  %v5500_v41 = vrot.slane %v8477_v44, %v8247_v36 }
 0x83b   : > { %5458 = vmatprep.subr.bf16.mxu1 %v4950_v42 }
 0x83e   : > { %5459 = vmatpush2.bf16.msra.mxu1 %v4949_v23 }
 0x83f   : > { %5460 = vmatprep.subr.bf16.mxu1 %v4944_v24  ;;  %v5538_v24 = vrot.slane %v8480_v35, %v8247_v36 }
 0x842   : > { %5461 = vmatpush2.bf16.msra.mxu1 %v4943_v27 }
 0x843   : > { %5462 = vmatprep.subr.bf16.mxu1 %v4938_v28 }
 0x846   : > { %5463 = vmatpush2.bf16.msra.mxu1 %v4937_v49 }
 0x847   : > { %5464 = vmatprep.subr.bf16.mxu1 %v4932_v31 }
 0x84a   : > { %5465 = vmatpush2.bf16.msra.mxu1 %v4931_v26 }
 0x84d   : > { %v5222_v34 = vpop.f32.mrf.mxu1  ;;  %v5263_v39 = vpop.f32.mrf.mxu0  ;;  %5467 = vmatmul.mubr.bf16.vlgmr.msra.gmra.mxu1 %v8352_v46  ;;  %v5526_v46 = vrot.slane %v8480_v35, %v8085_v48 }
 0x84e   : > { %v5223_v54 = vadd.f32 %v5222_v34, %v8487_v22 }
 0x84f   : > { %v5224_v3 = vpop.f32.mrf.mxu1  ;;  %v5265_v59 = vpop.f32.mrf.mxu0 }
 0x850   : > { %v5225_v60 = vadd.f32 %v5224_v3, %v8498_v56  ;;  %v5264_v57 = vadd.f32 %v5263_v39, %v5223_v54  ;;  %v5530_v56 = vrot.slane %v8480_v35, %v8088_v50 }
 0x851   : > { %v5226_v30 = vpop.f32.mrf.mxu1  ;;  %v5267_v37 = vpop.f32.mrf.mxu0 }
 0x852   : > { %v5266_v61 = vadd.f32 %v5265_v59, %v5225_v60 }
 0x853   : > { %v5227_v7 = vpop.f32.mrf.mxu1  ;;  %v5268_v33 = vpop.f32.mrf.mxu0 }
 0x88d   : > { %v5304_v58 = vpop.f32.mrf.mxu1 }
 0x88e   : > { %v5305_v43 = vadd.f32 %v5304_v58, %v5264_v57  ;;  %v5345_v4 = vpop.f32.mrf.mxu0 }
 0x88f   : > { %v5306_v32 = vpop.f32.mrf.mxu1 }
 0x890   : > { %v5509_v63 = vmul.f32 %v5488_v52, %v5305_v43  ;;  %v5307_v22 = vadd.f32 %v5306_v32, %v5266_v61  ;;  %v5347_v62 = vpop.f32.mrf.mxu0 }
 0x891   : > { %v5308_v6 = vpop.f32.mrf.mxu1 }
 0x892   : > { %v5547_v0 = vadd.f32 %v5526_v46, %v5509_v63  ;;  %v5510_v9 = vmul.f32 %v5492_v51, %v5307_v22  ;;  %v5349_v5 = vpop.f32.mrf.mxu0 }
 0x893   : > { %v5309_v11 = vpop.f32.mrf.mxu1 }
 0x894   : > { %6766 = vtanh.f32 %v5547_v0  ;;  %v5548_v48 = vadd.f32 %v5530_v56, %v5510_v9  ;;  %v5350_v13 = vpop.f32.mrf.mxu0 }
 0x896   : > { %6768 = vtanh.f32 %v5548_v48 }
 0x8a1   : > { %v6767_v2 = vpop.eup %6766 }
 0x8a2   : > { %5559 = vst [vmem:[%s8508_s24 + $0x10] sm:$0xff] %v6767_v2 }
 0x8a3   : > { %v6769_v14 = vpop.eup %6768 }
 0x8a4   : > { %5560 = vst [vmem:[%s8508_s24 + $0x18] sm:$0xff] %v6769_v14 }
 0x8cd   : > { %v5386_v53 = vpop.f32.mrf.mxu1 }
 0x8ce   : > { %v5427_v15 = vpop.f32.mrf.mxu0  ;;  %v5387_v55 = vadd.f32 %v5386_v53, %v5345_v4 }
 0x8cf   : > { %v5388_v16 = vpop.f32.mrf.mxu1 }
 0x8d0   : > { %v5429_v17 = vpop.f32.mrf.mxu0  ;;  %v5389_v20 = vadd.f32 %v5388_v16, %v5347_v62  ;;  %v5428_v8 = vadd.f32 %v5427_v15, %v5387_v55 }
 0x8d1   : > { %v5390_v18 = vpop.f32.mrf.mxu1 }
 0x8d2   : > { %v5431_v50 = vpop.f32.mrf.mxu0  ;;  %v5430_v12 = vadd.f32 %v5429_v17, %v5389_v20 }
 0x8d3   : > { %v5391_v38 = vpop.f32.mrf.mxu1 }
 0x8d4   : > { %v5432_v19 = vpop.f32.mrf.mxu0 }
 0x90d   : > { %v5468_v40 = vpop.f32.mrf.mxu1 }
 0x90e   : > { %v5469_v10 = vadd.f32 %v5468_v40, %v5428_v8 }
 0x90f   : > { %v5470_v42 = vpop.f32.mrf.mxu1 }
 0x910   : > { %v5511_v45 = vmul.f32 %v5496_v21, %v5469_v10  ;;  %v5471_v23 = vadd.f32 %v5470_v42, %v5430_v12 }
 0x911   : > { %v5472_v25 = vpop.f32.mrf.mxu1 }
 0x912   : > { %v5549_v27 = vadd.f32 %v5534_v1, %v5511_v45  ;;  %v5512_v28 = vmul.f32 %v5500_v41, %v5471_v23 }
 0x913   : > { %v5473_v47 = vpop.f32.mrf.mxu1 }
 0x914   : > { %6770 = vtanh.f32 %v5549_v27  ;;  %v5550_v49 = vadd.f32 %v5538_v24, %v5512_v28 }
 0x916   : > { %6772 = vtanh.f32 %v5550_v49 }
 0x921   : > { %v6771_v29 = vpop.eup %6770 }
 0x922   : > { %5561 = vst [vmem:[%s8508_s24 + $0x20] sm:$0xff] %v6771_v29 }
 0x923   : > { %v6773_v36 = vpop.eup %6772 }
 0x924   : > { %5562 = vst [vmem:[%s8508_s24 + $0x28] sm:$0xff] %v6773_v36 }
 0x925   : > { %7374 = shalt.err (!%p7371_p11)
}
 0x926   : > { %s7375_s26 = scalar_lea.hbm %s8547_s20, 768  ;;  %s7379_s8 = scalar_lea.hbm %s8711_s12, 3072 }
 0x927   : > { %p7376_p5 = scmp.ne.s32.totalorder %s8547_s20, %s7375_s26  ;;  %p7380_p4 = scmp.lt.s32.totalorder %s8547_s20, %s8711_s12 }
 0x928   : > { %p7381_p7 = scmp.lt.s32.totalorder %s7379_s8, %s7375_s26 }
 0x929   : > { %p7377_p3 = pnand %p7376_p5, %p8712_p8 }
 0x92a   : > { %p7382_p9 = por %p7381_p7, %p7380_p4 }
 0x92b   : > { %p7378_p12 = pneg %p7377_p3 }
 0x92d   : > { %p7383_p2 = pnand %p7382_p9, %p7378_p12 }
 0x92f   : > { %7386 = shalt.err (!%p7383_p2)
}
 0x930   : > { %6423 = dma.vmem_to_hbm [thread:$0]  (%p8712_p8), %s5579_s4, 768, %s8547_s20, %s5564_s3  }
 0x931 PF: > { %p6536_p13 = scmp.ge.s32.totalorder %s7471_s1, 2  ;;  %s5590_s24 = sand.u32 1, %s7459_s17  }
 0x932   : > { %p8713_p10 = scmp.ne.s32.totalorder %s8668_s28, 0  ;;  %s5591_s2 = scalar_lea.sflag [#allocation6], %s5590_s24 }
 0x934   : > { %p6494_p6 = pnand %p6536_p13, %p8713_p10 }
 0x936   : > { %p6495_p0 = pneg %p6494_p6 }
 0x938   : > { %7454 = dma.done.wait (%p6495_p0), %s5591_s2, 768  }
 0x939   : > { %7456 = vsyncadd (%p6495_p0), %s5591_s2, 4294966528  ;;  %s8714_s23 = sld [smem:[#allocation54_spill]]  ;;  %p53_p1 = scmp.ge.s32.totalorder %s7763_s21, 6  }
 0x93a   : > { %s8715_s5 = sld [smem:[#allocation56_spill]]  ;;  %s8716_s17 = smov %s7463_s25 }
 0x93b   : > { %s8718_s1 = smov %s7763_s21  ;;  %55 = sbr.rel (!%p53_p1) target bundleno = 47 (0x2f), region = 254 }
 0x93f   : > { %s8717_s25 = smov %s8714_s23 }
 0x940   :  { %5596 = vsyncpa [#allocation5], 1 }
 0x941   :  { %5598 = vsyncpa [#allocation5 + $0x1], 1 }
 0x942   :  { %5599 = vsyncpa [#allocation8], 1 }
 0x943   :  { %5600 = vsyncpa [#allocation11], 1 }
 0x944   :  { %5601 = vsyncpa [#allocation14], 1 }
 0x945   :  { %5602 = vsyncpa [#allocation17], 1 }
 0x946   :  { %5603 = vsyncpa [#allocation20], 1 }
 0x947   :  { %5604 = vsyncpa [#allocation23], 1 }
 0x948   :  { %5605 = vsyncpa [#allocation26], 1 }
 0x949   :  { %5606 = vsyncpa [#allocation29], 1 }
 0x94a   :  { %5607 = vsyncpa [#allocation32], 1 }
 0x94b   :  { %5608 = vsyncpa [#allocation35], 1 }
 0x94c   :  { %5610 = vsyncpa [#allocation35 + $0x1], 1 }
 0x94d   :  { %5611 = vsyncpa [#allocation38], 1 }
 0x94e   :  { %5613 = vsyncpa [#allocation38 + $0x1], 1 }
 0x94f   :  { %5614 = vsyncpa [#allocation6], 1 }
 0x950   :  { %5616 = vsyncpa [#allocation6 + $0x1], 1 }

</bundles_post_ra>
